<compile_context>
chip_gen: v6e
topology: v6e:2x2x1
jax: 0.10.0
libtpu: 0.0.40
codegen_flags: <defaults>
</compile_context>

<pallas_src>
from typing import List, Sequence, Tuple

import jax
import jax.numpy as jnp
from jax.experimental import pallas as pl
from jax.experimental.pallas import tpu as pltpu


def _round_up(x: int, m: int) -> int:
    return ((x + m - 1) // m) * m


def _mlp_kernel(x_ref, *rest):
    """Fused MLP body.

    rest = (w0, b0, w1, b1, ..., wL, bL, out_ref).  Everything is unpadded;
    weights are (d_in, d_out) (== torch weight.T), biases are (1, d_out).
    """
    out_ref = rest[-1]
    params = rest[:-1]
    n_layers = len(params) // 2

    x = x_ref[...]                      # (tile_m, n_in), float32
    n_in = x.shape[1]
    for layer in range(n_layers):       # layer count is compile-time static
        w = params[2 * layer][...]      # (d_in, d_out)
        b = params[2 * layer + 1][...]  # (1, d_out)
        if layer == 0 and n_in <= 8:
            # Tiny-K first layer: pure VPU broadcast-multiply-add (avoids a
            # degenerate K=2 MXU matmul).
            y = b + x[:, 0:1] * w[0:1, :]
            for k in range(1, n_in):
                y = y + x[:, k : k + 1] * w[k : k + 1, :]
        else:
            y = jnp.dot(x, w, preferred_element_type=jnp.float32) + b
        x = jnp.tanh(y) if layer < n_layers - 1 else y
    out_ref[...] = x.astype(out_ref.dtype)


def prepare_params(
    weights: Sequence[jax.Array],  # each (in_dim, out_dim)  == torch weight.T
    biases: Sequence[jax.Array],   # each (out_dim,)
) -> Tuple[Tuple[jax.Array, ...], Tuple[jax.Array, ...]]:
    """One-time parameter prep (hoisted out of the forward path).

    Only casts to f32 and reshapes biases to (1, d_out) row vectors.
    No padding is required: full-array BlockSpecs are legal at any width.
    """
    ws = tuple(jnp.asarray(w, jnp.float32) for w in weights)
    bs = tuple(jnp.asarray(b, jnp.float32).reshape(1, -1) for b in biases)
    return ws, bs


def mlp_forward(
    x: jax.Array,
    params: Tuple[Tuple[jax.Array, ...], Tuple[jax.Array, ...]],
    *,
    tile_m: int = 1024,
) -> Tuple[jax.Array, jax.Array]:
    """Equivalent of NN.forward: returns (network(x), x).

    tile_m notes: v5e/v6e (single TensorCore) prefer 1024-2048 so the whole
    batch runs in a few fat steps; on v7x choose tile_m so cdiv(n, tile_m) is
    even and >= 2 so the "parallel" batch axis uses both TensorCores.
    """
    weights, biases = params
    n, n_in = x.shape
    assert weights[0].shape[0] == n_in
    n_out = weights[-1].shape[1]

    x = jnp.asarray(x, jnp.float32)

    tile_m = _round_up(min(tile_m, _round_up(n, 8)), 8)   # sublane-aligned
    grid = (pl.cdiv(n, tile_m),)                           # ragged last block OK

    # Activation tile advances with the grid; weights/biases use constant
    # block indices so Pallas keeps them VMEM-resident (no per-step re-DMA;
    # at ~20 KiB total, double-buffer overhead is negligible).
    in_specs: List[pl.BlockSpec] = [pl.BlockSpec((tile_m, n_in), lambda i: (i, 0))]
    args: List[jax.Array] = [x]
    for w, b in zip(weights, biases):
        in_specs.append(pl.BlockSpec(w.shape, lambda i: (0, 0)))
        in_specs.append(pl.BlockSpec(b.shape, lambda i: (0, 0)))
        args.append(w)
        args.append(b)

    # Output stored at its natural width (n_out) — no lane padding, no slice.
    out_specs = pl.BlockSpec((tile_m, n_out), lambda i: (i, 0))

    y = pl.pallas_call(
        _mlp_kernel,
        out_shape=jax.ShapeDtypeStruct((n, n_out), jnp.float32),
        grid_spec=pl.GridSpec(grid=grid, in_specs=in_specs, out_specs=out_specs),
        compiler_params=pltpu.CompilerParams(
            dimension_semantics=("parallel",),
        ),
    )(*args)

    # Coords passthrough handled here — never routed through the kernel.
    # TODO(synk): torch's clone().detach().requires_grad_(True) is autograd
    # bookkeeping with no Pallas analogue; in JAX, gradients w.r.t. the
    # coordinates come from applying jax.grad to this function.
    return y, x


# ---------------------------- reference + demo -------------------------------


def _build_params(key, n_in: int, n_hidden: List[int], n_out: int):
    """Xavier-uniform weights, zero biases (matches NN.init_weights)."""
    dims = [n_in] + list(n_hidden) + [n_out]
    weights, biases = [], []
    for d_in, d_out in zip(dims[:-1], dims[1:]):
        key, sub = jax.random.split(key)
        bound = (6.0 / (d_in + d_out)) ** 0.5
        w = jax.random.uniform(sub, (d_in, d_out), jnp.float32, -bound, bound)
        weights.append(w)
        biases.append(jnp.zeros((d_out,), jnp.float32))
    return weights, biases


def _reference(x, weights, biases):
    h = x
    for l, (w, b) in enumerate(zip(weights, biases)):
        h = h @ w + b
        if l < len(weights) - 1:
            h = jnp.tanh(h)
    return h


if __name__ == "__main__":
    key = jax.random.PRNGKey(0)
    n_in, n_hidden, n_out = 2, [32, 32, 32], 1
    batch = 1000   # deliberately NOT a multiple of 8 / tile: exercises ragged block

    key, kx = jax.random.split(key)
    x = jax.random.uniform(kx, (batch, n_in), jnp.float32, -1.0, 1.0)
    weights, biases = _build_params(key, n_in, n_hidden, n_out)
    params = prepare_params(weights, biases)      # one-time, outside forward

    y_ref = _reference(x, weights, biases)

    # Single fat grid step (ragged block covers the whole batch).
    y, coords = mlp_forward(x, params, tile_m=1024)
    y = jax.block_until_ready(y)
    assert y.shape == (batch, n_out)
    assert coords.shape == (batch, n_in)
    err = float(jnp.max(jnp.abs(y - y_ref)))
    assert jnp.allclose(y, y_ref, atol=1e-4, rtol=1e-4), f"max abs err = {err}"

    # Multi-block path (4 grid steps, ragged last block).
    y2, _ = mlp_forward(x, params, tile_m=256)
    y2 = jax.block_until_ready(y2)
    err2 = float(jnp.max(jnp.abs(y2 - y_ref)))
    assert jnp.allclose(y2, y_ref, atol=1e-4, rtol=1e-4), f"max abs err = {err2}"

    print("KERNEL_OK")
</pallas_src>

<mosaic_0001>
module attributes {stable_mosaic.version = 11 : i64} {
  func.func @_mlp_kernel(%arg0: i32, %arg1: memref<1000x2xf32, #tpu.memory_space<vmem>>, %arg2: memref<2x32xf32, #tpu.memory_space<vmem>>, %arg3: memref<1x32xf32, #tpu.memory_space<vmem>>, %arg4: memref<32x32xf32, #tpu.memory_space<vmem>>, %arg5: memref<1x32xf32, #tpu.memory_space<vmem>>, %arg6: memref<32x32xf32, #tpu.memory_space<vmem>>, %arg7: memref<1x32xf32, #tpu.memory_space<vmem>>, %arg8: memref<32x1xf32, #tpu.memory_space<vmem>>, %arg9: memref<1x1xf32, #tpu.memory_space<vmem>>, %arg10: memref<1000x1xf32, #tpu.memory_space<vmem>>) attributes {dimension_semantics = [#tpu.dimension_semantics<parallel>], iteration_bounds = array<i64: 1>, scalar_prefetch = 0 : i64, scratch_operands = 0 : i64, tpu.core_type = #tpu.core_type<tc>, window_params = [{transform_indices = @transform_0, window_bounds = array<i64: 1000, 2>}, {pipeline_mode = #tpu.pipeline_mode<synchronous>, transform_indices = @transform_1, window_bounds = array<i64: 2, 32>}, {pipeline_mode = #tpu.pipeline_mode<synchronous>, transform_indices = @transform_2, window_bounds = array<i64: 1, 32>}, {pipeline_mode = #tpu.pipeline_mode<synchronous>, transform_indices = @transform_3, window_bounds = array<i64: 32, 32>}, {pipeline_mode = #tpu.pipeline_mode<synchronous>, transform_indices = @transform_4, window_bounds = array<i64: 1, 32>}, {pipeline_mode = #tpu.pipeline_mode<synchronous>, transform_indices = @transform_5, window_bounds = array<i64: 32, 32>}, {pipeline_mode = #tpu.pipeline_mode<synchronous>, transform_indices = @transform_6, window_bounds = array<i64: 1, 32>}, {pipeline_mode = #tpu.pipeline_mode<synchronous>, transform_indices = @transform_7, window_bounds = array<i64: 32, 1>}, {pipeline_mode = #tpu.pipeline_mode<synchronous>, transform_indices = @transform_8, window_bounds = array<i64: 1, 1>}, {transform_indices = @transform_9, window_bounds = array<i64: 1000, 1>}]} {
    %c0 = arith.constant 0 : index
    %c0_0 = arith.constant 0 : index
    %0 = vector.load %arg1[%c0, %c0_0] : memref<1000x2xf32, #tpu.memory_space<vmem>>, vector<1000x2xf32>
    %c0_1 = arith.constant 0 : index
    %c0_2 = arith.constant 0 : index
    %1 = vector.load %arg2[%c0_1, %c0_2] : memref<2x32xf32, #tpu.memory_space<vmem>>, vector<2x32xf32>
    %c0_3 = arith.constant 0 : index
    %c0_4 = arith.constant 0 : index
    %2 = vector.load %arg3[%c0_3, %c0_4] : memref<1x32xf32, #tpu.memory_space<vmem>>, vector<1x32xf32>
    %3 = vector.extract_strided_slice %0 {offsets = [0, 0], sizes = [1000, 1], strides = [1, 1]} : vector<1000x2xf32> to vector<1000x1xf32>
    %4 = vector.extract_strided_slice %1 {offsets = [0, 0], sizes = [1, 32], strides = [1, 1]} : vector<2x32xf32> to vector<1x32xf32>
    %5 = vector.broadcast %3 : vector<1000x1xf32> to vector<1000x32xf32>
    %6 = vector.broadcast %4 : vector<1x32xf32> to vector<1000x32xf32>
    %7 = arith.mulf %5, %6 : vector<1000x32xf32>
    %8 = vector.broadcast %2 : vector<1x32xf32> to vector<1000x32xf32>
    %9 = arith.addf %8, %7 : vector<1000x32xf32>
    %10 = vector.extract_strided_slice %0 {offsets = [0, 1], sizes = [1000, 1], strides = [1, 1]} : vector<1000x2xf32> to vector<1000x1xf32>
    %11 = vector.extract_strided_slice %1 {offsets = [1, 0], sizes = [1, 32], strides = [1, 1]} : vector<2x32xf32> to vector<1x32xf32>
    %12 = vector.broadcast %10 : vector<1000x1xf32> to vector<1000x32xf32>
    %13 = vector.broadcast %11 : vector<1x32xf32> to vector<1000x32xf32>
    %14 = arith.mulf %12, %13 : vector<1000x32xf32>
    %15 = arith.addf %9, %14 : vector<1000x32xf32>
    %16 = math.tanh %15 : vector<1000x32xf32>
    %c0_5 = arith.constant 0 : index
    %c0_6 = arith.constant 0 : index
    %17 = vector.load %arg4[%c0_5, %c0_6] : memref<32x32xf32, #tpu.memory_space<vmem>>, vector<32x32xf32>
    %c0_7 = arith.constant 0 : index
    %c0_8 = arith.constant 0 : index
    %18 = vector.load %arg5[%c0_7, %c0_8] : memref<1x32xf32, #tpu.memory_space<vmem>>, vector<1x32xf32>
    %cst = arith.constant dense<0.000000e+00> : vector<1000x32xf32>
    %19 = tpu.matmul %16, %17, %cst {dimension_numbers = #tpu.dot_dimension_numbers<[1], [0], [0], [1], [0, 0, 1, 1], [], []>} : vector<1000x32xf32>, vector<32x32xf32>, vector<1000x32xf32> -> vector<1000x32xf32>
    %20 = vector.broadcast %18 : vector<1x32xf32> to vector<1000x32xf32>
    %21 = arith.addf %19, %20 : vector<1000x32xf32>
    %22 = math.tanh %21 : vector<1000x32xf32>
    %c0_9 = arith.constant 0 : index
    %c0_10 = arith.constant 0 : index
    %23 = vector.load %arg6[%c0_9, %c0_10] : memref<32x32xf32, #tpu.memory_space<vmem>>, vector<32x32xf32>
    %c0_11 = arith.constant 0 : index
    %c0_12 = arith.constant 0 : index
    %24 = vector.load %arg7[%c0_11, %c0_12] : memref<1x32xf32, #tpu.memory_space<vmem>>, vector<1x32xf32>
    %cst_13 = arith.constant dense<0.000000e+00> : vector<1000x32xf32>
    %25 = tpu.matmul %22, %23, %cst_13 {dimension_numbers = #tpu.dot_dimension_numbers<[1], [0], [0], [1], [0, 0, 1, 1], [], []>} : vector<1000x32xf32>, vector<32x32xf32>, vector<1000x32xf32> -> vector<1000x32xf32>
    %26 = vector.broadcast %24 : vector<1x32xf32> to vector<1000x32xf32>
    %27 = arith.addf %25, %26 : vector<1000x32xf32>
    %28 = math.tanh %27 : vector<1000x32xf32>
    %c0_14 = arith.constant 0 : index
    %c0_15 = arith.constant 0 : index
    %29 = vector.load %arg8[%c0_14, %c0_15] : memref<32x1xf32, #tpu.memory_space<vmem>>, vector<32x1xf32>
    %c0_16 = arith.constant 0 : index
    %c0_17 = arith.constant 0 : index
    %30 = vector.load %arg9[%c0_16, %c0_17] : memref<1x1xf32, #tpu.memory_space<vmem>>, vector<1x1xf32>
    %cst_18 = arith.constant dense<0.000000e+00> : vector<1000x1xf32>
    %31 = tpu.matmul %28, %29, %cst_18 {dimension_numbers = #tpu.dot_dimension_numbers<[1], [0], [0], [1], [0, 0, 1, 1], [], []>} : vector<1000x32xf32>, vector<32x1xf32>, vector<1000x1xf32> -> vector<1000x1xf32>
    %32 = vector.broadcast %30 : vector<1x1xf32> to vector<1000x1xf32>
    %33 = arith.addf %31, %32 : vector<1000x1xf32>
    %c0_19 = arith.constant 0 : index
    %c0_20 = arith.constant 0 : index
    %34 = vector.load %arg10[%c0_19, %c0_20] : memref<1000x1xf32, #tpu.memory_space<vmem>>, vector<1000x1xf32>
    tpu.vector_store %arg10[%c0_19, %c0_20], %33 {strides = array<i32>} : memref<1000x1xf32, #tpu.memory_space<vmem>>, vector<1000x1xf32>,
    return
  }
  func.func @transform_0(%arg0: i32) -> (i32, i32) {
    %c0_i32 = arith.constant 0 : i32
    %c0_i32_0 = arith.constant 0 : i32
    return %arg0, %c0_i32 : i32, i32
  }
  func.func @transform_1(%arg0: i32) -> (i32, i32) {
    %c0_i32 = arith.constant 0 : i32
    %c0_i32_0 = arith.constant 0 : i32
    %c0_i32_1 = arith.constant 0 : i32
    return %c0_i32, %c0_i32_0 : i32, i32
  }
  func.func @transform_2(%arg0: i32) -> (i32, i32) {
    %c0_i32 = arith.constant 0 : i32
    %c0_i32_0 = arith.constant 0 : i32
    %c0_i32_1 = arith.constant 0 : i32
    return %c0_i32, %c0_i32_0 : i32, i32
  }
  func.func @transform_3(%arg0: i32) -> (i32, i32) {
    %c0_i32 = arith.constant 0 : i32
    %c0_i32_0 = arith.constant 0 : i32
    %c0_i32_1 = arith.constant 0 : i32
    return %c0_i32, %c0_i32_0 : i32, i32
  }
  func.func @transform_4(%arg0: i32) -> (i32, i32) {
    %c0_i32 = arith.constant 0 : i32
    %c0_i32_0 = arith.constant 0 : i32
    %c0_i32_1 = arith.constant 0 : i32
    return %c0_i32, %c0_i32_0 : i32, i32
  }
  func.func @transform_5(%arg0: i32) -> (i32, i32) {
    %c0_i32 = arith.constant 0 : i32
    %c0_i32_0 = arith.constant 0 : i32
    %c0_i32_1 = arith.constant 0 : i32
    return %c0_i32, %c0_i32_0 : i32, i32
  }
  func.func @transform_6(%arg0: i32) -> (i32, i32) {
    %c0_i32 = arith.constant 0 : i32
    %c0_i32_0 = arith.constant 0 : i32
    %c0_i32_1 = arith.constant 0 : i32
    return %c0_i32, %c0_i32_0 : i32, i32
  }
  func.func @transform_7(%arg0: i32) -> (i32, i32) {
    %c0_i32 = arith.constant 0 : i32
    %c0_i32_0 = arith.constant 0 : i32
    %c0_i32_1 = arith.constant 0 : i32
    return %c0_i32, %c0_i32_0 : i32, i32
  }
  func.func @transform_8(%arg0: i32) -> (i32, i32) {
    %c0_i32 = arith.constant 0 : i32
    %c0_i32_0 = arith.constant 0 : i32
    %c0_i32_1 = arith.constant 0 : i32
    return %c0_i32, %c0_i32_0 : i32, i32
  }
  func.func @transform_9(%arg0: i32) -> (i32, i32) {
    %c0_i32 = arith.constant 0 : i32
    %c0_i32_0 = arith.constant 0 : i32
    return %arg0, %c0_i32 : i32, i32
  }
}

</mosaic_0001>

<bundles_post_ra>
// kernel: tpu_custom_call.1
= control target key start
LH: loop header
LB: loop body
LE: loop exit
PB: predicated region body
PF: predicated region fallthrough
CT: control target
= control target key end

     0   :  { %v12093_v0 = vmov 0   ;;  %v12091_v3 = vmov 1   ;;  %v12089_v6 = vmov 0.0   ;;  %vm8348_vm0 = vmmov 0   ;;  %s12079_s0 = inlined_call_operand.vmem [shape: f32[1000,2], index: 0, kind: input, shape index: {}]   ;;  %s12080_s3 = inlined_call_operand.vmem [shape: f32[32,32], index: 3, kind: input, shape index: {}]   ;;  %s12081_s1 = inlined_call_operand.vmem [shape: f32[2,32], index: 1, kind: input, shape index: {}]   ;;  %s12082_s2 = inlined_call_operand.vmem [shape: f32[1,32], index: 2, kind: input, shape index: {}]   ;;  %s12083_s5 = inlined_call_operand.vmem [shape: f32[32,32], index: 5, kind: input, shape index: {}]   ;;  %s12084_s7 = inlined_call_operand.vmem [shape: f32[32,1], index: 7, kind: input, shape index: {}]   ;;  %s12085_s4 = inlined_call_operand.vmem [shape: f32[1,32], index: 4, kind: input, shape index: {}]   ;;  %s12086_s6 = inlined_call_operand.vmem [shape: f32[1,32], index: 6, kind: input, shape index: {}]   ;;  %s12087_s8 = inlined_call_operand.<no memory space> [shape: f32[1,1], index: 8, kind: input, shape index: {}]   ;;  %s12088_s9 = inlined_call_operand.vmem [shape: f32[1000,1], index: 9, kind: output, shape index: {}]  }
   0x1   :  { %7463 = vset.pattern.permute.xlu1 %v12093_v0  ;;  %7461 = vset.pattern.permute.xlu0 %v12093_v0  ;;  %v98_v1 = vld [vmem:[%s12079_s0 + $0x200] sm:$0xff]  ;;  %v97_v2 = vld [vmem:[%s12079_s0 + $0x1f8] sm:$0xff]  ;;  %v99_v4 = vld [vmem:[%s12079_s0 + $0x208] sm:$0xff]  ;;  %v786_v45 = vlaneseq  ;;  %vm1936_vm1 = vcmask 261120   ;;  %vm5404_vm2 = vcmask 7168  }
   0x2   :  { %483 = vperm.xlu1 %7463, %v98_v1   ;;  %478 = vperm.xlu0 %7461, %v97_v2   ;;  %v100_v5 = vld [vmem:[%s12079_s0 + $0x210] sm:$0xff]  ;;  %v101_v7 = vld [vmem:[%s12079_s0 + $0x218] sm:$0xff]  ;;  %v1926_v10 = vld [vmem:[%s12080_s3 + $0x8] sm:$0xff] }
   0x3   :  { %7449 = vmatprep.subr.mxu1 %v12089_v6  ;;  %6300 = vmatprep.subr.mxu0 %v12089_v6  ;;  %v1928_v8 = vld [vmem:[%s12080_s3 + $0x18] sm:$0xff]  ;;  %v1927_v9 = vld [vmem:[%s12080_s3 + $0x10] sm:$0xff]  ;;  %v102_v11 = vld [vmem:[%s12079_s0 + $0x220] sm:$0xff]  ;;  %v787_v48 = vshrl.u32 %v786_v45, 7 }
   0x4   :  { %7453 = vmatpush3.msra.mxu1 %v1928_v8  ;;  %6301 = vmatpush3.msra.mxu0 %v1928_v8  ;;  %v1925_v12 = vld [vmem:[%s12080_s3] sm:$0xff]  ;;  %v103_v13 = vld [vmem:[%s12079_s0 + $0x228] sm:$0xff]  ;;  %v104_v14 = vld [vmem:[%s12079_s0 + $0x230] sm:$0xff] }
   0x5   :  { %7450 = vmatprep.subr.mxu1 %v12089_v6  ;;  %6497 = vmatprep.mubr.msk.f32.mxu1 %vm8348_vm0, %v12089_v6  ;;  %v105_v15 = vld [vmem:[%s12079_s0 + $0x238] sm:$0xff]  ;;  %v106_v16 = vld [vmem:[%s12079_s0 + $0x240] sm:$0xff]  ;;  %v8463_v17 = vld [vmem:[%s12079_s0 + $0x8] sm:$0xff]  ;;  %v788_v50 = vsub.s32 0, %v787_v48  ;;  %v1548_v53 = vsub.s32 1, %v787_v48 }
   0x6   :  { %7464 = vset.pattern.permute.xlu1 %v12091_v3  ;;  %7462 = vset.pattern.permute.xlu0 %v12091_v3  ;;  %v34_v18 = vld [vmem:[%s12079_s0] sm:$0xff]  ;;  %v8472_v19 = vld [vmem:[%s12079_s0 + $0x18] sm:$0xff]  ;;  %v8479_v20 = vld [vmem:[%s12079_s0 + $0x28] sm:$0xff] }
   0x7   :  { %1303 = vperm.xlu1 %7464, %v98_v1   ;;  %1299 = vperm.xlu0 %7462, %v97_v2   ;;  %v8484_v21 = vld [vmem:[%s12079_s0 + $0x248] sm:$0xff]  ;;  %v8490_v22 = vld [vmem:[%s12079_s0 + $0x38] sm:$0xff]  ;;  %v108_v23 = vld [vmem:[%s12079_s0 + $0x250] sm:$0xff] }
   0x8   :  { %7454 = vmatpush3.msra.mxu1 %v1927_v9  ;;  %6302 = vmatprep.subr.mxu0 %v12089_v6  ;;  %v8500_v24 = vld [vmem:[%s12079_s0 + $0x48] sm:$0xff]  ;;  %v8507_v25 = vld [vmem:[%s12079_s0 + $0x58] sm:$0xff]  ;;  %v36_v27 = vld [vmem:[%s12079_s0 + $0x10] sm:$0xff] }
   0x9   :  { %7451 = vmatprep.subr.mxu1 %v12089_v6  ;;  %6303 = vmatpush3.msra.mxu0 %v1927_v9  ;;  %v8514_v26 = vld [vmem:[%s12079_s0 + $0x68] sm:$0xff]  ;;  %v8524_v28 = vld [vmem:[%s12079_s0 + $0x78] sm:$0xff]  ;;  %v110_v32 = vld [vmem:[%s12079_s0 + $0x260] sm:$0xff] }
   0xa   :  { %7455 = vmatpush3.msra.mxu1 %v1926_v10  ;;  %6308 = vmatprep.mubr.msk.f32.mxu0 %vm8348_vm0, %v12089_v6  ;;  %v8531_v29 = vld [vmem:[%s12079_s0 + $0x88] sm:$0xff]  ;;  %v8536_v30 = vld [vmem:[%s12079_s0 + $0x258] sm:$0xff]  ;;  %v38_v36 = vld [vmem:[%s12079_s0 + $0x20] sm:$0xff] }
   0xb   :  { %7465 = vset.pattern.permute.xlu1 %v12093_v0  ;;  %1307 = vperm.xlu0 %7462, %v99_v4   ;;  %v8542_v31 = vld [vmem:[%s12079_s0 + $0x98] sm:$0xff]  ;;  %v8552_v33 = vld [vmem:[%s12079_s0 + $0xa8] sm:$0xff]  ;;  %v112_v41 = vld [vmem:[%s12079_s0 + $0x270] sm:$0xff] }
   0xc   :  { %488 = vperm.xlu1 %7465, %v99_v4   ;;  %7452 = vmatprep.subr.mxu1 %v12089_v6  ;;  %v8559_v34 = vld [vmem:[%s12079_s0 + $0xb8] sm:$0xff]  ;;  %v8566_v35 = vld [vmem:[%s12079_s0 + $0xc8] sm:$0xff]  ;;  %v40_v46 = vld [vmem:[%s12079_s0 + $0x30] sm:$0xff] }
   0xd   :  { %7456 = vmatpush3.msra.mxu1 %v1925_v12  ;;  %6304 = vmatprep.subr.mxu0 %v12089_v6  ;;  %v8576_v37 = vld [vmem:[%s12079_s0 + $0xd8] sm:$0xff]  ;;  %v8583_v38 = vld [vmem:[%s12079_s0 + $0xe8] sm:$0xff]  ;;  %v159_v51 = vld [vmem:[%s12081_s1] sm:$0x3] }
   0xe   :  { %6683 = vmatprep.subr.mxu1 %v12089_v6  ;;  %6305 = vmatpush3.msra.mxu0 %v1926_v10  ;;  %v8588_v39 = vld [vmem:[%s12079_s0 + $0x268] sm:$0xff]  ;;  %v8594_v40 = vld [vmem:[%s12079_s0 + $0xf8] sm:$0xff]  ;;  %v8646_v54 = vrot.slane %v159_v51, %v788_v50  ;;  %v8656_v59 = vrot.slane %v159_v51, %v1548_v53  ;;  %v114_v60 = vld [vmem:[%s12079_s0 + $0x280] sm:$0xff] }
   0xf   :  { %1311 = vperm.xlu0 %7462, %v100_v5   ;;  %6306 = vmatprep.subr.mxu0 %v12089_v6  ;;  %v8604_v42 = vld [vmem:[%s12079_s0 + $0x108] sm:$0xff]  ;;  %v8611_v43 = vld [vmem:[%s12079_s0 + $0x118] sm:$0xff]  ;;  %v8664_v61 = vld [vmem:[%s12082_s2] ss:$0 sm:$0xff] }
  0x10   :  { %493 = vperm.xlu1 %7465, %v100_v5   ;;  %6307 = vmatpush3.msra.mxu0 %v1925_v12  ;;  %v8618_v44 = vld [vmem:[%s12079_s0 + $0x128] sm:$0xff]  ;;  %v8628_v47 = vld [vmem:[%s12079_s0 + $0x138] sm:$0xff] }
  0x11   :  { %7066 = vmatprep.subr.mxu0 %v12089_v6  ;;  %v8635_v49 = vld [vmem:[%s12079_s0 + $0x148] sm:$0xff]  ;;  %v8643_v52 = vld [vmem:[%s12079_s0 + $0x278] sm:$0xff] }
  0x12   :  { %v8651_v55 = vld [vmem:[%s12079_s0 + $0x158] sm:$0xff]  ;;  %v79_v62 = vld [vmem:[%s12079_s0 + $0x168] sm:$0xff] }
  0x13   :  { %1315 = vperm.xlu0 %7462, %v101_v7   ;;  %v81_v8 = vld [vmem:[%s12079_s0 + $0x178] sm:$0xff] }
  0x14   :  { %498 = vperm.xlu1 %7465, %v101_v7  }
  0x17   :  { %1319 = vperm.xlu0 %7462, %v102_v11  }
  0x18   :  { %503 = vperm.xlu1 %7465, %v102_v11  }
  0x1b   :  { %1323 = vperm.xlu0 %7462, %v103_v13  }
  0x1c   :  { %508 = vperm.xlu1 %7465, %v103_v13  }
  0x1f   :  { %1327 = vperm.xlu0 %7462, %v104_v14  }
  0x20   :  { %513 = vperm.xlu1 %7465, %v104_v14  }
  0x23   :  { %1331 = vperm.xlu0 %7462, %v105_v15  }
  0x24   :  { %518 = vperm.xlu1 %7465, %v105_v15  }
  0x27   :  { %1335 = vperm.xlu0 %7462, %v106_v16  }
  0x28   :  { %523 = vperm.xlu1 %7465, %v106_v16   ;;  %v83_v16 = vld [vmem:[%s12079_s0 + $0x188] sm:$0xff] }
  0x2b   :  { %1051 = vperm.xlu0 %7462, %v8463_v17  }
  0x2c   :  { %163 = vperm.xlu1 %7465, %v34_v18  }
  0x2f   :  { %1059 = vperm.xlu0 %7462, %v8472_v19  }
  0x30   :  { %7466 = vset.pattern.permute.xlu1 %v12091_v3 }
  0x31   :  { %1047 = vperm.xlu1 %7466, %v34_v18   ;;  %v42_v18 = vld [vmem:[%s12079_s0 + $0x40] sm:$0xff] }
  0x33   :  { %1067 = vperm.xlu0 %7462, %v8479_v20  }
  0x35   :  { %1339 = vperm.xlu1 %7466, %v8484_v21  }
  0x37   :  { %1075 = vperm.xlu0 %7462, %v8490_v22  }
  0x39   :  { %7467 = vset.pattern.permute.xlu1 %v12093_v0 }
  0x3a   :  { %533 = vperm.xlu1 %7467, %v108_v23  }
  0x3b   :  { %1083 = vperm.xlu0 %7462, %v8500_v24  }
  0x3e   :  { %7468 = vset.pattern.permute.xlu1 %v12091_v3 }
  0x3f   :  { %1091 = vperm.xlu0 %7462, %v8507_v25   ;;  %1343 = vperm.xlu1 %7468, %v108_v23  }
  0x43   :  { %1099 = vperm.xlu0 %7462, %v8514_v26   ;;  %7469 = vset.pattern.permute.xlu1 %v12093_v0 }
  0x44   :  { %173 = vperm.xlu1 %7469, %v36_v27  }
  0x47   :  { %1107 = vperm.xlu0 %7462, %v8524_v28  }
  0x48   :  { %7470 = vset.pattern.permute.xlu1 %v12091_v3 }
  0x49   :  { %1055 = vperm.xlu1 %7470, %v36_v27  }
  0x4b   :  { %1115 = vperm.xlu0 %7462, %v8531_v29  }
  0x4d   :  { %1347 = vperm.xlu1 %7470, %v8536_v30  }
  0x4f   :  { %1123 = vperm.xlu0 %7462, %v8542_v31  }
  0x51   :  { %7471 = vset.pattern.permute.xlu1 %v12093_v0 }
  0x52   :  { %543 = vperm.xlu1 %7471, %v110_v32  }
  0x53   :  { %1131 = vperm.xlu0 %7462, %v8552_v33  }
  0x56   :  { %7472 = vset.pattern.permute.xlu1 %v12091_v3 }
  0x57   :  { %1139 = vperm.xlu0 %7462, %v8559_v34   ;;  %1351 = vperm.xlu1 %7472, %v110_v32  }
  0x5b   :  { %1147 = vperm.xlu0 %7462, %v8566_v35   ;;  %7473 = vset.pattern.permute.xlu1 %v12093_v0 }
  0x5c   :  { %183 = vperm.xlu1 %7473, %v38_v36  }
  0x5f   :  { %1155 = vperm.xlu0 %7462, %v8576_v37  }
  0x60   :  { %7474 = vset.pattern.permute.xlu1 %v12091_v3 }
  0x61   :  { %1063 = vperm.xlu1 %7474, %v38_v36  }
  0x63   :  { %1163 = vperm.xlu0 %7462, %v8583_v38  }
  0x65   :  { %1355 = vperm.xlu1 %7474, %v8588_v39  }
  0x67   :  { %1171 = vperm.xlu0 %7462, %v8594_v40  }
  0x69   :  { %7475 = vset.pattern.permute.xlu1 %v12093_v0 }
  0x6a   :  { %553 = vperm.xlu1 %7475, %v112_v41  }
  0x6b   :  { %1179 = vperm.xlu0 %7462, %v8604_v42  }
  0x6e   :  { %7476 = vset.pattern.permute.xlu1 %v12091_v3 }
  0x6f   :  { %1187 = vperm.xlu0 %7462, %v8611_v43   ;;  %1359 = vperm.xlu1 %7476, %v112_v41  }
  0x73   :  { %1195 = vperm.xlu0 %7462, %v8618_v44   ;;  %7477 = vset.pattern.permute.xlu1 %v12093_v0 }
  0x74   :  { %193 = vperm.xlu1 %7477, %v40_v46  }
  0x77   :  { %1203 = vperm.xlu0 %7462, %v8628_v47  }
  0x78   :  { %7478 = vset.pattern.permute.xlu1 %v12091_v3 }
  0x79   :  { %1071 = vperm.xlu1 %7478, %v40_v46  }
  0x7b   :  { %1211 = vperm.xlu0 %7462, %v8635_v49  }
  0x7d   :  { %v484_v56 = vpop.permute.xlu1 %483  ;;  %1363 = vperm.xlu1 %7478, %v8643_v52   ;;  %v479_v57 = vpop.permute.xlu0 %478 }
  0x7e   :  { %v853_v58 = vmul.f32 %v8646_v54, %v479_v57  ;;  %v854_v1 = vmul.f32 %v8646_v54, %v484_v56 }
  0x7f   :  { %1219 = vperm.xlu0 %7462, %v8651_v55  }
  0x80   :  { %v984_v63 = vadd.f32 %v8664_v61, %v853_v58  ;;  %v985_v10 = vadd.f32 %v8664_v61, %v854_v1 }
  0x81   :  { %7479 = vset.pattern.permute.xlu1 %v12093_v0 }
  0x82   :  { %v1304_v2 = vpop.permute.xlu1 %1303  ;;  %v1300_v4 = vpop.permute.xlu0 %1299  ;;  %563 = vperm.xlu1 %7479, %v114_v60  }
  0x83   :  { %v1613_v5 = vmul.f32 %v8656_v59, %v1300_v4  ;;  %1227 = vperm.xlu0 %7462, %v79_v62   ;;  %v1614_v7 = vmul.f32 %v8656_v59, %v1304_v2 }
  0x85   :  { %v1738_v9 = vadd.f32 %v1613_v5, %v984_v63  ;;  %v1739_v13 = vadd.f32 %v1614_v7, %v985_v10 }
  0x86   :  { %7480 = vset.pattern.permute.xlu1 %v12091_v3  ;;  %v1308_v11 = vpop.permute.xlu0 %1307 }
  0x87   :  { %v489_v12 = vpop.permute.xlu1 %488  ;;  %1235 = vperm.xlu0 %7462, %v81_v8   ;;  %1367 = vperm.xlu1 %7480, %v114_v60   ;;  %7572 = vtanh.f32 %v1738_v9  ;;  %v1615_v15 = vmul.f32 %v8656_v59, %v1308_v11  ;;  %v8701_v60 = vld [vmem:[%s12079_s0 + $0x288] sm:$0xff]  ;;  %v116_v8 = vld [vmem:[%s12079_s0 + $0x290] sm:$0xff] }
  0x88   :  { %v855_v14 = vmul.f32 %v8646_v54, %v489_v12  ;;  %7574 = vtanh.f32 %v1739_v13 }
  0x8a   :  { %v986_v23 = vadd.f32 %v8664_v61, %v855_v14  ;;  %v1312_v27 = vpop.permute.xlu0 %1311 }
  0x8b   :  { %v494_v32 = vpop.permute.xlu1 %493  ;;  %1243 = vperm.xlu0 %7462, %v83_v16   ;;  %7481 = vset.pattern.permute.xlu1 %v12093_v0  ;;  %v1616_v45 = vmul.f32 %v8656_v59, %v1312_v27 }
  0x8c   :  { %v1740_v36 = vadd.f32 %v1615_v15, %v986_v23  ;;  %v856_v41 = vmul.f32 %v8646_v54, %v494_v32  ;;  %203 = vperm.xlu1 %7481, %v42_v18  }
  0x8e   :  { %7576 = vtanh.f32 %v1740_v36  ;;  %v987_v46 = vadd.f32 %v8664_v61, %v856_v41  ;;  %v1316_v48 = vpop.permute.xlu0 %1315 }
  0x8f   :  { %v499_v50 = vpop.permute.xlu1 %498  ;;  %7564 = vset.pattern.permute.xlu0 %v12093_v0  ;;  %v1617_v56 = vmul.f32 %v8656_v59, %v1316_v48 }
  0x90   :  { %v1741_v51 = vadd.f32 %v1616_v45, %v987_v46  ;;  %v857_v53 = vmul.f32 %v8646_v54, %v499_v50  ;;  %528 = vperm.xlu0 %7564, %v8484_v21   ;;  %7482 = vset.pattern.permute.xlu1 %v12091_v3 }
  0x91   :  { %1079 = vperm.xlu1 %7482, %v42_v18  }
  0x92   :  { %7578 = vtanh.f32 %v1741_v51  ;;  %v988_v57 = vadd.f32 %v8664_v61, %v857_v53  ;;  %v1320_v58 = vpop.permute.xlu0 %1319 }
  0x93   :  { %v504_v62 = vpop.permute.xlu1 %503  ;;  %v1618_v2 = vmul.f32 %v8656_v59, %v1320_v58 }
  0x94   :  { %v1742_v63 = vadd.f32 %v1617_v56, %v988_v57  ;;  %v858_v1 = vmul.f32 %v8646_v54, %v504_v62  ;;  %168 = vperm.xlu0 %7564, %v8463_v17   ;;  %v7573_v21 = vpop.eup %7572 }
  0x95   :  { %1371 = vperm.xlu1 %7482, %v8701_v60   ;;  %6498 = vmatmul.mubr.msk.f32.vlgmr.msra.gmra.mxu1 %vm1936_vm1, %v7573_v21  ;;  %v7575_v11 = vpop.eup %7574 }
  0x96   :  { %7580 = vtanh.f32 %v1742_v63  ;;  %v989_v4 = vadd.f32 %v8664_v61, %v858_v1  ;;  %v1324_v5 = vpop.permute.xlu0 %1323  ;;  %6500 = vmatprep.mubr.msk.f32.mxu1 %vm8348_vm0, %v12089_v6 }
  0x97   :  { %v509_v7 = vpop.permute.xlu1 %508  ;;  %v1619_v10 = vmul.f32 %v8656_v59, %v1324_v5 }
  0x98   :  { %v1743_v9 = vadd.f32 %v1618_v2, %v989_v4  ;;  %v859_v17 = vmul.f32 %v8646_v54, %v509_v7  ;;  %538 = vperm.xlu0 %7564, %v8536_v30   ;;  %v117_v4 = vld [vmem:[%s12079_s0 + $0x298] sm:$0xff] }
  0x99   :  { %7483 = vset.pattern.permute.xlu1 %v12093_v0  ;;  %6501 = vmatmul.mubr.msk.f32.gmra.mxu1 %vm1936_vm1, %v7575_v11  ;;  %v118_v11 = vld [vmem:[%s12079_s0 + $0x2a0] sm:$0xff] }
  0x9a   :  { %7582 = vtanh.f32 %v1743_v9  ;;  %v990_v12 = vadd.f32 %v8664_v61, %v859_v17  ;;  %573 = vperm.xlu1 %7483, %v116_v8   ;;  %v1328_v13 = vpop.permute.xlu0 %1327  ;;  %6503 = vmatprep.mubr.msk.f32.mxu1 %vm8348_vm0, %v12089_v6 }
  0x9b   :  { %v7577_v14 = vpop.eup %7576  ;;  %v514_v15 = vpop.permute.xlu1 %513  ;;  %v1620_v30 = vmul.f32 %v8656_v59, %v1328_v13 }
  0x9c   :  { %v1744_v16 = vadd.f32 %v1619_v10, %v990_v12  ;;  %v860_v18 = vmul.f32 %v8646_v54, %v514_v15  ;;  %178 = vperm.xlu0 %7564, %v8472_v19   ;;  %v44_v19 = vld [vmem:[%s12079_s0 + $0x50] sm:$0xff] }
  0x9d   :  { %6504 = vmatmul.mubr.msk.f32.gmra.mxu1 %vm1936_vm1, %v7577_v14 }
  0x9e   :  { %7584 = vtanh.f32 %v1744_v16  ;;  %v991_v23 = vadd.f32 %v8664_v61, %v860_v18  ;;  %7484 = vset.pattern.permute.xlu1 %v12091_v3  ;;  %v1332_v27 = vpop.permute.xlu0 %1331  ;;  %6506 = vmatprep.mubr.msk.f32.mxu1 %vm8348_vm0, %v12089_v6  ;;  %v46_v16 = vld [vmem:[%s12079_s0 + $0x60] sm:$0xff] }
  0x9f   :  { %v7579_v32 = vpop.eup %7578  ;;  %v519_v36 = vpop.permute.xlu1 %518  ;;  %1375 = vperm.xlu1 %7484, %v116_v8   ;;  %v1621_v46 = vmul.f32 %v8656_v59, %v1332_v27 }
  0xa0   :  { %v1745_v41 = vadd.f32 %v1620_v30, %v991_v23  ;;  %v861_v45 = vmul.f32 %v8646_v54, %v519_v36  ;;  %548 = vperm.xlu0 %7564, %v8588_v39   ;;  %v119_v30 = vld [vmem:[%s12079_s0 + $0x2a8] sm:$0xff] }
  0xa1   :  { %6507 = vmatmul.mubr.msk.f32.gmra.mxu1 %vm1936_vm1, %v7579_v32 }
  0xa2   :  { %7586 = vtanh.f32 %v1745_v41  ;;  %v992_v48 = vadd.f32 %v8664_v61, %v861_v45  ;;  %v1336_v50 = vpop.permute.xlu0 %1335  ;;  %6509 = vmatprep.mubr.msk.f32.mxu1 %vm8348_vm0, %v12089_v6  ;;  %v121_v41 = vld [vmem:[%s12079_s0 + $0x2b8] sm:$0xff] }
  0xa3   :  { %v7581_v51 = vpop.eup %7580  ;;  %v524_v53 = vpop.permute.xlu1 %523  ;;  %7485 = vset.pattern.permute.xlu1 %v12093_v0  ;;  %v1622_v57 = vmul.f32 %v8656_v59, %v1336_v50  ;;  %v123_v50 = vld [vmem:[%s12079_s0 + $0x2c8] sm:$0xff] }
  0xa4   :  { %v1746_v56 = vadd.f32 %v1621_v46, %v992_v48  ;;  %v862_v39 = vmul.f32 %v8646_v54, %v524_v53  ;;  %188 = vperm.xlu0 %7564, %v8479_v20   ;;  %213 = vperm.xlu1 %7485, %v44_v19   ;;  %v120_v46 = vld [vmem:[%s12079_s0 + $0x2b0] sm:$0xff] }
  0xa5   :  { %6510 = vmatmul.mubr.msk.f32.gmra.mxu1 %vm1936_vm1, %v7581_v51  ;;  %v48_v53 = vld [vmem:[%s12079_s0 + $0x70] sm:$0xff] }
  0xa6   :  { %7588 = vtanh.f32 %v1746_v56  ;;  %v993_v58 = vadd.f32 %v8664_v61, %v862_v39  ;;  %v8746_v62 = vpop.permute.xlu0 %1051  ;;  %6512 = vmatprep.mubr.msk.f32.mxu1 %vm8348_vm0, %v12089_v6 }
  0xa7   :  { %v7583_v63 = vpop.eup %7582  ;;  %v164_v1 = vpop.permute.xlu1 %163 }
  0xa8   :  { %v1747_v2 = vadd.f32 %v1622_v57, %v993_v58  ;;  %558 = vperm.xlu0 %7564, %v8643_v52   ;;  %7486 = vset.pattern.permute.xlu1 %v12091_v3  ;;  %v790_v20 = vmul.f32 %v8646_v54, %v164_v1  ;;  %v8868_v1 = vld [vmem:[%s12079_s0 + $0x2e8] sm:$0xff] }
  0xa9   :  { %1087 = vperm.xlu1 %7486, %v44_v19   ;;  %6513 = vmatmul.mubr.msk.f32.gmra.mxu1 %vm1936_vm1, %v7583_v63 }
  0xaa   :  { %7590 = vtanh.f32 %v1747_v2  ;;  %v8754_v21 = vpop.permute.xlu0 %1059  ;;  %6515 = vmatprep.mubr.msk.f32.mxu1 %vm8348_vm0, %v12089_v6  ;;  %v921_v7 = vadd.f32 %v8664_v61, %v790_v20  ;;  %v122_v20 = vld [vmem:[%s12079_s0 + $0x2c0] sm:$0xff] }
  0xab   :  { %v7585_v5 = vpop.eup %7584 }
  0xac   :  { %198 = vperm.xlu0 %7564, %v8490_v22   ;;  %v1048_v52 = vpop.permute.xlu1 %1047 }
  0xad   :  { %v1550_v8 = vmul.f32 %v8656_v59, %v1048_v52  ;;  %1379 = vperm.xlu1 %7486, %v117_v4   ;;  %6516 = vmatmul.mubr.msk.f32.gmra.mxu1 %vm1936_vm1, %v7585_v5  ;;  %v8887_v52 = vld [vmem:[%s12079_s0 + $0x2f8] sm:$0xff] }
  0xae   :  { %v8765_v9 = vpop.permute.xlu0 %1067  ;;  %6518 = vmatprep.mubr.msk.f32.mxu1 %vm8348_vm0, %v12089_v6 }
  0xaf   :  { %v7587_v17 = vpop.eup %7586  ;;  %v1675_v10 = vadd.f32 %v1550_v8, %v921_v7  ;;  %v50_v8 = vld [vmem:[%s12079_s0 + $0x80] sm:$0xff] }
  0xb0   :  { %568 = vperm.xlu0 %7564, %v8701_v60   ;;  %v8773_v22 = vpop.permute.xlu1 %1339 }
  0xb1   :  { %7592 = vtanh.f32 %v1675_v10  ;;  %7487 = vset.pattern.permute.xlu1 %v12093_v0  ;;  %6519 = vmatmul.mubr.msk.f32.gmra.mxu1 %vm1936_vm1, %v7587_v17  ;;  %v8905_v10 = vld [vmem:[%s12079_s0 + $0x308] sm:$0xff] }
  0xb2   :  { %583 = vperm.xlu1 %7487, %v118_v11   ;;  %v8777_v12 = vpop.permute.xlu0 %1075  ;;  %6521 = vmatprep.mubr.msk.f32.mxu1 %vm8348_vm0, %v12089_v6 }
  0xb3   :  { %v7589_v13 = vpop.eup %7588 }
  0xb4   :  { %208 = vperm.xlu0 %7564, %v8500_v24  }
  0xb5   :  { %v8782_v14 = vpop.permute.xlu1 %533  ;;  %6522 = vmatmul.mubr.msk.f32.gmra.mxu1 %vm1936_vm1, %v7589_v13 }
  0xb6   :  { %7488 = vset.pattern.permute.xlu1 %v12091_v3  ;;  %v8786_v60 = vpop.permute.xlu0 %1083  ;;  %6524 = vmatprep.mubr.msk.f32.mxu1 %vm8348_vm0, %v12089_v6 }
  0xb7   :  { %v7591_v15 = vpop.eup %7590  ;;  %1383 = vperm.xlu1 %7488, %v118_v11  }
  0xb8   :  { %578 = vperm.xlu0 %7564, %v117_v4  }
  0xb9   :  { %6525 = vmatmul.mubr.msk.f32.gmra.mxu1 %vm1936_vm1, %v7591_v15 }
  0xba   :  { %v8794_v24 = vpop.permute.xlu1 %1343  ;;  %v8796_v18 = vpop.permute.xlu0 %1091  ;;  %6527 = vmatprep.mubr.msk.f32.mxu1 %vm8348_vm0, %v12089_v6 }
  0xbb   :  { %7489 = vset.pattern.permute.xlu1 %v12093_v0 }
  0xbc   :  { %218 = vperm.xlu0 %7564, %v8507_v25   ;;  %223 = vperm.xlu1 %7489, %v46_v16  }
  0xbe   :  { %v7593_v23 = vpop.eup %7592  ;;  %v8805_v27 = vpop.permute.xlu0 %1099 }
  0xbf   :  { %6309 = vmatmul.mubr.msk.f32.vlgmr.msra.gmra.mxu0 %vm1936_vm1, %v7593_v23  ;;  %v8808_v32 = vpop.permute.xlu1 %173  ;;  %v124_v23 = vld [vmem:[%s12079_s0 + $0x2d0] sm:$0xff] }
  0xc0   :  { %588 = vperm.xlu0 %7564, %v119_v30   ;;  %7490 = vset.pattern.permute.xlu1 %v12091_v3 }
  0xc1   :  { %1095 = vperm.xlu1 %7490, %v46_v16   ;;  %6311 = vmatprep.mubr.msk.f32.mxu0 %vm8348_vm0, %v12089_v6  ;;  %v8921_v16 = vld [vmem:[%s12079_s0 + $0x318] sm:$0xff] }
  0xc2   :  { %v8813_v25 = vpop.permute.xlu0 %1107  ;;  %v8958_v6 = vld [vmem:[%s12079_s0 + $0x338] sm:$0xff] }
  0xc4   :  { %228 = vperm.xlu0 %7564, %v8514_v26   ;;  %v8816_v36 = vpop.permute.xlu1 %1055 }
  0xc5   :  { %1387 = vperm.xlu1 %7490, %v119_v30  }
  0xc6   :  { %v8821_v45 = vpop.permute.xlu0 %1115 }
  0xc8   :  { %598 = vperm.xlu0 %7564, %v121_v41   ;;  %v8826_v19 = vpop.permute.xlu1 %1347 }
  0xc9   :  { %7491 = vset.pattern.permute.xlu1 %v12093_v0 }
  0xca   :  { %593 = vperm.xlu1 %7491, %v120_v46   ;;  %v8829_v26 = vpop.permute.xlu0 %1123 }
  0xcc   :  { %238 = vperm.xlu0 %7564, %v8524_v28   ;;  %v8852_v28 = vld [vmem:[%s12079_s0 + $0x2d8] sm:$0xff] }
  0xcd   :  { %v8832_v48 = vpop.permute.xlu1 %543 }
  0xce   :  { %7492 = vset.pattern.permute.xlu1 %v12091_v3  ;;  %v8838_v51 = vpop.permute.xlu0 %1131 }
  0xcf   :  { %1391 = vperm.xlu1 %7492, %v120_v46  }
  0xd0   :  { %608 = vperm.xlu0 %7564, %v123_v50  }
  0xd2   :  { %v8843_v56 = vpop.permute.xlu1 %1351  ;;  %v8845_v39 = vpop.permute.xlu0 %1139 }
  0xd3   :  { %7493 = vset.pattern.permute.xlu1 %v12093_v0 }
  0xd4   :  { %248 = vperm.xlu0 %7564, %v8531_v29   ;;  %233 = vperm.xlu1 %7493, %v48_v53  }
  0xd6   :  { %v8854_v57 = vpop.permute.xlu0 %1147 }
  0xd7   :  { %v8856_v58 = vpop.permute.xlu1 %183 }
  0xd8   :  { %618 = vperm.xlu0 %7564, %v8852_v28   ;;  %7494 = vset.pattern.permute.xlu1 %v12091_v3 }
  0xd9   :  { %1103 = vperm.xlu1 %7494, %v48_v53  }
  0xda   :  { %v8860_v63 = vpop.permute.xlu0 %1155 }
  0xdc   :  { %258 = vperm.xlu0 %7564, %v8542_v31   ;;  %v8863_v29 = vpop.permute.xlu1 %1063 }
  0xdd   :  { %1395 = vperm.xlu1 %7494, %v121_v41  }
  0xde   :  { %v8870_v2 = vpop.permute.xlu0 %1163 }
  0xe0   :  { %628 = vperm.xlu0 %7564, %v8868_v1   ;;  %v8876_v4 = vpop.permute.xlu1 %1355 }
  0xe1   :  { %7495 = vset.pattern.permute.xlu1 %v12093_v0 }
  0xe2   :  { %603 = vperm.xlu1 %7495, %v122_v20   ;;  %v8879_v31 = vpop.permute.xlu0 %1171 }
  0xe3   :  { %12095 = vst [vmem:[#allocation3_spill] sm:$0xff] %v8879_v31 }
  0xe4   :  { %268 = vperm.xlu0 %7564, %v8552_v33  }
  0xe5   :  { %v8882_v5 = vpop.permute.xlu1 %553 }
  0xe6   :  { %7496 = vset.pattern.permute.xlu1 %v12091_v3  ;;  %v8890_v7 = vpop.permute.xlu0 %1179 }
  0xe7   :  { %12096 = vst [vmem:[#allocation4_spill] sm:$0xff] %v8890_v7  ;;  %1399 = vperm.xlu1 %7496, %v122_v20   ;;  %v52_v20 = vld [vmem:[%s12079_s0 + $0x90] sm:$0xff] }
  0xe8   :  { %638 = vperm.xlu0 %7564, %v8887_v52  }
  0xea   :  { %v8896_v17 = vpop.permute.xlu1 %1359  ;;  %v8898_v33 = vpop.permute.xlu0 %1187 }
  0xeb   :  { %12097 = vst [vmem:[#allocation5_spill] sm:$0xff] %v8898_v33  ;;  %7497 = vset.pattern.permute.xlu1 %v12093_v0 }
  0xec   :  { %278 = vperm.xlu0 %7564, %v8559_v34   ;;  %243 = vperm.xlu1 %7497, %v50_v8  }
  0xee   :  { %v8907_v11 = vpop.permute.xlu0 %1195 }
  0xef   :  { %12098 = vst [vmem:[#allocation6_spill] sm:$0xff] %v8907_v11  ;;  %v8909_v13 = vpop.permute.xlu1 %193 }
  0xf0   :  { %648 = vperm.xlu0 %7564, %v8905_v10   ;;  %7498 = vset.pattern.permute.xlu1 %v12091_v3 }
  0xf1   :  { %1111 = vperm.xlu1 %7498, %v50_v8  }
  0xf2   :  { %v8913_v15 = vpop.permute.xlu0 %1203 }
  0xf3   :  { %12099 = vst [vmem:[#allocation7_spill] sm:$0xff] %v8913_v15 }
  0xf4   :  { %288 = vperm.xlu0 %7564, %v8566_v35   ;;  %v8916_v34 = vpop.permute.xlu1 %1071 }
  0xf5   :  { %1403 = vperm.xlu1 %7498, %v123_v50   ;;  %v8940_v50 = vld [vmem:[%s12079_s0 + $0x328] sm:$0xff] }
  0xf6   :  { %v8923_v30 = vpop.permute.xlu0 %1211 }
  0xf7   :  { %12100 = vst [vmem:[#allocation8_spill] sm:$0xff] %v8923_v30  ;;  %v1623_v30 = vmul.f32 %v8656_v59, %v8773_v22 }
  0xf8   :  { %658 = vperm.xlu0 %7564, %v8921_v16   ;;  %v8929_v41 = vpop.permute.xlu1 %1363 }
  0xf9   :  { %7499 = vset.pattern.permute.xlu1 %v12093_v0 }
  0xfa   :  { %613 = vperm.xlu1 %7499, %v124_v23   ;;  %v8932_v35 = vpop.permute.xlu0 %1219 }
  0xfb   :  { %12101 = vst [vmem:[#allocation9_spill] sm:$0xff] %v8932_v35  ;;  %v864_v35 = vmul.f32 %v8646_v54, %v8782_v14  ;;  %v126_v14 = vld [vmem:[%s12079_s0 + $0x2e0] sm:$0xff] }
  0xfc   :  { %298 = vperm.xlu0 %7564, %v8576_v37  }
  0xfd   :  { %v8935_v46 = vpop.permute.xlu1 %563 }
  0xfe   :  { %7500 = vset.pattern.permute.xlu1 %v12091_v3  ;;  %v8943_v53 = vpop.permute.xlu0 %1227 }
  0xff   :  { %12102 = vst [vmem:[#allocation10_spill] sm:$0xff] %v8943_v53  ;;  %1407 = vperm.xlu1 %7500, %v124_v23   ;;  %v12105_v53 = vmov 1  }
 0x100   :  { %668 = vperm.xlu0 %7564, %v8940_v50  }
 0x102   :  { %v8949_v8 = vpop.permute.xlu1 %1367  ;;  %v8951_v37 = vpop.permute.xlu0 %1235 }
 0x103   :  { %12103 = vst [vmem:[#allocation11_spill] sm:$0xff] %v8951_v37  ;;  %7501 = vset.pattern.permute.xlu1 %v12093_v0 }
 0x104   :  { %308 = vperm.xlu0 %7564, %v8583_v38   ;;  %253 = vperm.xlu1 %7501, %v52_v20  }
 0x106   :  { %v8960_v23 = vpop.permute.xlu0 %1243 }
 0x107   :  { %12104 = vst [vmem:[#allocation12_spill] sm:$0xff] %v8960_v23  ;;  %v8962_v3 = vpop.permute.xlu1 %203  ;;  %v139_v23 = vld [vmem:[%s12079_s0 + $0x348] sm:$0xff] }
 0x108   :  { %678 = vperm.xlu0 %7564, %v8958_v6   ;;  %7502 = vset.pattern.permute.xlu1 %v12105_v53 }
 0x109   :  { %1119 = vperm.xlu1 %7502, %v52_v20  }
 0x10b   :  { %v529_v37 = vpop.permute.xlu0 %528 }
 0x10c   :  { %v863_v0 = vmul.f32 %v8646_v54, %v529_v37  ;;  %318 = vperm.xlu0 %7564, %v8594_v40   ;;  %v8968_v38 = vpop.permute.xlu1 %1079  ;;  %v1624_v37 = vmul.f32 %v8656_v59, %v8794_v24  ;;  %v792_v40 = vmul.f32 %v8646_v54, %v8808_v32  ;;  %v1552_v24 = vmul.f32 %v8656_v59, %v8816_v36 }
 0x10d   :  { %1411 = vperm.xlu1 %7502, %v8852_v28   ;;  %v1551_v28 = vmul.f32 %v8656_v59, %v8746_v62  ;;  %v12106_v32 = vmov 0  }
 0x10e   :  { %v994_v20 = vadd.f32 %v8664_v61, %v863_v0  ;;  %v995_v0 = vadd.f32 %v8664_v61, %v864_v35  ;;  %v923_v62 = vadd.f32 %v8664_v61, %v792_v40  ;;  %v866_v35 = vmul.f32 %v8646_v54, %v8832_v48 }
 0x10f   :  { %v169_v15 = vpop.permute.xlu0 %168  ;;  %v794_v48 = vmul.f32 %v8646_v54, %v8856_v58  ;;  %v1553_v40 = vmul.f32 %v8656_v59, %v8754_v21 }
 0x110   :  { %v1748_v11 = vadd.f32 %v1623_v30, %v994_v20  ;;  %v791_v33 = vmul.f32 %v8646_v54, %v169_v15  ;;  %688 = vperm.xlu0 %7564, %v139_v23   ;;  %v8989_v22 = vpop.permute.xlu1 %1371  ;;  %v1749_v31 = vadd.f32 %v1624_v37, %v995_v0  ;;  %v1677_v23 = vadd.f32 %v1552_v24, %v923_v62 }
 0x111   :  { %7503 = vset.pattern.permute.xlu1 %v12106_v32  ;;  %v997_v0 = vadd.f32 %v8664_v61, %v866_v35  ;;  %v925_v24 = vadd.f32 %v8664_v61, %v794_v48  ;;  %v1627_v35 = vmul.f32 %v8656_v59, %v8876_v4 }
 0x112   :  { %7594 = vtanh.f32 %v1748_v11  ;;  %v922_v7 = vadd.f32 %v8664_v61, %v791_v33  ;;  %623 = vperm.xlu1 %7503, %v126_v14   ;;  %v141_v33 = vld [vmem:[%s12079_s0 + $0x358] sm:$0xff]  ;;  %v1625_v11 = vmul.f32 %v8656_v59, %v8826_v19 }
 0x113   :  { %v539_v30 = vpop.permute.xlu0 %538 }
 0x114   :  { %v1676_v20 = vadd.f32 %v1551_v28, %v922_v7  ;;  %v865_v15 = vmul.f32 %v8646_v54, %v539_v30  ;;  %328 = vperm.xlu0 %7564, %v8604_v42   ;;  %v1626_v42 = vmul.f32 %v8656_v59, %v8843_v56  ;;  %v54_v56 = vld [vmem:[%s12079_s0 + $0xa0] sm:$0xff] }
 0x115   :  { %v9001_v36 = vpop.permute.xlu1 %573 }
 0x116   :  { %7596 = vtanh.f32 %v1676_v20  ;;  %v996_v7 = vadd.f32 %v8664_v61, %v865_v15  ;;  %7504 = vset.pattern.permute.xlu1 %v12105_v53  ;;  %v1751_v21 = vadd.f32 %v1626_v42, %v997_v0  ;;  %v868_v15 = vmul.f32 %v8646_v54, %v8882_v5 }
 0x117   :  { %7598 = vtanh.f32 %v1749_v31  ;;  %v179_v37 = vpop.permute.xlu0 %178  ;;  %1415 = vperm.xlu1 %7504, %v126_v14   ;;  %v1554_v31 = vmul.f32 %v8656_v59, %v8863_v29  ;;  %v1555_v5 = vmul.f32 %v8656_v59, %v8765_v9  ;;  %v1556_v0 = vmul.f32 %v8656_v59, %v8916_v34  ;;  %v145_v34 = vld [vmem:[%s12079_s0 + $0x378] sm:$0xff] }
 0x118   :  { %v1750_v28 = vadd.f32 %v1625_v11, %v996_v7  ;;  %v793_v19 = vmul.f32 %v8646_v54, %v179_v37  ;;  %698 = vperm.xlu0 %7564, %v141_v33   ;;  %7600 = vtanh.f32 %v1677_v23  ;;  %v143_v23 = vld [vmem:[%s12079_s0 + $0x368] sm:$0xff]  ;;  %v999_v4 = vadd.f32 %v8664_v61, %v868_v15 }
 0x119   :  { %v1679_v29 = vadd.f32 %v1554_v31, %v925_v24 }
 0x11a   :  { %7602 = vtanh.f32 %v1750_v28  ;;  %v924_v58 = vadd.f32 %v8664_v61, %v793_v19  ;;  %v9024_v14 = vpop.permute.xlu1 %1375  ;;  %v12107_v28 = vmov 0.0  }
 0x11b   :  { %v549_v62 = vpop.permute.xlu0 %548  ;;  %7505 = vset.pattern.permute.xlu1 %v12106_v32 }
 0x11c   :  { %v1678_v30 = vadd.f32 %v1553_v40, %v924_v58  ;;  %v867_v20 = vmul.f32 %v8646_v54, %v549_v62  ;;  %338 = vperm.xlu0 %7564, %v8611_v43   ;;  %263 = vperm.xlu1 %7505, %v54_v56   ;;  %v1628_v43 = vmul.f32 %v8656_v59, %v8896_v17 }
 0x11d   :  { %v796_v40 = vmul.f32 %v8646_v54, %v8909_v13  ;;  %v870_v62 = vmul.f32 %v8646_v54, %v8935_v46 }
 0x11e   :  { %7604 = vtanh.f32 %v1678_v30  ;;  %v998_v33 = vadd.f32 %v8664_v61, %v867_v20  ;;  %v1753_v19 = vadd.f32 %v1628_v43, %v999_v4 }
 0x11f   :  { %v7595_v11 = vpop.eup %7594  ;;  %7606 = vtanh.f32 %v1751_v21  ;;  %v189_v7 = vpop.permute.xlu0 %188  ;;  %v1001_v43 = vadd.f32 %v8664_v61, %v870_v62 }
 0x120   :  { %v9040_v42 = vpop.permute.xlu1 %213  ;;  %v1752_v48 = vadd.f32 %v1627_v35, %v998_v33  ;;  %v795_v37 = vmul.f32 %v8646_v54, %v189_v7  ;;  %708 = vperm.xlu0 %7564, %v143_v23   ;;  %7506 = vset.pattern.permute.xlu1 %v12105_v53  ;;  %7608 = vtanh.f32 %v1679_v29  ;;  %v1630_v29 = vmul.f32 %v8656_v59, %v8949_v8 }
 0x121   :  { %6528 = vmatmul.mubr.msk.f32.gmra.mxu1 %vm1936_vm1, %v7595_v11  ;;  %1127 = vperm.xlu1 %7506, %v54_v56   ;;  %v927_v56 = vadd.f32 %v8664_v61, %v796_v40  ;;  %v1557_v23 = vmul.f32 %v8656_v59, %v8777_v12  ;;  %v798_v8 = vmul.f32 %v8646_v54, %v8962_v3 }
 0x122   :  { %7610 = vtanh.f32 %v1752_v48  ;;  %v926_v17 = vadd.f32 %v8664_v61, %v795_v37  ;;  %6530 = vmatprep.mubr.msk.f32.mxu1 %vm8348_vm0, %v12107_v28  ;;  %v1558_v48 = vmul.f32 %v8656_v59, %v8968_v38 }
 0x123   :  { %v7597_v9 = vpop.eup %7596  ;;  %v559_v31 = vpop.permute.xlu0 %558 }
 0x124   :  { %v7599_v58 = vpop.eup %7598  ;;  %v1680_v21 = vadd.f32 %v1555_v5, %v926_v17  ;;  %v869_v24 = vmul.f32 %v8646_v54, %v559_v31  ;;  %348 = vperm.xlu0 %7564, %v8618_v44   ;;  %6312 = vmatmul.mubr.msk.f32.gmra.mxu0 %vm1936_vm1, %v7597_v9  ;;  %v9058_v13 = vpop.permute.xlu1 %1087  ;;  %v1629_v44 = vmul.f32 %v8656_v59, %v8929_v41  ;;  %v128_v41 = vld [vmem:[%s12079_s0 + $0x2f0] sm:$0xff] }
 0x125   :  { %6531 = vmatmul.mubr.msk.f32.gmra.mxu1 %vm1936_vm1, %v7599_v58  ;;  %1419 = vperm.xlu1 %7506, %v8868_v1   ;;  %v7601_v30 = vpop.eup %7600  ;;  %v1681_v1 = vadd.f32 %v1556_v0, %v927_v56  ;;  %v1755_v5 = vadd.f32 %v1630_v29, %v1001_v43  ;;  %v929_v17 = vadd.f32 %v8664_v61, %v798_v8 }
 0x126   :  { %7612 = vtanh.f32 %v1680_v21  ;;  %v1000_v20 = vadd.f32 %v8664_v61, %v869_v24  ;;  %6314 = vmatprep.mubr.msk.f32.mxu0 %vm8348_vm0, %v12107_v28  ;;  %6533 = vmatprep.mubr.msk.f32.mxu1 %vm8348_vm0, %v12107_v28  ;;  %v872_v9 = vmul.f32 %v8646_v54, %v9001_v36  ;;  %v1632_v21 = vmul.f32 %v8656_v59, %v9024_v14 }
 0x127   :  { %v7603_v46 = vpop.eup %7602  ;;  %7614 = vtanh.f32 %v1753_v19  ;;  %v199_v15 = vpop.permute.xlu0 %198  ;;  %v147_v19 = vld [vmem:[%s12079_s0 + $0x388] sm:$0xff]  ;;  %v1683_v58 = vadd.f32 %v1558_v48, %v929_v17  ;;  %v1559_v56 = vmul.f32 %v8656_v59, %v8786_v60  ;;  %v56_v60 = vld [vmem:[%s12079_s0 + $0xb0] sm:$0xff]  ;;  %v1561_v8 = vmul.f32 %v8656_v59, %v8796_v18 }
 0x128   :  { %v1754_v35 = vadd.f32 %v1629_v44, %v1000_v20  ;;  %v797_v33 = vmul.f32 %v8646_v54, %v199_v15  ;;  %718 = vperm.xlu0 %7564, %v145_v34   ;;  %6315 = vmatmul.mubr.msk.f32.gmra.mxu0 %vm1936_vm1, %v7601_v30  ;;  %v9084_v11 = vpop.permute.xlu1 %1379  ;;  %v1003_v34 = vadd.f32 %v8664_v61, %v872_v9 }
 0x129   :  { %6534 = vmatmul.mubr.msk.f32.gmra.mxu1 %vm1936_vm1, %v7603_v46  ;;  %7507 = vset.pattern.permute.xlu1 %v12106_v32  ;;  %v800_v30 = vmul.f32 %v8646_v54, %v9040_v42  ;;  %v1560_v42 = vmul.f32 %v8656_v59, %v9058_v13  ;;  %v149_v13 = vld [vmem:[%s12079_s0 + $0x398] sm:$0xff] }
 0x12a   :  { %7616 = vtanh.f32 %v1754_v35  ;;  %v928_v12 = vadd.f32 %v8664_v61, %v797_v33  ;;  %633 = vperm.xlu1 %7507, %v128_v41   ;;  %6317 = vmatprep.mubr.msk.f32.mxu0 %vm8348_vm0, %v12107_v28  ;;  %v1757_v46 = vadd.f32 %v1632_v21, %v1003_v34  ;;  %v1633_v35 = vmul.f32 %v8656_v59, %v9084_v11  ;;  %v151_v21 = vld [vmem:[%s12079_s0 + $0x3a8] sm:$0xff] }
 0x12b   :  { %v7605_v7 = vpop.eup %7604  ;;  %7618 = vtanh.f32 %v1681_v1  ;;  %v569_v37 = vpop.permute.xlu0 %568  ;;  %6536 = vmatprep.mubr.msk.f32.mxu1 %vm8348_vm0, %v12107_v28  ;;  %v1563_v34 = vmul.f32 %v8656_v59, %v8805_v27  ;;  %v9194_v27 = vld [vmem:[%s12082_s2] ss:$0 sm:$0xff] }
 0x12c   :  { %v7607_v3 = vpop.eup %7606  ;;  %v1682_v4 = vadd.f32 %v1557_v23, %v928_v12  ;;  %v871_v40 = vmul.f32 %v8646_v54, %v569_v37  ;;  %358 = vperm.xlu0 %7564, %v8628_v47   ;;  %6318 = vmatmul.mubr.msk.f32.gmra.mxu0 %vm1936_vm1, %v7605_v7  ;;  %v1631_v47 = vmul.f32 %v8656_v59, %v8989_v22 }
 0x12d   :  { %6537 = vmatmul.mubr.msk.f32.gmra.mxu1 %vm1936_vm1, %v7607_v3  ;;  %v584_v38 = vpop.permute.xlu1 %583  ;;  %6320 = vmatprep.mubr.msk.f32.mxu0 %vm8348_vm0, %v12107_v28  ;;  %v7609_v0 = vpop.eup %7608  ;;  %v931_v23 = vadd.f32 %v8664_v61, %v800_v30 }
 0x12e   :  { %7620 = vtanh.f32 %v1682_v4  ;;  %v1002_v31 = vadd.f32 %v8664_v61, %v871_v40  ;;  %7508 = vset.pattern.permute.xlu1 %v12105_v53  ;;  %6539 = vmatprep.mubr.msk.f32.mxu1 %vm8348_vm0, %v12107_v28  ;;  %v874_v33 = vmul.f32 %v8646_v54, %v584_v38 }
 0x12f   :  { %v7611_v36 = vpop.eup %7610  ;;  %7622 = vtanh.f32 %v1755_v5  ;;  %v209_v24 = vpop.permute.xlu0 %208  ;;  %1423 = vperm.xlu1 %7508, %v128_v41   ;;  %v1685_v12 = vadd.f32 %v1560_v42, %v931_v23 }
 0x130   :  { %v1756_v22 = vadd.f32 %v1631_v47, %v1002_v31  ;;  %v799_v62 = vmul.f32 %v8646_v54, %v209_v24  ;;  %728 = vperm.xlu0 %7564, %v147_v19   ;;  %6321 = vmatmul.mubr.msk.f32.gmra.mxu0 %vm1936_vm1, %v7609_v0  ;;  %v1005_v18 = vadd.f32 %v8664_v61, %v874_v33 }
 0x131   :  { %6540 = vmatmul.mubr.msk.f32.gmra.mxu1 %vm1936_vm1, %v7611_v36  ;;  %6323 = vmatprep.mubr.msk.f32.mxu0 %vm8348_vm0, %v12107_v28 }
 0x132   :  { %7624 = vtanh.f32 %v1756_v22  ;;  %v930_v14 = vadd.f32 %v8664_v61, %v799_v62  ;;  %v1384_v44 = vpop.permute.xlu1 %1383  ;;  %6542 = vmatprep.mubr.msk.f32.mxu1 %vm8348_vm0, %v12107_v28 }
 0x133   :  { %v7613_v20 = vpop.eup %7612  ;;  %7626 = vtanh.f32 %v1683_v58  ;;  %v579_v1 = vpop.permute.xlu0 %578  ;;  %7509 = vset.pattern.permute.xlu1 %v12106_v32  ;;  %v1634_v48 = vmul.f32 %v8656_v59, %v1384_v44 }
 0x134   :  { %v7615_v29 = vpop.eup %7614  ;;  %v1684_v15 = vadd.f32 %v1559_v56, %v930_v14  ;;  %v873_v41 = vmul.f32 %v8646_v54, %v579_v1  ;;  %368 = vperm.xlu0 %7564, %v8635_v49   ;;  %273 = vperm.xlu1 %7509, %v56_v60   ;;  %v8323_v1 = vld [vmem:[%s12079_s0 + $0x168] sm:$0xff] }
 0x135   :  { %6324 = vmatmul.mubr.msk.f32.gmra.mxu0 %vm1936_vm1, %v7613_v20  ;;  %6543 = vmatmul.mubr.msk.f32.gmra.mxu1 %vm1936_vm1, %v7615_v29  ;;  %v1759_v19 = vadd.f32 %v1634_v48, %v1005_v18  ;;  %v155_v48 = vld [vmem:[%s12079_s0 + $0x3c8] sm:$0xff] }
 0x136   :  { %7628 = vtanh.f32 %v1684_v15  ;;  %v1004_v43 = vadd.f32 %v8664_v61, %v873_v41  ;;  %6326 = vmatprep.mubr.msk.f32.mxu0 %vm8348_vm0, %v12107_v28  ;;  %6545 = vmatprep.mubr.msk.f32.mxu1 %vm8348_vm0, %v12107_v28  ;;  %v153_v15 = vld [vmem:[%s12079_s0 + $0x3b8] sm:$0xff] }
 0x137   :  { %v7617_v49 = vpop.eup %7616  ;;  %7630 = vtanh.f32 %v1757_v46  ;;  %v219_v7 = vpop.permute.xlu0 %218 }
 0x138   :  { %v224_v5 = vpop.permute.xlu1 %223  ;;  %v7619_v11 = vpop.eup %7618  ;;  %v1758_v37 = vadd.f32 %v1633_v35, %v1004_v43  ;;  %v801_v3 = vmul.f32 %v8646_v54, %v219_v7  ;;  %738 = vperm.xlu0 %7564, %v149_v13   ;;  %7510 = vset.pattern.permute.xlu1 %v12105_v53  ;;  %v58_v43 = vld [vmem:[%s12079_s0 + $0xc0] sm:$0xff]  ;;  %v8324_v7 = vld [vmem:[%s12079_s0 + $0x178] sm:$0xff] }
 0x139   :  { %v802_v4 = vmul.f32 %v8646_v54, %v224_v5  ;;  %6327 = vmatmul.mubr.msk.f32.gmra.mxu0 %vm1936_vm1, %v7619_v11  ;;  %6546 = vmatmul.mubr.msk.f32.gmra.mxu1 %vm1936_vm1, %v7617_v49 }
 0x13a   :  { %7632 = vtanh.f32 %v1758_v37  ;;  %v932_v40 = vadd.f32 %v8664_v61, %v801_v3  ;;  %1135 = vperm.xlu1 %7510, %v56_v60   ;;  %6329 = vmatprep.mubr.msk.f32.mxu0 %vm8348_vm0, %v12107_v28  ;;  %v130_v60 = vld [vmem:[%s12079_s0 + $0x300] sm:$0xff] }
 0x13b   :  { %v7621_v17 = vpop.eup %7620  ;;  %7634 = vtanh.f32 %v1685_v12  ;;  %v589_v9 = vpop.permute.xlu0 %588  ;;  %6548 = vmatprep.mubr.msk.f32.mxu1 %vm8348_vm0, %v12107_v28  ;;  %v933_v36 = vadd.f32 %v8664_v61, %v802_v4 }
 0x13c   :  { %v7623_v38 = vpop.eup %7622  ;;  %v1686_v0 = vadd.f32 %v1561_v8, %v932_v40  ;;  %v875_v47 = vmul.f32 %v8646_v54, %v589_v9  ;;  %378 = vperm.xlu0 %7564, %v8651_v55   ;;  %v1096_v31 = vpop.permute.xlu1 %1095 }
 0x13d   :  { %6330 = vmatmul.mubr.msk.f32.gmra.mxu0 %vm1936_vm1, %v7621_v17  ;;  %6549 = vmatmul.mubr.msk.f32.gmra.mxu1 %vm1936_vm1, %v7623_v38  ;;  %v1562_v58 = vmul.f32 %v8656_v59, %v1096_v31  ;;  %v1565_v38 = vmul.f32 %v8656_v59, %v8813_v25  ;;  %v157_v25 = vld [vmem:[%s12079_s0 + $0x3d8] sm:$0xff] }
 0x13e   :  { %7636 = vtanh.f32 %v1686_v0  ;;  %1427 = vperm.xlu1 %7510, %v8887_v52   ;;  %6332 = vmatprep.mubr.msk.f32.mxu0 %vm8348_vm0, %v12107_v28  ;;  %v1006_v24 = vadd.f32 %v8664_v61, %v875_v47  ;;  %v8325_v47 = vld [vmem:[%s12079_s0 + $0x188] sm:$0xff] }
 0x13f   :  { %v7625_v55 = vpop.eup %7624  ;;  %v1687_v56 = vadd.f32 %v1562_v58, %v933_v36  ;;  %v229_v22 = vpop.permute.xlu0 %228  ;;  %6551 = vmatprep.mubr.msk.f32.mxu1 %vm8348_vm0, %v12107_v28  ;;  %7638 = vtanh.f32 %v1759_v19 }
 0x140   :  { %v7627_v62 = vpop.eup %7626  ;;  %v803_v30 = vmul.f32 %v8646_v54, %v229_v22  ;;  %748 = vperm.xlu0 %7564, %v151_v21   ;;  %v1388_v52 = vpop.permute.xlu1 %1387 }
 0x141   :  { %7640 = vtanh.f32 %v1687_v56  ;;  %6333 = vmatmul.mubr.msk.f32.gmra.mxu0 %vm1936_vm1, %v7627_v62  ;;  %6552 = vmatmul.mubr.msk.f32.gmra.mxu1 %vm1936_vm1, %v7625_v55  ;;  %v1635_v61 = vmul.f32 %v8656_v59, %v1388_v52 }
 0x142   :  { %v934_v14 = vadd.f32 %v9194_v27, %v803_v30  ;;  %7511 = vset.pattern.permute.xlu1 %v12106_v32  ;;  %6335 = vmatprep.mubr.msk.f32.mxu0 %vm8348_vm0, %v12107_v28 }
 0x143   :  { %v7629_v44 = vpop.eup %7628  ;;  %v1760_v20 = vadd.f32 %v1635_v61, %v1006_v24  ;;  %643 = vperm.xlu1 %7511, %v130_v60   ;;  %6554 = vmatprep.mubr.msk.f32.mxu1 %vm8348_vm0, %v12107_v28  ;;  %v599_v35 = vpop.permute.xlu0 %598 }
 0x144   :  { %v7631_v46 = vpop.eup %7630  ;;  %v1688_v42 = vadd.f32 %v1563_v34, %v934_v14  ;;  %388 = vperm.xlu0 %7564, %v8323_v1   ;;  %v877_v19 = vmul.f32 %v8646_v54, %v599_v35  ;;  %v132_v34 = vld [vmem:[%s12079_s0 + $0x310] sm:$0xff] }
 0x145   :  { %7642 = vtanh.f32 %v1760_v20  ;;  %6336 = vmatmul.mubr.msk.f32.gmra.mxu0 %vm1936_vm1, %v7629_v44  ;;  %6555 = vmatmul.mubr.msk.f32.gmra.mxu1 %vm1936_vm1, %v7631_v46  ;;  %v594_v29 = vpop.permute.xlu1 %593 }
 0x146   :  { %7644 = vtanh.f32 %v1688_v42  ;;  %6338 = vmatprep.mubr.msk.f32.mxu0 %vm8348_vm0, %v12107_v28  ;;  %6557 = vmatprep.mubr.msk.f32.mxu1 %vm8348_vm0, %v12107_v28  ;;  %v876_v23 = vmul.f32 %v8646_v54, %v594_v29  ;;  %v1008_v55 = vadd.f32 %v9194_v27, %v877_v19 }
 0x147   :  { %v7633_v41 = vpop.eup %7632  ;;  %7512 = vset.pattern.permute.xlu1 %v12105_v53  ;;  %v239_v3 = vpop.permute.xlu0 %238 }
 0x148   :  { %v7635_v13 = vpop.eup %7634  ;;  %1431 = vperm.xlu1 %7512, %v130_v60   ;;  %758 = vperm.xlu0 %7564, %v153_v15   ;;  %v1007_v8 = vadd.f32 %v9194_v27, %v876_v23  ;;  %v805_v4 = vmul.f32 %v8646_v54, %v239_v3 }
 0x149   :  { %6339 = vmatmul.mubr.msk.f32.gmra.mxu0 %vm1936_vm1, %v7635_v13  ;;  %6558 = vmatmul.mubr.msk.f32.gmra.mxu1 %vm1936_vm1, %v7633_v41  ;;  %v60_v41 = vld [vmem:[%s12079_s0 + $0xd0] sm:$0xff] }
 0x14a   :  { %v1392_v33 = vpop.permute.xlu1 %1391  ;;  %6341 = vmatprep.mubr.msk.f32.mxu0 %vm8348_vm0, %v12107_v28  ;;  %6560 = vmatprep.mubr.msk.f32.mxu1 %vm8348_vm0, %v12107_v28  ;;  %v936_v0 = vadd.f32 %v9194_v27, %v805_v4  ;;  %v1567_v4 = vmul.f32 %v8656_v59, %v8821_v45 }
 0x14b   :  { %v7637_v49 = vpop.eup %7636  ;;  %v1636_v12 = vmul.f32 %v8656_v59, %v1392_v33  ;;  %v609_v42 = vpop.permute.xlu0 %608 }
 0x14c   :  { %7513 = vset.pattern.permute.xlu1 %v12106_v32  ;;  %398 = vperm.xlu0 %7564, %v8324_v7   ;;  %v7639_v5 = vpop.eup %7638  ;;  %v1690_v24 = vadd.f32 %v1565_v38, %v936_v0 }
 0x14d   :  { %v1761_v11 = vadd.f32 %v1636_v12, %v1007_v8  ;;  %283 = vperm.xlu1 %7513, %v58_v43   ;;  %6342 = vmatmul.mubr.msk.f32.gmra.mxu0 %vm1936_vm1, %v7637_v49 }
 0x14e   :  { %v7641_v37 = vpop.eup %7640  ;;  %6561 = vmatmul.mubr.msk.f32.gmra.mxu1 %vm1936_vm1, %v7639_v5  ;;  %6344 = vmatprep.mubr.msk.f32.mxu0 %vm8348_vm0, %v12107_v28 }
 0x14f   :  { %7646 = vtanh.f32 %v1761_v11  ;;  %v234_v18 = vpop.permute.xlu1 %233  ;;  %6563 = vmatprep.mubr.msk.f32.mxu1 %vm8348_vm0, %v12107_v28  ;;  %v249_v49 = vpop.permute.xlu0 %248 }
 0x150   :  { %768 = vperm.xlu0 %7564, %v155_v48   ;;  %v804_v40 = vmul.f32 %v8646_v54, %v234_v18  ;;  %v807_v12 = vmul.f32 %v8646_v54, %v249_v49  ;;  %v879_v18 = vmul.f32 %v8646_v54, %v609_v42 }
 0x151   :  { %7514 = vset.pattern.permute.xlu1 %v12105_v53  ;;  %6345 = vmatmul.mubr.msk.f32.gmra.mxu0 %vm1936_vm1, %v7641_v37 }
 0x152   :  { %v7643_v17 = vpop.eup %7642  ;;  %1143 = vperm.xlu1 %7514, %v58_v43   ;;  %6347 = vmatprep.mubr.msk.f32.mxu0 %vm8348_vm0, %v12107_v28  ;;  %v935_v36 = vadd.f32 %v9194_v27, %v804_v40  ;;  %v938_v40 = vadd.f32 %v9194_v27, %v807_v12  ;;  %v1010_v0 = vadd.f32 %v9194_v27, %v879_v18 }
 0x153   :  { %v7645_v9 = vpop.eup %7644  ;;  %6564 = vmatmul.mubr.msk.f32.gmra.mxu1 %vm1936_vm1, %v7643_v17 }
 0x154   :  { %408 = vperm.xlu0 %7564, %v8325_v47   ;;  %v1104_v31 = vpop.permute.xlu1 %1103  ;;  %6566 = vmatprep.mubr.msk.f32.mxu1 %vm8348_vm0, %v12107_v28  ;;  %v1692_v47 = vadd.f32 %v1567_v4, %v938_v40 }
 0x155   :  { %v1564_v58 = vmul.f32 %v8656_v59, %v1104_v31  ;;  %6348 = vmatmul.mubr.msk.f32.gmra.mxu0 %vm1936_vm1, %v7645_v9  ;;  %v9262_v21 = vpop.f32.mrf.mxu1 }
 0x156   :  { %1435 = vperm.xlu1 %7514, %v8905_v10   ;;  %6350 = vmatprep.mubr.msk.f32.mxu0 %vm8348_vm0, %v12107_v28  ;;  %v85_v10 = vld [vmem:[%s12079_s0 + $0x198] sm:$0xff] }
 0x157   :  { %v1689_v56 = vadd.f32 %v1564_v58, %v935_v36  ;;  %v6499_v22 = vpop.f32.mrf.mxu1 }
 0x158   :  { %v1396_v62 = vpop.permute.xlu1 %1395  ;;  %778 = vperm.xlu0 %7564, %v157_v25   ;;  %v134_v25 = vld [vmem:[%s12079_s0 + $0x320] sm:$0xff] }
 0x159   :  { %7648 = vtanh.f32 %v1689_v56  ;;  %v1637_v30 = vmul.f32 %v8656_v59, %v1396_v62  ;;  %v9275_v52 = vpop.f32.mrf.mxu1 }
 0x15a   :  { %7515 = vset.pattern.permute.xlu1 %v12106_v32  ;;  %7650 = vtanh.f32 %v1690_v24 }
 0x15b   :  { %v1762_v60 = vadd.f32 %v1637_v30, %v1008_v55  ;;  %653 = vperm.xlu1 %7515, %v132_v34   ;;  %v6502_v14 = vpop.f32.mrf.mxu1 }
 0x15c   :  { %v7647_v61 = vpop.eup %7646  ;;  %418 = vperm.xlu0 %7564, %v85_v10  }
 0x15d   :  { %7652 = vtanh.f32 %v1762_v60  ;;  %6567 = vmatmul.mubr.msk.f32.gmra.mxu1 %vm1936_vm1, %v7647_v61  ;;  %v604_v44 = vpop.permute.xlu1 %603  ;;  %v9279_v20 = vpop.f32.mrf.mxu1 }
 0x15e   :  { %6569 = vmatprep.mubr.msk.f32.mxu1 %vm8348_vm0, %v12107_v28  ;;  %v878_v46 = vmul.f32 %v8646_v54, %v604_v44  ;;  %v62_v44 = vld [vmem:[%s12079_s0 + $0xe0] sm:$0xff] }
 0x15f   :  { %7516 = vset.pattern.permute.xlu1 %v12105_v53  ;;  %v6505_v1 = vpop.f32.mrf.mxu1 }
 0x160   :  { %1439 = vperm.xlu1 %7516, %v132_v34   ;;  %7569 = vset.pattern.permute.xlu0 %v12105_v53  ;;  %v1009_v23 = vadd.f32 %v9194_v27, %v878_v46 }
 0x161   :  { %1251 = vperm.xlu0 %7569, %v85_v10   ;;  %v9286_v29 = vpop.f32.mrf.mxu1  ;;  %v619_v10 = vpop.permute.xlu0 %618 }
 0x162   :  { %v1400_v15 = vpop.permute.xlu1 %1399 }
 0x163   :  { %v1638_v13 = vmul.f32 %v8656_v59, %v1400_v15  ;;  %v6508_v35 = vpop.f32.mrf.mxu1 }
 0x164   :  { %7517 = vset.pattern.permute.xlu1 %v12106_v32 }
 0x165   :  { %v1763_v33 = vadd.f32 %v1638_v13, %v1009_v23  ;;  %293 = vperm.xlu1 %7517, %v60_v41   ;;  %v9294_v8 = vpop.f32.mrf.mxu1  ;;  %v259_v23 = vpop.permute.xlu0 %258 }
 0x166   :  { %v7649_v43 = vpop.eup %7648  ;;  %v809_v13 = vmul.f32 %v8646_v54, %v259_v23 }
 0x167   :  { %7654 = vtanh.f32 %v1763_v33  ;;  %6351 = vmatmul.mubr.msk.f32.gmra.mxu0 %vm1936_vm1, %v7649_v43  ;;  %v244_v7 = vpop.permute.xlu1 %243  ;;  %v7651_v5 = vpop.eup %7650 }
 0x168   :  { %v6511_v11 = vpop.f32.mrf.mxu1  ;;  %6353 = vmatprep.mubr.msk.f32.mxu0 %vm8348_vm0, %v12107_v28  ;;  %v806_v48 = vmul.f32 %v8646_v54, %v244_v7 }
 0x169   :  { %7518 = vset.pattern.permute.xlu1 %v12105_v53  ;;  %v881_v11 = vmul.f32 %v8646_v54, %v619_v10 }
 0x16a   :  { %v7653_v37 = vpop.eup %7652  ;;  %v9302_v3 = vpop.f32.mrf.mxu1  ;;  %1151 = vperm.xlu1 %7518, %v60_v41   ;;  %v937_v38 = vadd.f32 %v9194_v27, %v806_v48  ;;  %v940_v48 = vadd.f32 %v9194_v27, %v809_v13 }
 0x16b   :  { %6570 = vmatmul.mubr.msk.f32.gmra.mxu1 %vm1936_vm1, %v7653_v37  ;;  %6354 = vmatmul.mubr.msk.f32.gmra.mxu0 %vm1936_vm1, %v7651_v5  ;;  %v1569_v5 = vmul.f32 %v8656_v59, %v8829_v26  ;;  %v1012_v26 = vadd.f32 %v9194_v27, %v881_v11 }
 0x16c   :  { %v6514_v17 = vpop.f32.mrf.mxu1  ;;  %v1112_v9 = vpop.permute.xlu1 %1111  ;;  %6572 = vmatprep.mubr.msk.f32.mxu1 %vm8348_vm0, %v12107_v28  ;;  %6356 = vmatprep.mubr.msk.f32.mxu0 %vm8348_vm0, %v12107_v28 }
 0x16d   :  { %v1566_v45 = vmul.f32 %v8656_v59, %v1112_v9  ;;  %v1694_v40 = vadd.f32 %v1569_v5, %v940_v48 }
 0x16e   :  { %v9316_v19 = vpop.f32.mrf.mxu1  ;;  %1443 = vperm.xlu1 %7518, %v8921_v16  }
 0x16f   :  { %v1691_v31 = vadd.f32 %v1566_v45, %v937_v38  ;;  %v136_v38 = vld [vmem:[%s12079_s0 + $0x330] sm:$0xff] }
 0x170   :  { %v6517_v36 = vpop.f32.mrf.mxu1  ;;  %v1404_v58 = vpop.permute.xlu1 %1403 }
 0x171   :  { %7656 = vtanh.f32 %v1691_v31  ;;  %v1639_v55 = vmul.f32 %v8656_v59, %v1404_v58  ;;  %v629_v36 = vpop.permute.xlu0 %628 }
 0x172   :  { %v9324_v24 = vpop.f32.mrf.mxu1  ;;  %7519 = vset.pattern.permute.xlu1 %v12106_v32  ;;  %7658 = vtanh.f32 %v1692_v47 }
 0x173   :  { %12108 = vst [vmem:[#allocation13_spill] sm:$0xff] %v9324_v24  ;;  %v1764_v56 = vadd.f32 %v1639_v55, %v1010_v0  ;;  %663 = vperm.xlu1 %7519, %v134_v25  }
 0x174   :  { %v7655_v16 = vpop.eup %7654  ;;  %v6520_v22 = vpop.f32.mrf.mxu1 }
 0x175   :  { %7660 = vtanh.f32 %v1764_v56  ;;  %6573 = vmatmul.mubr.msk.f32.gmra.mxu1 %vm1936_vm1, %v7655_v16  ;;  %v614_v62 = vpop.permute.xlu1 %613 }
 0x176   :  { %v9328_v34 = vpop.f32.mrf.mxu1  ;;  %6575 = vmatprep.mubr.msk.f32.mxu1 %vm8348_vm0, %v12107_v28  ;;  %v880_v30 = vmul.f32 %v8646_v54, %v614_v62  ;;  %v269_v62 = vpop.permute.xlu0 %268 }
 0x177   :  { %12109 = vst [vmem:[#allocation14_spill] sm:$0xff] %v9328_v34  ;;  %7520 = vset.pattern.permute.xlu1 %v12105_v53 }
 0x178   :  { %v6523_v60 = vpop.f32.mrf.mxu1  ;;  %1447 = vperm.xlu1 %7520, %v134_v25   ;;  %v1011_v46 = vadd.f32 %v9194_v27, %v880_v30  ;;  %v64_v25 = vld [vmem:[%s12079_s0 + $0xf0] sm:$0xff]  ;;  %v811_v30 = vmul.f32 %v8646_v54, %v269_v62 }
 0x17a   :  { %v9334_v61 = vpop.f32.mrf.mxu1  ;;  %v1408_v14 = vpop.permute.xlu1 %1407 }
 0x17b   :  { %12110 = vst [vmem:[#allocation15_spill] sm:$0xff] %v9334_v61  ;;  %v1640_v42 = vmul.f32 %v8656_v59, %v1408_v14  ;;  %v639_v48 = vpop.permute.xlu0 %638 }
 0x17c   :  { %v6526_v1 = vpop.f32.mrf.mxu1  ;;  %7521 = vset.pattern.permute.xlu1 %v12106_v32 }
 0x17d   :  { %v1765_v15 = vadd.f32 %v1640_v42, %v1011_v46  ;;  %303 = vperm.xlu1 %7521, %v62_v44   ;;  %v1571_v46 = vmul.f32 %v8656_v59, %v8838_v51  ;;  %v883_v42 = vmul.f32 %v8646_v54, %v629_v36  ;;  %v942_v1 = vadd.f32 %v9194_v27, %v811_v30  ;;  %v140_v30 = vld [vmem:[%s12079_s0 + $0x350] sm:$0xff] }
 0x17e   :  { %v7657_v41 = vpop.eup %7656  ;;  %v885_v36 = vmul.f32 %v8646_v54, %v639_v48 }
 0x17f   :  { %7662 = vtanh.f32 %v1765_v15  ;;  %v9343_v35 = vpop.f32.mrf.mxu0  ;;  %6357 = vmatmul.mubr.msk.f32.gmra.mxu0 %vm1936_vm1, %v7657_v41  ;;  %v7659_v33 = vpop.eup %7658  ;;  %v1014_v51 = vadd.f32 %v9194_v27, %v883_v42  ;;  %v1696_v13 = vadd.f32 %v1571_v46, %v942_v1 }
 0x180   :  { %v254_v43 = vpop.permute.xlu1 %253  ;;  %6359 = vmatprep.mubr.msk.f32.mxu0 %vm8348_vm0, %v12107_v28 }
 0x181   :  { %v808_v49 = vmul.f32 %v8646_v54, %v254_v43  ;;  %7522 = vset.pattern.permute.xlu1 %v12105_v53  ;;  %v6310_v12 = vpop.f32.mrf.mxu0 }
 0x182   :  { %v7661_v7 = vpop.eup %7660  ;;  %1159 = vperm.xlu1 %7522, %v62_v44  }
 0x183   :  { %6576 = vmatmul.mubr.msk.f32.gmra.mxu1 %vm1936_vm1, %v7661_v7  ;;  %6360 = vmatmul.mubr.msk.f32.gmra.mxu0 %vm1936_vm1, %v7659_v33  ;;  %v939_v4 = vadd.f32 %v9194_v27, %v808_v49  ;;  %v138_v49 = vld [vmem:[%s12079_s0 + $0x340] sm:$0xff] }
 0x184   :  { %v1120_v37 = vpop.permute.xlu1 %1119  ;;  %6578 = vmatprep.mubr.msk.f32.mxu1 %vm8348_vm0, %v12107_v28  ;;  %6362 = vmatprep.mubr.msk.f32.mxu0 %vm8348_vm0, %v12107_v28 }
 0x185   :  { %v1568_v18 = vmul.f32 %v8656_v59, %v1120_v37 }
 0x186   :  { %1451 = vperm.xlu1 %7522, %v8940_v50  }
 0x187   :  { %v1693_v17 = vadd.f32 %v1568_v18, %v939_v4  ;;  %v66_v4 = vld [vmem:[%s12079_s0 + $0x100] sm:$0xff] }
 0x188   :  { %v1412_v9 = vpop.permute.xlu1 %1411 }
 0x189   :  { %7664 = vtanh.f32 %v1693_v17  ;;  %v1641_v45 = vmul.f32 %v8656_v59, %v1412_v9  ;;  %v279_v9 = vpop.permute.xlu0 %278 }
 0x18a   :  { %7523 = vset.pattern.permute.xlu1 %v12106_v32  ;;  %7666 = vtanh.f32 %v1694_v40 }
 0x18b   :  { %v1766_v0 = vadd.f32 %v1641_v45, %v1012_v26  ;;  %673 = vperm.xlu1 %7523, %v136_v38  }
 0x18c   :  { %v7663_v47 = vpop.eup %7662 }
 0x18d   :  { %7668 = vtanh.f32 %v1766_v0  ;;  %6579 = vmatmul.mubr.msk.f32.gmra.mxu1 %vm1936_vm1, %v7663_v47  ;;  %v624_v50 = vpop.permute.xlu1 %623  ;;  %v813_v0 = vmul.f32 %v8646_v54, %v279_v9 }
 0x18e   :  { %6581 = vmatprep.mubr.msk.f32.mxu1 %vm8348_vm0, %v12107_v28  ;;  %v882_v31 = vmul.f32 %v8646_v54, %v624_v50 }
 0x18f   :  { %7524 = vset.pattern.permute.xlu1 %v12105_v53 }
 0x190   :  { %1455 = vperm.xlu1 %7524, %v136_v38   ;;  %v1013_v55 = vadd.f32 %v9194_v27, %v882_v31  ;;  %v1573_v31 = vmul.f32 %v8656_v59, %v8845_v39  ;;  %v1016_v39 = vadd.f32 %v9194_v27, %v885_v36 }
 0x192   :  { %v1416_v58 = vpop.permute.xlu1 %1415 }
 0x193   :  { %v1642_v56 = vmul.f32 %v8656_v59, %v1416_v58  ;;  %v944_v58 = vadd.f32 %v9194_v27, %v813_v0 }
 0x194   :  { %7525 = vset.pattern.permute.xlu1 %v12106_v32 }
 0x195   :  { %v1767_v16 = vadd.f32 %v1642_v56, %v1013_v55  ;;  %313 = vperm.xlu1 %7525, %v64_v25  }
 0x196   :  { %v7665_v22 = vpop.eup %7664 }
 0x197   :  { %7670 = vtanh.f32 %v1767_v16  ;;  %6363 = vmatmul.mubr.msk.f32.gmra.mxu0 %vm1936_vm1, %v7665_v22  ;;  %v264_v10 = vpop.permute.xlu1 %263  ;;  %v7667_v60 = vpop.eup %7666  ;;  %v8326_v16 = vld [vmem:[%s12079_s0 + $0x348] sm:$0xff]  ;;  %v1698_v22 = vadd.f32 %v1573_v31, %v944_v58 }
 0x198   :  { %6365 = vmatprep.mubr.msk.f32.mxu0 %vm8348_vm0, %v12107_v28  ;;  %v810_v14 = vmul.f32 %v8646_v54, %v264_v10 }
 0x199   :  { %7526 = vset.pattern.permute.xlu1 %v12105_v53 }
 0x19a   :  { %v7669_v44 = vpop.eup %7668  ;;  %1167 = vperm.xlu1 %7526, %v64_v25   ;;  %v941_v41 = vadd.f32 %v9194_v27, %v810_v14 }
 0x19b   :  { %6582 = vmatmul.mubr.msk.f32.gmra.mxu1 %vm1936_vm1, %v7669_v44  ;;  %6366 = vmatmul.mubr.msk.f32.gmra.mxu0 %vm1936_vm1, %v7667_v60  ;;  %v3130_v60 = vld [vmem:[%s12083_s5 + $0x18] sm:$0xff] }
 0x19c   :  { %v1128_v15 = vpop.permute.xlu1 %1127  ;;  %6584 = vmatprep.mubr.msk.f32.mxu1 %vm8348_vm0, %v12107_v28  ;;  %6368 = vmatprep.mubr.msk.f32.mxu0 %vm8348_vm0, %v12107_v28 }
 0x19d   :  { %v1570_v23 = vmul.f32 %v8656_v59, %v1128_v15  ;;  %6684 = vmatpush3.msra.mxu1 %v3130_v60  ;;  %v68_v15 = vld [vmem:[%s12079_s0 + $0x110] sm:$0xff] }
 0x19e   :  { %1459 = vperm.xlu1 %7526, %v8958_v6   ;;  %6685 = vmatprep.subr.mxu1 %v12107_v28 }
 0x19f   :  { %v1695_v33 = vadd.f32 %v1570_v23, %v941_v41  ;;  %v649_v41 = vpop.permute.xlu0 %648 }
 0x1a0   :  { %v1420_v43 = vpop.permute.xlu1 %1419  ;;  %v887_v48 = vmul.f32 %v8646_v54, %v649_v41 }
 0x1a1   :  { %7672 = vtanh.f32 %v1695_v33  ;;  %v1643_v12 = vmul.f32 %v8656_v59, %v1420_v43 }
 0x1a2   :  { %7527 = vset.pattern.permute.xlu1 %v12106_v32  ;;  %7674 = vtanh.f32 %v1696_v13 }
 0x1a3   :  { %v1768_v7 = vadd.f32 %v1643_v12, %v1014_v51  ;;  %683 = vperm.xlu1 %7527, %v138_v49  }
 0x1a4   :  { %v7671_v5 = vpop.eup %7670 }
 0x1a5   :  { %7676 = vtanh.f32 %v1768_v7  ;;  %6585 = vmatmul.mubr.msk.f32.gmra.mxu1 %vm1936_vm1, %v7671_v5  ;;  %v634_v6 = vpop.permute.xlu1 %633  ;;  %v289_v7 = vpop.permute.xlu0 %288 }
 0x1a6   :  { %6587 = vmatprep.mubr.msk.f32.mxu1 %vm8348_vm0, %v12107_v28  ;;  %v884_v11 = vmul.f32 %v8646_v54, %v634_v6  ;;  %v815_v5 = vmul.f32 %v8646_v54, %v289_v7 }
 0x1a7   :  { %7528 = vset.pattern.permute.xlu1 %v12105_v53 }
 0x1a8   :  { %1463 = vperm.xlu1 %7528, %v138_v49   ;;  %v1015_v18 = vadd.f32 %v9194_v27, %v884_v11 }
 0x1aa   :  { %v1424_v37 = vpop.permute.xlu1 %1423 }
 0x1ab   :  { %v1644_v26 = vmul.f32 %v8656_v59, %v1424_v37  ;;  %v1575_v37 = vmul.f32 %v8656_v59, %v8854_v57  ;;  %v1018_v57 = vadd.f32 %v9194_v27, %v887_v48  ;;  %v144_v48 = vld [vmem:[%s12079_s0 + $0x370] sm:$0xff] }
 0x1ac   :  { %7529 = vset.pattern.permute.xlu1 %v12106_v32 }
 0x1ad   :  { %v1769_v40 = vadd.f32 %v1644_v26, %v1015_v18  ;;  %323 = vperm.xlu1 %7529, %v66_v4   ;;  %v946_v18 = vadd.f32 %v9194_v27, %v815_v5 }
 0x1ae   :  { %v7673_v17 = vpop.eup %7672 }
 0x1af   :  { %7678 = vtanh.f32 %v1769_v40  ;;  %6369 = vmatmul.mubr.msk.f32.gmra.mxu0 %vm1936_vm1, %v7673_v17  ;;  %v274_v38 = vpop.permute.xlu1 %273  ;;  %v7675_v45 = vpop.eup %7674  ;;  %v8327_v17 = vld [vmem:[%s12079_s0 + $0x358] sm:$0xff]  ;;  %v1700_v0 = vadd.f32 %v1575_v37, %v946_v18 }
 0x1b0   :  { %6371 = vmatprep.mubr.msk.f32.mxu0 %vm8348_vm0, %v12107_v28  ;;  %v812_v50 = vmul.f32 %v8646_v54, %v274_v38  ;;  %v142_v38 = vld [vmem:[%s12079_s0 + $0x360] sm:$0xff] }
 0x1b1   :  { %7530 = vset.pattern.permute.xlu1 %v12105_v53 }
 0x1b2   :  { %v7677_v47 = vpop.eup %7676  ;;  %1175 = vperm.xlu1 %7530, %v66_v4   ;;  %v943_v55 = vadd.f32 %v9194_v27, %v812_v50 }
 0x1b3   :  { %6588 = vmatmul.mubr.msk.f32.gmra.mxu1 %vm1936_vm1, %v7677_v47  ;;  %6372 = vmatmul.mubr.msk.f32.gmra.mxu0 %vm1936_vm1, %v7675_v45 }
 0x1b4   :  { %6590 = vmatprep.mubr.msk.f32.mxu1 %vm8348_vm0, %v12107_v28  ;;  %6374 = vmatprep.mubr.msk.f32.mxu0 %vm8348_vm0, %v12107_v28 }
 0x1b5   :  { %v1136_v25 = vpop.permute.xlu1 %1135 }
 0x1b6   :  { %v1572_v56 = vmul.f32 %v8656_v59, %v1136_v25  ;;  %1467 = vperm.xlu1 %7530, %v8326_v16   ;;  %v659_v25 = vpop.permute.xlu0 %658 }
 0x1b8   :  { %v1697_v62 = vadd.f32 %v1572_v56, %v943_v55  ;;  %v70_v55 = vld [vmem:[%s12079_s0 + $0x120] sm:$0xff] }
 0x1b9   :  { %v1428_v10 = vpop.permute.xlu1 %1427 }
 0x1ba   :  { %7680 = vtanh.f32 %v1697_v62  ;;  %v1645_v14 = vmul.f32 %v8656_v59, %v1428_v10  ;;  %7531 = vset.pattern.permute.xlu1 %v12106_v32 }
 0x1bb   :  { %693 = vperm.xlu1 %7531, %v140_v30   ;;  %7682 = vtanh.f32 %v1698_v22 }
 0x1bc   :  { %v7679_v44 = vpop.eup %7678  ;;  %v1770_v46 = vadd.f32 %v1645_v14, %v1016_v39 }
 0x1bd   :  { %6591 = vmatmul.mubr.msk.f32.gmra.mxu1 %vm1936_vm1, %v7679_v44 }
 0x1be   :  { %v644_v42 = vpop.permute.xlu1 %643  ;;  %6593 = vmatprep.mubr.msk.f32.mxu1 %vm8348_vm0, %v12107_v28  ;;  %7684 = vtanh.f32 %v1770_v46 }
 0x1bf   :  { %7532 = vset.pattern.permute.xlu1 %v12105_v53  ;;  %v886_v1 = vmul.f32 %v8646_v54, %v644_v42 }
 0x1c0   :  { %1471 = vperm.xlu1 %7532, %v140_v30   ;;  %v299_v30 = vpop.permute.xlu0 %298 }
 0x1c1   :  { %v1017_v51 = vadd.f32 %v9194_v27, %v886_v1  ;;  %v817_v60 = vmul.f32 %v8646_v54, %v299_v30 }
 0x1c3   :  { %v1432_v23 = vpop.permute.xlu1 %1431 }
 0x1c4   :  { %v1646_v13 = vmul.f32 %v8656_v59, %v1432_v23  ;;  %7533 = vset.pattern.permute.xlu1 %v12106_v32  ;;  %v1577_v23 = vmul.f32 %v8656_v59, %v8860_v63 }
 0x1c5   :  { %333 = vperm.xlu1 %7533, %v68_v15  }
 0x1c6   :  { %v1771_v33 = vadd.f32 %v1646_v13, %v1017_v51  ;;  %v948_v51 = vadd.f32 %v9194_v27, %v817_v60 }
 0x1c7   :  { %v7681_v43 = vpop.eup %7680 }
 0x1c8   :  { %7686 = vtanh.f32 %v1771_v33  ;;  %6375 = vmatmul.mubr.msk.f32.gmra.mxu0 %vm1936_vm1, %v7681_v43  ;;  %v284_v49 = vpop.permute.xlu1 %283  ;;  %v7683_v12 = vpop.eup %7682  ;;  %v1702_v37 = vadd.f32 %v1577_v23, %v948_v51 }
 0x1c9   :  { %7534 = vset.pattern.permute.xlu1 %v12105_v53  ;;  %6377 = vmatprep.mubr.msk.f32.mxu0 %vm8348_vm0, %v12107_v28  ;;  %v814_v6 = vmul.f32 %v8646_v54, %v284_v49 }
 0x1ca   :  { %1183 = vperm.xlu1 %7534, %v68_v15   ;;  %v889_v15 = vmul.f32 %v8646_v54, %v659_v25  ;;  %v669_v25 = vpop.permute.xlu0 %668 }
 0x1cb   :  { %v7685_v11 = vpop.eup %7684  ;;  %v945_v26 = vadd.f32 %v9194_v27, %v814_v6 }
 0x1cc   :  { %6378 = vmatmul.mubr.msk.f32.gmra.mxu0 %vm1936_vm1, %v7683_v12  ;;  %6594 = vmatmul.mubr.msk.f32.gmra.mxu1 %vm1936_vm1, %v7685_v11  ;;  %v8328_v12 = vld [vmem:[%s12079_s0 + $0x368] sm:$0xff]  ;;  %v1020_v5 = vadd.f32 %v9194_v27, %v889_v15 }
 0x1cd   :  { %v1144_v4 = vpop.permute.xlu1 %1143  ;;  %6380 = vmatprep.mubr.msk.f32.mxu0 %vm8348_vm0, %v12107_v28  ;;  %6596 = vmatprep.mubr.msk.f32.mxu1 %vm8348_vm0, %v12107_v28 }
 0x1ce   :  { %v1574_v40 = vmul.f32 %v8656_v59, %v1144_v4  ;;  %1475 = vperm.xlu1 %7534, %v8327_v17   ;;  %v309_v23 = vpop.permute.xlu0 %308 }
 0x1d0   :  { %v1699_v9 = vadd.f32 %v1574_v40, %v945_v26 }
 0x1d1   :  { %v1436_v45 = vpop.permute.xlu1 %1435 }
 0x1d2   :  { %7688 = vtanh.f32 %v1699_v9  ;;  %v1647_v47 = vmul.f32 %v8656_v59, %v1436_v45  ;;  %7535 = vset.pattern.permute.xlu1 %v12106_v32 }
 0x1d3   :  { %703 = vperm.xlu1 %7535, %v142_v38   ;;  %7690 = vtanh.f32 %v1700_v0 }
 0x1d4   :  { %v1772_v50 = vadd.f32 %v1647_v47, %v1018_v57 }
 0x1d5   :  { %v7687_v31 = vpop.eup %7686 }
 0x1d6   :  { %6597 = vmatmul.mubr.msk.f32.gmra.mxu1 %vm1936_vm1, %v7687_v31  ;;  %v654_v36 = vpop.permute.xlu1 %653  ;;  %7692 = vtanh.f32 %v1772_v50 }
 0x1d7   :  { %7536 = vset.pattern.permute.xlu1 %v12105_v53  ;;  %6599 = vmatprep.mubr.msk.f32.mxu1 %vm8348_vm0, %v12107_v28  ;;  %v888_v58 = vmul.f32 %v8646_v54, %v654_v36 }
 0x1d8   :  { %1479 = vperm.xlu1 %7536, %v142_v38  }
 0x1d9   :  { %v1019_v16 = vadd.f32 %v9194_v27, %v888_v58 }
 0x1db   :  { %v1440_v56 = vpop.permute.xlu1 %1439 }
 0x1dc   :  { %v1648_v39 = vmul.f32 %v8656_v59, %v1440_v56  ;;  %7537 = vset.pattern.permute.xlu1 %v12106_v32  ;;  %v72_v56 = vld [vmem:[%s12079_s0 + $0x130] sm:$0xff] }
 0x1dd   :  { %343 = vperm.xlu1 %7537, %v70_v55  }
 0x1de   :  { %v1773_v22 = vadd.f32 %v1648_v39, %v1019_v16 }
 0x1df   :  { %v7689_v62 = vpop.eup %7688 }
 0x1e0   :  { %7694 = vtanh.f32 %v1773_v22  ;;  %6381 = vmatmul.mubr.msk.f32.gmra.mxu0 %vm1936_vm1, %v7689_v62  ;;  %v294_v10 = vpop.permute.xlu1 %293  ;;  %v7691_v46 = vpop.eup %7690  ;;  %v9552_v22 = vld [vmem:[%s12079_s0 + $0x1a0] sm:$0xff] }
 0x1e1   :  { %v9498_v14 = vpop.f32.mrf.mxu1  ;;  %7538 = vset.pattern.permute.xlu1 %v12105_v53  ;;  %6383 = vmatprep.mubr.msk.f32.mxu0 %vm8348_vm0, %v12107_v28  ;;  %v816_v44 = vmul.f32 %v8646_v54, %v294_v10 }
 0x1e2   :  { %12111 = vst [vmem:[#allocation16_spill] sm:$0xff] %v9498_v14  ;;  %1191 = vperm.xlu1 %7538, %v70_v55   ;;  %1255 = vperm.xlu0 %7569, %v9552_v22  }
 0x1e3   :  { %v6529_v42 = vpop.f32.mrf.mxu1  ;;  %v7693_v1 = vpop.eup %7692  ;;  %v947_v43 = vadd.f32 %v9194_v27, %v816_v44 }
 0x1e4   :  { %6384 = vmatmul.mubr.msk.f32.gmra.mxu0 %vm1936_vm1, %v7691_v46  ;;  %v9506_v41 = vpop.f32.mrf.mxu0  ;;  %6600 = vmatmul.mubr.msk.f32.gmra.mxu1 %vm1936_vm1, %v7693_v1  ;;  %v3129_v46 = vld [vmem:[%s12083_s5 + $0x10] sm:$0xff] }
 0x1e5   :  { %v9512_v13 = vpop.f32.mrf.mxu1  ;;  %v1152_v33 = vpop.permute.xlu1 %1151  ;;  %6386 = vmatprep.mubr.msk.f32.mxu0 %vm8348_vm0, %v12107_v28  ;;  %6602 = vmatprep.mubr.msk.f32.mxu1 %vm8348_vm0, %v12107_v28 }
 0x1e6   :  { %12112 = vst [vmem:[#allocation17_spill] sm:$0xff] %v9512_v13  ;;  %v1576_v49 = vmul.f32 %v8656_v59, %v1152_v33  ;;  %1483 = vperm.xlu1 %7538, %v8328_v12   ;;  %v6313_v63 = vpop.f32.mrf.mxu0  ;;  %6686 = vmatpush3.msra.mxu1 %v3129_v46  ;;  %v9569_v33 = vld [vmem:[%s12079_s0 + $0x1a8] sm:$0xff] }
 0x1e7   :  { %v6532_v7 = vpop.f32.mrf.mxu1  ;;  %6687 = vmatprep.subr.mxu1 %v12107_v28  ;;  %v819_v63 = vmul.f32 %v8646_v54, %v309_v23  ;;  %1259 = vperm.xlu0 %7569, %v9569_v33  }
 0x1e8   :  { %v1701_v6 = vadd.f32 %v1576_v49, %v947_v43  ;;  %v9524_v11 = vpop.f32.mrf.mxu0 }
 0x1e9   :  { %v9529_v4 = vpop.f32.mrf.mxu1  ;;  %v1444_v18 = vpop.permute.xlu1 %1443 }
 0x1ea   :  { %12113 = vst [vmem:[#allocation18_spill] sm:$0xff] %v9529_v4  ;;  %7696 = vtanh.f32 %v1701_v6  ;;  %v1649_v26 = vmul.f32 %v8656_v59, %v1444_v18  ;;  %7539 = vset.pattern.permute.xlu1 %v12106_v32  ;;  %v6316_v40 = vpop.f32.mrf.mxu0  ;;  %v891_v18 = vmul.f32 %v8646_v54, %v669_v25 }
 0x1eb   :  { %v6535_v17 = vpop.f32.mrf.mxu1  ;;  %713 = vperm.xlu1 %7539, %v144_v48   ;;  %7698 = vtanh.f32 %v1702_v37  ;;  %v9587_v37 = vld [vmem:[%s12079_s0 + $0x1b0] sm:$0xff] }
 0x1ec   :  { %v1774_v57 = vadd.f32 %v1649_v26, %v1020_v5  ;;  %v9533_v9 = vpop.f32.mrf.mxu0  ;;  %v1579_v17 = vmul.f32 %v8656_v59, %v8870_v2  ;;  %1263 = vperm.xlu0 %7569, %v9587_v37   ;;  %v146_v2 = vld [vmem:[%s12079_s0 + $0x380] sm:$0xff] }
 0x1ed   :  { %v7695_v38 = vpop.eup %7694  ;;  %v9535_v45 = vpop.f32.mrf.mxu1 }
 0x1ee   :  { %12114 = vst [vmem:[#allocation19_spill] sm:$0xff] %v9535_v45  ;;  %7700 = vtanh.f32 %v1774_v57  ;;  %6603 = vmatmul.mubr.msk.f32.gmra.mxu1 %vm1936_vm1, %v7695_v38  ;;  %v664_v0 = vpop.permute.xlu1 %663  ;;  %v6319_v47 = vpop.f32.mrf.mxu0  ;;  %v950_v57 = vadd.f32 %v9194_v27, %v819_v63 }
 0x1ef   :  { %v6538_v50 = vpop.f32.mrf.mxu1  ;;  %7540 = vset.pattern.permute.xlu1 %v12105_v53  ;;  %6605 = vmatprep.mubr.msk.f32.mxu1 %vm8348_vm0, %v12107_v28  ;;  %v890_v31 = vmul.f32 %v8646_v54, %v664_v0  ;;  %v8329_v0 = vld [vmem:[%s12079_s0 + $0x378] sm:$0xff] }
 0x1f0   :  { %1487 = vperm.xlu1 %7540, %v144_v48   ;;  %v9542_v36 = vpop.f32.mrf.mxu0 }
 0x1f1   :  { %v9544_v58 = vpop.f32.mrf.mxu1  ;;  %v1021_v62 = vadd.f32 %v9194_v27, %v890_v31 }
 0x1f2   :  { %12115 = vst [vmem:[#allocation20_spill] sm:$0xff] %v9544_v58  ;;  %v6322_v55 = vpop.f32.mrf.mxu0 }
 0x1f3   :  { %v6541_v16 = vpop.f32.mrf.mxu1  ;;  %v1448_v39 = vpop.permute.xlu1 %1447  ;;  %v9613_v55 = vld [vmem:[%s12079_s0 + $0x1b8] sm:$0xff] }
 0x1f4   :  { %v1650_v30 = vmul.f32 %v8656_v59, %v1448_v39  ;;  %7541 = vset.pattern.permute.xlu1 %v12106_v32  ;;  %1267 = vperm.xlu0 %7569, %v9613_v55  }
 0x1f5   :  { %v9558_v10 = vpop.f32.mrf.mxu0  ;;  %v9560_v60 = vpop.f32.mrf.mxu1  ;;  %353 = vperm.xlu1 %7541, %v72_v56  }
 0x1f6   :  { %12116 = vst [vmem:[#allocation21_spill] sm:$0xff] %v9560_v60  ;;  %v1775_v44 = vadd.f32 %v1650_v30, %v1021_v62  ;;  %v1704_v30 = vadd.f32 %v1579_v17, %v950_v57 }
 0x1f7   :  { %v7697_v42 = vpop.eup %7696  ;;  %v6325_v1 = vpop.f32.mrf.mxu0 }
 0x1f8   :  { %v6544_v15 = vpop.f32.mrf.mxu1  ;;  %7702 = vtanh.f32 %v1775_v44  ;;  %6387 = vmatmul.mubr.msk.f32.gmra.mxu0 %vm1936_vm1, %v7697_v42  ;;  %v304_v51 = vpop.permute.xlu1 %303 }
 0x1f9   :  { %v9572_v43 = vpop.f32.mrf.mxu0  ;;  %7542 = vset.pattern.permute.xlu1 %v12105_v53  ;;  %6389 = vmatprep.mubr.msk.f32.mxu0 %vm8348_vm0, %v12107_v28  ;;  %v7699_v12 = vpop.eup %7698  ;;  %v818_v5 = vmul.f32 %v8646_v54, %v304_v51 }
 0x1fa   :  { %v9574_v49 = vpop.f32.mrf.mxu1  ;;  %1199 = vperm.xlu1 %7542, %v72_v56   ;;  %v1022_v56 = vadd.f32 %v9194_v27, %v891_v18 }
 0x1fb   :  { %12117 = vst [vmem:[#allocation22_spill] sm:$0xff] %v9574_v49  ;;  %v7701_v7 = vpop.eup %7700  ;;  %v6328_v6 = vpop.f32.mrf.mxu0  ;;  %v949_v47 = vadd.f32 %v9194_v27, %v818_v5  ;;  %v9626_v27 = vld [vmem:[%s12079_s0 + $0x1c0] sm:$0xff] }
 0x1fc   :  { %v6547_v48 = vpop.f32.mrf.mxu1  ;;  %6390 = vmatmul.mubr.msk.f32.gmra.mxu0 %vm1936_vm1, %v7699_v12  ;;  %6606 = vmatmul.mubr.msk.f32.gmra.mxu1 %vm1936_vm1, %v7701_v7  ;;  %v679_v6 = vpop.permute.xlu0 %678 }
 0x1fd   :  { %v9590_v26 = vpop.f32.mrf.mxu0  ;;  %6608 = vmatprep.mubr.msk.f32.mxu1 %vm8348_vm0, %v12107_v28  ;;  %6392 = vmatprep.mubr.msk.f32.mxu0 %vm8348_vm0, %v12107_v28  ;;  %v1160_v38 = vpop.permute.xlu1 %1159  ;;  %v9640_v48 = vld [vmem:[%s12079_s0 + $0x1c8] sm:$0xff] }
 0x1fe   :  { %v9592_v40 = vpop.f32.mrf.mxu1  ;;  %1491 = vperm.xlu1 %7542, %v8329_v0   ;;  %v1578_v50 = vmul.f32 %v8656_v59, %v1160_v38  ;;  %1271 = vperm.xlu0 %7569, %v9626_v27   ;;  %v74_v38 = vld [vmem:[%s12079_s0 + $0x140] sm:$0xff] }
 0x1ff   :  { %12118 = vst [vmem:[#allocation23_spill] sm:$0xff] %v9592_v40  ;;  %v6331_v31 = vpop.f32.mrf.mxu0 }
 0x200   :  { %v6550_v25 = vpop.f32.mrf.mxu1  ;;  %v1703_v16 = vadd.f32 %v1578_v50, %v949_v47  ;;  %v9654_v50 = vld [vmem:[%s12079_s0 + $0x1d0] sm:$0xff] }
 0x201   :  { %v9616_v39 = vpop.f32.mrf.mxu0  ;;  %v1452_v44 = vpop.permute.xlu1 %1451  ;;  %v9660_v25 = vld [vmem:[%s12082_s2] ss:$0 sm:$0xff] }
 0x202   :  { %v9618_v62 = vpop.f32.mrf.mxu1  ;;  %7543 = vset.pattern.permute.xlu1 %v12106_v32  ;;  %7704 = vtanh.f32 %v1703_v16  ;;  %v1651_v46 = vmul.f32 %v8656_v59, %v1452_v44  ;;  %1275 = vperm.xlu0 %7569, %v9640_v48   ;;  %v319_v44 = vpop.permute.xlu0 %318 }
 0x203   :  { %12119 = vst [vmem:[#allocation24_spill] sm:$0xff] %v9618_v62  ;;  %v6334_v42 = vpop.f32.mrf.mxu0  ;;  %723 = vperm.xlu1 %7543, %v146_v2   ;;  %7706 = vtanh.f32 %v1704_v30 }
 0x204   :  { %v6553_v1 = vpop.f32.mrf.mxu1  ;;  %v1776_v23 = vadd.f32 %v1651_v46, %v1022_v56 }
 0x205   :  { %v7703_v15 = vpop.eup %7702  ;;  %v9628_v51 = vpop.f32.mrf.mxu0 }
 0x206   :  { %v9630_v12 = vpop.f32.mrf.mxu1  ;;  %6609 = vmatmul.mubr.msk.f32.gmra.mxu1 %vm1936_vm1, %v7703_v15  ;;  %v674_v63 = vpop.permute.xlu1 %673  ;;  %7708 = vtanh.f32 %v1776_v23  ;;  %1279 = vperm.xlu0 %7569, %v9654_v50  }
 0x207   :  { %12120 = vst [vmem:[#allocation25_spill] sm:$0xff] %v9630_v12  ;;  %v6337_v7 = vpop.f32.mrf.mxu0  ;;  %7544 = vset.pattern.permute.xlu1 %v12105_v53  ;;  %6611 = vmatprep.mubr.msk.f32.mxu1 %vm8348_vm0, %v12107_v28  ;;  %v892_v18 = vmul.f32 %v8646_v54, %v674_v63  ;;  %v9672_v63 = vld [vmem:[%s12079_s0 + $0x1d8] sm:$0xff] }
 0x208   :  { %v6556_v5 = vpop.f32.mrf.mxu1  ;;  %1495 = vperm.xlu1 %7544, %v146_v2   ;;  %v821_v7 = vmul.f32 %v8646_v54, %v319_v44  ;;  %v9689_v44 = vld [vmem:[%s12079_s0 + $0x1e0] sm:$0xff] }
 0x209   :  { %v9643_v17 = vpop.f32.mrf.mxu0  ;;  %v1023_v2 = vadd.f32 %v9660_v25, %v892_v18 }
 0x20a   :  { %v9645_v57 = vpop.f32.mrf.mxu1  ;;  %1283 = vperm.xlu0 %7569, %v9672_v63  }
 0x20b   :  { %12121 = vst [vmem:[#allocation26_spill] sm:$0xff] %v9645_v57  ;;  %v6340_v0 = vpop.f32.mrf.mxu0  ;;  %v1456_v31 = vpop.permute.xlu1 %1455 }
 0x20c   :  { %v6559_v47 = vpop.f32.mrf.mxu1  ;;  %7545 = vset.pattern.permute.xlu1 %v12106_v32  ;;  %v1652_v56 = vmul.f32 %v8656_v59, %v1456_v31 }
 0x20d   :  { %v9664_v16 = vpop.f32.mrf.mxu0  ;;  %363 = vperm.xlu1 %7545, %v74_v38  }
 0x20e   :  { %v9666_v30 = vpop.f32.mrf.mxu1  ;;  %v1777_v46 = vadd.f32 %v1652_v56, %v1023_v2  ;;  %v893_v56 = vmul.f32 %v8646_v54, %v679_v6  ;;  %1287 = vperm.xlu0 %7569, %v9689_v44  }
 0x20f   :  { %12122 = vst [vmem:[#allocation27_spill] sm:$0xff] %v9666_v30  ;;  %v6343_v42 = vpop.f32.mrf.mxu0  ;;  %v7705_v1 = vpop.eup %7704 }
 0x210   :  { %v6562_v15 = vpop.f32.mrf.mxu1  ;;  %v314_v23 = vpop.permute.xlu1 %313  ;;  %7710 = vtanh.f32 %v1777_v46  ;;  %6393 = vmatmul.mubr.msk.f32.gmra.mxu0 %vm1936_vm1, %v7705_v1  ;;  %v12124_v46 = vld [vmem:[#allocation3_spill] sm:$0xff]  ;;  %v952_v42 = vadd.f32 %v9660_v25, %v821_v7  ;;  %v1024_v7 = vadd.f32 %v9660_v25, %v893_v56 }
 0x211   :  { %v9676_v5 = vpop.f32.mrf.mxu0  ;;  %7546 = vset.pattern.permute.xlu1 %v12105_v53  ;;  %v820_v18 = vmul.f32 %v8646_v54, %v314_v23  ;;  %6395 = vmatprep.mubr.msk.f32.mxu0 %vm8348_vm0, %v12107_v28  ;;  %v7707_v0 = vpop.eup %7706 }
 0x212   :  { %1207 = vperm.xlu1 %7546, %v74_v38   ;;  %v1581_v38 = vmul.f32 %v8656_v59, %v12124_v46 }
 0x213   :  { %v6346_v47 = vpop.f32.mrf.mxu0  ;;  %v9682_v31 = vpop.f32.mrf.mxu1  ;;  %v951_v23 = vadd.f32 %v9660_v25, %v820_v18 }
 0x214   :  { %12123 = vst [vmem:[#allocation28_spill] sm:$0xff] %v9682_v31  ;;  %v7709_v2 = vpop.eup %7708  ;;  %6396 = vmatmul.mubr.msk.f32.gmra.mxu0 %vm1936_vm1, %v7707_v0  ;;  %v8331_v47 = vld [vmem:[%s12079_s0 + $0x388] sm:$0xff]  ;;  %v148_v0 = vld [vmem:[%s12079_s0 + $0x390] sm:$0xff] }
 0x215   :  { %6612 = vmatmul.mubr.msk.f32.gmra.mxu1 %vm1936_vm1, %v7709_v2  ;;  %v1168_v1 = vpop.permute.xlu1 %1167  ;;  %v6565_v15 = vpop.f32.mrf.mxu1  ;;  %6398 = vmatprep.mubr.msk.f32.mxu0 %vm8348_vm0, %v12107_v28 }
 0x216   :  { %v1580_v6 = vmul.f32 %v8656_v59, %v1168_v1  ;;  %1499 = vperm.xlu1 %7546, %v8331_v47   ;;  %6614 = vmatprep.mubr.msk.f32.mxu1 %vm8348_vm0, %v12107_v28  ;;  %v9703_v46 = vpop.f32.mrf.mxu0  ;;  %v9715_v1 = vld [vmem:[%s12079_s0 + $0x1e8] sm:$0xff]  ;;  %v1706_v15 = vadd.f32 %v1581_v38, %v952_v42  ;;  %v9725_v38 = vld [vmem:[%s12079_s0 + $0x1f0] sm:$0xff] }
 0x217   :  { %1291 = vperm.xlu0 %7569, %v9715_v1  }
 0x218   :  { %v1705_v18 = vadd.f32 %v1580_v6, %v951_v23  ;;  %v6349_v2 = vpop.f32.mrf.mxu0 }
 0x219   :  { %v1460_v47 = vpop.permute.xlu1 %1459 }
 0x21a   :  { %7712 = vtanh.f32 %v1705_v18  ;;  %v1653_v31 = vmul.f32 %v8656_v59, %v1460_v47  ;;  %7547 = vset.pattern.permute.xlu1 %v12106_v32 }
 0x21b   :  { %733 = vperm.xlu1 %7547, %v148_v0   ;;  %7714 = vtanh.f32 %v1706_v15  ;;  %1295 = vperm.xlu0 %7569, %v9725_v38  }
 0x21c   :  { %v1778_v56 = vadd.f32 %v1653_v31, %v1024_v7  ;;  %v689_v31 = vpop.permute.xlu0 %688  ;;  %v76_v7 = vld [vmem:[%s12079_s0 + $0x150] sm:$0xff] }
 0x21d   :  { %v9720_v23 = vpop.f32.mrf.mxu1  ;;  %v7711_v6 = vpop.eup %7710 }
 0x21e   :  { %12125 = vst [vmem:[#allocation3_spill] sm:$0xff] %v9720_v23  ;;  %7716 = vtanh.f32 %v1778_v56  ;;  %v684_v2 = vpop.permute.xlu1 %683  ;;  %6615 = vmatmul.mubr.msk.f32.gmra.mxu1 %vm1936_vm1, %v7711_v6 }
 0x21f   :  { %7548 = vset.pattern.permute.xlu1 %v12105_v53  ;;  %v6568_v42 = vpop.f32.mrf.mxu1  ;;  %v894_v18 = vmul.f32 %v8646_v54, %v684_v2  ;;  %6617 = vmatprep.mubr.msk.f32.mxu1 %vm8348_vm0, %v12107_v28 }
 0x220   :  { %1503 = vperm.xlu1 %7548, %v148_v0   ;;  %v329_v42 = vpop.permute.xlu0 %328 }
 0x221   :  { %v1025_v47 = vadd.f32 %v9660_v25, %v894_v18  ;;  %v823_v30 = vmul.f32 %v8646_v54, %v329_v42 }
 0x223   :  { %v1464_v15 = vpop.permute.xlu1 %1463  ;;  %v954_v42 = vadd.f32 %v9660_v25, %v823_v30 }
 0x224   :  { %v1654_v56 = vmul.f32 %v8656_v59, %v1464_v15  ;;  %7549 = vset.pattern.permute.xlu1 %v12106_v32 }
 0x225   :  { %373 = vperm.xlu1 %7549, %v76_v7  }
 0x226   :  { %v1779_v6 = vadd.f32 %v1654_v56, %v1025_v47 }
 0x227   :  { %v7713_v0 = vpop.eup %7712  ;;  %v9739_v2 = vpop.f32.mrf.mxu0 }
 0x228   :  { %7718 = vtanh.f32 %v1779_v6  ;;  %6399 = vmatmul.mubr.msk.f32.gmra.mxu0 %vm1936_vm1, %v7713_v0  ;;  %v324_v23 = vpop.permute.xlu1 %323  ;;  %v7715_v18 = vpop.eup %7714  ;;  %v895_v6 = vmul.f32 %v8646_v54, %v689_v31  ;;  %v12127_v0 = vld [vmem:[#allocation4_spill] sm:$0xff] }
 0x229   :  { %7550 = vset.pattern.permute.xlu1 %v12105_v53  ;;  %v6352_v57 = vpop.f32.mrf.mxu0  ;;  %6401 = vmatprep.mubr.msk.f32.mxu0 %vm8348_vm0, %v12107_v28  ;;  %v822_v15 = vmul.f32 %v8646_v54, %v324_v23 }
 0x22a   :  { %1215 = vperm.xlu1 %7550, %v76_v7   ;;  %v1583_v57 = vmul.f32 %v8656_v59, %v12127_v0  ;;  %v8332_v7 = vld [vmem:[%s12079_s0 + $0x398] sm:$0xff]  ;;  %v1026_v30 = vadd.f32 %v9660_v25, %v895_v6 }
 0x22b   :  { %v7717_v47 = vpop.eup %7716  ;;  %v9747_v56 = vpop.f32.mrf.mxu1  ;;  %v953_v23 = vadd.f32 %v9660_v25, %v822_v15  ;;  %v3128_v15 = vld [vmem:[%s12083_s5 + $0x8] sm:$0xff] }
 0x22c   :  { %12126 = vst [vmem:[#allocation29_spill] sm:$0xff] %v9747_v56  ;;  %v9749_v12 = vpop.f32.mrf.mxu0  ;;  %6402 = vmatmul.mubr.msk.f32.gmra.mxu0 %vm1936_vm1, %v7715_v18  ;;  %6618 = vmatmul.mubr.msk.f32.gmra.mxu1 %vm1936_vm1, %v7717_v47  ;;  %v1708_v0 = vadd.f32 %v1583_v57, %v954_v42 }
 0x22d   :  { %v1176_v62 = vpop.permute.xlu1 %1175  ;;  %v6571_v40 = vpop.f32.mrf.mxu1  ;;  %6620 = vmatprep.mubr.msk.f32.mxu1 %vm8348_vm0, %v12107_v28  ;;  %6404 = vmatprep.mubr.msk.f32.mxu0 %vm8348_vm0, %v12107_v28 }
 0x22e   :  { %v1582_v31 = vmul.f32 %v8656_v59, %v1176_v62  ;;  %1507 = vperm.xlu1 %7550, %v8332_v7   ;;  %v6355_v18 = vpop.f32.mrf.mxu0  ;;  %v150_v40 = vld [vmem:[%s12079_s0 + $0x3a0] sm:$0xff]  ;;  %6688 = vmatpush3.msra.mxu1 %v3128_v15  ;;  %v699_v7 = vpop.permute.xlu0 %698 }
 0x22f   :  { %6689 = vmatprep.subr.mxu1 %v12107_v28  ;;  %v78_v18 = vld [vmem:[%s12079_s0 + $0x160] sm:$0xff] }
 0x230   :  { %v1707_v47 = vadd.f32 %v1582_v31, %v953_v23 }
 0x231   :  { %v1468_v56 = vpop.permute.xlu1 %1467 }
 0x232   :  { %7720 = vtanh.f32 %v1707_v47  ;;  %v1655_v62 = vmul.f32 %v8656_v59, %v1468_v56  ;;  %7551 = vset.pattern.permute.xlu1 %v12106_v32 }
 0x233   :  { %743 = vperm.xlu1 %7551, %v150_v40   ;;  %7722 = vtanh.f32 %v1708_v0 }
 0x234   :  { %v1780_v6 = vadd.f32 %v1655_v62, %v1026_v30 }
 0x235   :  { %v7719_v23 = vpop.eup %7718  ;;  %v9776_v31 = vpop.f32.mrf.mxu1 }
 0x236   :  { %12128 = vst [vmem:[#allocation4_spill] sm:$0xff] %v9776_v31  ;;  %7724 = vtanh.f32 %v1780_v6  ;;  %6621 = vmatmul.mubr.msk.f32.gmra.mxu1 %vm1936_vm1, %v7719_v23  ;;  %v694_v57 = vpop.permute.xlu1 %693  ;;  %v339_v23 = vpop.permute.xlu0 %338 }
 0x237   :  { %7552 = vset.pattern.permute.xlu1 %v12105_v53  ;;  %v6574_v42 = vpop.f32.mrf.mxu1  ;;  %6623 = vmatprep.mubr.msk.f32.mxu1 %vm8348_vm0, %v12107_v28  ;;  %v896_v56 = vmul.f32 %v8646_v54, %v694_v57  ;;  %v825_v57 = vmul.f32 %v8646_v54, %v339_v23 }
 0x238   :  { %1511 = vperm.xlu1 %7552, %v150_v40  }
 0x239   :  { %v1027_v47 = vadd.f32 %v9660_v25, %v896_v56  ;;  %v956_v23 = vadd.f32 %v9660_v25, %v825_v57 }
 0x23b   :  { %v1472_v30 = vpop.permute.xlu1 %1471 }
 0x23c   :  { %v1656_v0 = vmul.f32 %v8656_v59, %v1472_v30  ;;  %7553 = vset.pattern.permute.xlu1 %v12106_v32 }
 0x23d   :  { %383 = vperm.xlu1 %7553, %v78_v18  }
 0x23e   :  { %v1781_v15 = vadd.f32 %v1656_v0, %v1027_v47 }
 0x23f   :  { %v7721_v62 = vpop.eup %7720  ;;  %v9789_v6 = vpop.f32.mrf.mxu0 }
 0x240   :  { %7726 = vtanh.f32 %v1781_v15  ;;  %6405 = vmatmul.mubr.msk.f32.gmra.mxu0 %vm1936_vm1, %v7721_v62  ;;  %v334_v40 = vpop.permute.xlu1 %333  ;;  %v7723_v56 = vpop.eup %7722  ;;  %v12130_v15 = vld [vmem:[#allocation5_spill] sm:$0xff] }
 0x241   :  { %7554 = vset.pattern.permute.xlu1 %v12105_v53  ;;  %v6358_v42 = vpop.f32.mrf.mxu0  ;;  %6407 = vmatprep.mubr.msk.f32.mxu0 %vm8348_vm0, %v12107_v28  ;;  %v824_v30 = vmul.f32 %v8646_v54, %v334_v40  ;;  %v1585_v62 = vmul.f32 %v8656_v59, %v12130_v15 }
 0x242   :  { %1223 = vperm.xlu1 %7554, %v78_v18   ;;  %v897_v18 = vmul.f32 %v8646_v54, %v699_v7 }
 0x243   :  { %v7725_v47 = vpop.eup %7724  ;;  %v9797_v0 = vpop.f32.mrf.mxu1  ;;  %v955_v40 = vadd.f32 %v9660_v25, %v824_v30 }
 0x244   :  { %12129 = vst [vmem:[#allocation30_spill] sm:$0xff] %v9797_v0  ;;  %v9799_v31 = vpop.f32.mrf.mxu0  ;;  %6408 = vmatmul.mubr.msk.f32.gmra.mxu0 %vm1936_vm1, %v7723_v56  ;;  %6624 = vmatmul.mubr.msk.f32.gmra.mxu1 %vm1936_vm1, %v7725_v47  ;;  %v8333_v47 = vld [vmem:[%s12079_s0 + $0x3a8] sm:$0xff]  ;;  %v1710_v0 = vadd.f32 %v1585_v62, %v956_v23  ;;  %v1028_v58 = vadd.f32 %v9660_v25, %v897_v18  ;;  %v709_v23 = vpop.permute.xlu0 %708 }
 0x245   :  { %v1184_v42 = vpop.permute.xlu1 %1183  ;;  %v6577_v49 = vpop.f32.mrf.mxu1  ;;  %6626 = vmatprep.mubr.msk.f32.mxu1 %vm8348_vm0, %v12107_v28  ;;  %6410 = vmatprep.mubr.msk.f32.mxu0 %vm8348_vm0, %v12107_v28 }
 0x246   :  { %v1584_v56 = vmul.f32 %v8656_v59, %v1184_v42  ;;  %1515 = vperm.xlu1 %7554, %v8333_v47   ;;  %v6361_v57 = vpop.f32.mrf.mxu0  ;;  %v152_v49 = vld [vmem:[%s12079_s0 + $0x3b0] sm:$0xff] }
 0x248   :  { %v1709_v15 = vadd.f32 %v1584_v56, %v955_v40 }
 0x249   :  { %v1476_v60 = vpop.permute.xlu1 %1475 }
 0x24a   :  { %7728 = vtanh.f32 %v1709_v15  ;;  %v1657_v7 = vmul.f32 %v8656_v59, %v1476_v60  ;;  %7555 = vset.pattern.permute.xlu1 %v12106_v32 }
 0x24b   :  { %753 = vperm.xlu1 %7555, %v152_v49   ;;  %7730 = vtanh.f32 %v1710_v0 }
 0x24c   :  { %v1782_v30 = vadd.f32 %v1657_v7, %v1028_v58  ;;  %v80_v58 = vld [vmem:[%s12079_s0 + $0x170] sm:$0xff] }
 0x24d   :  { %v7727_v42 = vpop.eup %7726  ;;  %v9822_v47 = vpop.f32.mrf.mxu1 }
 0x24e   :  { %12131 = vst [vmem:[#allocation5_spill] sm:$0xff] %v9822_v47  ;;  %7732 = vtanh.f32 %v1782_v30  ;;  %6627 = vmatmul.mubr.msk.f32.gmra.mxu1 %vm1936_vm1, %v7727_v42  ;;  %v704_v40 = vpop.permute.xlu1 %703  ;;  %v349_v30 = vpop.permute.xlu0 %348 }
 0x24f   :  { %7556 = vset.pattern.permute.xlu1 %v12105_v53  ;;  %v6580_v62 = vpop.f32.mrf.mxu1  ;;  %6629 = vmatprep.mubr.msk.f32.mxu1 %vm8348_vm0, %v12107_v28  ;;  %v898_v60 = vmul.f32 %v8646_v54, %v704_v40  ;;  %v827_v42 = vmul.f32 %v8646_v54, %v349_v30 }
 0x250   :  { %1519 = vperm.xlu1 %7556, %v152_v49  }
 0x251   :  { %v1029_v18 = vadd.f32 %v9660_v25, %v898_v60  ;;  %v958_v30 = vadd.f32 %v9660_v25, %v827_v42 }
 0x253   :  { %v1480_v0 = vpop.permute.xlu1 %1479 }
 0x254   :  { %v1658_v56 = vmul.f32 %v8656_v59, %v1480_v0  ;;  %7557 = vset.pattern.permute.xlu1 %v12106_v32 }
 0x255   :  { %393 = vperm.xlu1 %7557, %v80_v58  }
 0x256   :  { %v1783_v57 = vadd.f32 %v1658_v56, %v1029_v18 }
 0x257   :  { %v7729_v15 = vpop.eup %7728  ;;  %v9835_v7 = vpop.f32.mrf.mxu0 }
 0x258   :  { %7734 = vtanh.f32 %v1783_v57  ;;  %6411 = vmatmul.mubr.msk.f32.gmra.mxu0 %vm1936_vm1, %v7729_v15  ;;  %v344_v49 = vpop.permute.xlu1 %343  ;;  %v7731_v62 = vpop.eup %7730  ;;  %v12133_v57 = vld [vmem:[#allocation6_spill] sm:$0xff] }
 0x259   :  { %7558 = vset.pattern.permute.xlu1 %v12105_v53  ;;  %v6364_v40 = vpop.f32.mrf.mxu0  ;;  %6413 = vmatprep.mubr.msk.f32.mxu0 %vm8348_vm0, %v12107_v28  ;;  %v826_v60 = vmul.f32 %v8646_v54, %v344_v49  ;;  %v1587_v15 = vmul.f32 %v8656_v59, %v12133_v57 }
 0x25a   :  { %1231 = vperm.xlu1 %7558, %v80_v58   ;;  %v899_v58 = vmul.f32 %v8646_v54, %v709_v23 }
 0x25b   :  { %v7733_v0 = vpop.eup %7732  ;;  %v9843_v18 = vpop.f32.mrf.mxu1  ;;  %v957_v49 = vadd.f32 %v9660_v25, %v826_v60 }
 0x25c   :  { %12132 = vst [vmem:[#allocation31_spill] sm:$0xff] %v9843_v18  ;;  %v9845_v56 = vpop.f32.mrf.mxu0  ;;  %6414 = vmatmul.mubr.msk.f32.gmra.mxu0 %vm1936_vm1, %v7731_v62  ;;  %6630 = vmatmul.mubr.msk.f32.gmra.mxu1 %vm1936_vm1, %v7733_v0  ;;  %v8334_v0 = vld [vmem:[%s12079_s0 + $0x3b8] sm:$0xff]  ;;  %v1712_v18 = vadd.f32 %v1587_v15, %v958_v30  ;;  %v1030_v4 = vadd.f32 %v9660_v25, %v899_v58  ;;  %v719_v30 = vpop.permute.xlu0 %718 }
 0x25d   :  { %v1192_v40 = vpop.permute.xlu1 %1191  ;;  %v6583_v47 = vpop.f32.mrf.mxu1  ;;  %6632 = vmatprep.mubr.msk.f32.mxu1 %vm8348_vm0, %v12107_v28  ;;  %6416 = vmatprep.mubr.msk.f32.mxu0 %vm8348_vm0, %v12107_v28 }
 0x25e   :  { %v1586_v62 = vmul.f32 %v8656_v59, %v1192_v40  ;;  %1523 = vperm.xlu1 %7558, %v8334_v0   ;;  %v6367_v42 = vpop.f32.mrf.mxu0  ;;  %v154_v47 = vld [vmem:[%s12079_s0 + $0x3c0] sm:$0xff] }
 0x260   :  { %v1711_v57 = vadd.f32 %v1586_v62, %v957_v49 }
 0x261   :  { %v1484_v45 = vpop.permute.xlu1 %1483 }
 0x262   :  { %7736 = vtanh.f32 %v1711_v57  ;;  %v1659_v23 = vmul.f32 %v8656_v59, %v1484_v45  ;;  %7559 = vset.pattern.permute.xlu1 %v12106_v32 }
 0x263   :  { %763 = vperm.xlu1 %7559, %v154_v47   ;;  %7738 = vtanh.f32 %v1712_v18 }
 0x264   :  { %v1784_v60 = vadd.f32 %v1659_v23, %v1030_v4  ;;  %v82_v4 = vld [vmem:[%s12079_s0 + $0x180] sm:$0xff] }
 0x265   :  { %v7735_v40 = vpop.eup %7734  ;;  %v9868_v0 = vpop.f32.mrf.mxu1 }
 0x266   :  { %12134 = vst [vmem:[#allocation6_spill] sm:$0xff] %v9868_v0  ;;  %7740 = vtanh.f32 %v1784_v60  ;;  %6633 = vmatmul.mubr.msk.f32.gmra.mxu1 %vm1936_vm1, %v7735_v40  ;;  %v714_v49 = vpop.permute.xlu1 %713  ;;  %v359_v60 = vpop.permute.xlu0 %358 }
 0x267   :  { %7560 = vset.pattern.permute.xlu1 %v12105_v53  ;;  %v6586_v15 = vpop.f32.mrf.mxu1  ;;  %6635 = vmatprep.mubr.msk.f32.mxu1 %vm8348_vm0, %v12107_v28  ;;  %v900_v45 = vmul.f32 %v8646_v54, %v714_v49  ;;  %v829_v40 = vmul.f32 %v8646_v54, %v359_v60 }
 0x268   :  { %1527 = vperm.xlu1 %7560, %v154_v47  }
 0x269   :  { %v1031_v58 = vadd.f32 %v9660_v25, %v900_v45 }
 0x26b   :  { %v1488_v18 = vpop.permute.xlu1 %1487 }
 0x26c   :  { %v1660_v62 = vmul.f32 %v8656_v59, %v1488_v18  ;;  %7561 = vset.pattern.permute.xlu1 %v12106_v32  ;;  %v3127_v18 = vld [vmem:[%s12083_s5] sm:$0xff] }
 0x26d   :  { %403 = vperm.xlu1 %7561, %v82_v4   ;;  %6690 = vmatpush3.msra.mxu1 %v3127_v18 }
 0x26e   :  { %v1785_v42 = vadd.f32 %v1660_v62, %v1031_v58 }
 0x26f   :  { %v7737_v57 = vpop.eup %7736  ;;  %v9881_v23 = vpop.f32.mrf.mxu0 }
 0x270   :  { %7742 = vtanh.f32 %v1785_v42  ;;  %6417 = vmatmul.mubr.msk.f32.gmra.mxu0 %vm1936_vm1, %v7737_v57  ;;  %v354_v47 = vpop.permute.xlu1 %353  ;;  %v7739_v15 = vpop.eup %7738  ;;  %v12136_v57 = vld [vmem:[#allocation7_spill] sm:$0xff] }
 0x271   :  { %7562 = vset.pattern.permute.xlu1 %v12105_v53  ;;  %v6370_v49 = vpop.f32.mrf.mxu0  ;;  %6419 = vmatprep.mubr.msk.f32.mxu0 %vm8348_vm0, %v12107_v28  ;;  %v828_v45 = vmul.f32 %v8646_v54, %v354_v47  ;;  %v1589_v60 = vmul.f32 %v8656_v59, %v12136_v57  ;;  %v960_v47 = vadd.f32 %v9660_v25, %v829_v40 }
 0x272   :  { %1239 = vperm.xlu1 %7562, %v82_v4  }
 0x273   :  { %v7741_v58 = vpop.eup %7740  ;;  %v9892_v62 = vpop.f32.mrf.mxu1  ;;  %v959_v18 = vadd.f32 %v9660_v25, %v828_v45  ;;  %v1714_v0 = vadd.f32 %v1589_v60, %v960_v47 }
 0x274   :  { %12135 = vst [vmem:[#allocation32_spill] sm:$0xff] %v9892_v62  ;;  %v9894_v42 = vpop.f32.mrf.mxu0  ;;  %6420 = vmatmul.mubr.msk.f32.gmra.mxu0 %vm1936_vm1, %v7739_v15  ;;  %6636 = vmatmul.mubr.msk.f32.gmra.mxu1 %vm1936_vm1, %v7741_v58  ;;  %v901_v62 = vmul.f32 %v8646_v54, %v719_v30  ;;  %v8335_v58 = vld [vmem:[%s12079_s0 + $0x3c8] sm:$0xff] }
 0x275   :  { %v1200_v4 = vpop.permute.xlu1 %1199  ;;  %v6589_v49 = vpop.f32.mrf.mxu1  ;;  %6638 = vmatprep.mubr.msk.f32.mxu1 %vm8348_vm0, %v12107_v28  ;;  %6422 = vmatprep.mubr.msk.f32.mxu0 %vm8348_vm0, %v12107_v28 }
 0x276   :  { %v1588_v15 = vmul.f32 %v8656_v59, %v1200_v4  ;;  %1531 = vperm.xlu1 %7562, %v8335_v58   ;;  %v6373_v40 = vpop.f32.mrf.mxu0  ;;  %v156_v49 = vld [vmem:[%s12079_s0 + $0x3d0] sm:$0xff]  ;;  %v1032_v14 = vadd.f32 %v9660_v25, %v901_v62  ;;  %v729_v62 = vpop.permute.xlu0 %728 }
 0x277   :  { %v4331_v40 = vld [vmem:[%s12084_s7 + $0x18] sm:$0xff] }
 0x278   :  { %v1713_v57 = vadd.f32 %v1588_v15, %v959_v18  ;;  %7067 = vmatpush3.msra.mxu0 %v4331_v40  ;;  %v12138_v40 = vld [vmem:[#allocation8_spill] sm:$0xff] }
 0x279   :  { %v1492_v13 = vpop.permute.xlu1 %1491  ;;  %7068 = vmatprep.subr.mxu0 %v12107_v28 }
 0x27a   :  { %7744 = vtanh.f32 %v1713_v57  ;;  %v1661_v30 = vmul.f32 %v8656_v59, %v1492_v13  ;;  %7563 = vset.pattern.permute.xlu1 %v12106_v32 }
 0x27b   :  { %773 = vperm.xlu1 %7563, %v156_v49   ;;  %7746 = vtanh.f32 %v1714_v0 }
 0x27c   :  { %v1786_v45 = vadd.f32 %v1661_v30, %v1032_v14  ;;  %v84_v14 = vld [vmem:[%s12079_s0 + $0x190] sm:$0xff]  ;;  %v369_v30 = vpop.permute.xlu0 %368 }
 0x27d   :  { %v7743_v4 = vpop.eup %7742  ;;  %v9917_v58 = vpop.f32.mrf.mxu1 }
 0x27e   :  { %12137 = vst [vmem:[#allocation7_spill] sm:$0xff] %v9917_v58  ;;  %7748 = vtanh.f32 %v1786_v45  ;;  %6639 = vmatmul.mubr.msk.f32.gmra.mxu1 %vm1936_vm1, %v7743_v4  ;;  %v724_v18 = vpop.permute.xlu1 %723 }
 0x27f   :  { %7565 = vset.pattern.permute.xlu1 %v12105_v53  ;;  %v6592_v60 = vpop.f32.mrf.mxu1  ;;  %6641 = vmatprep.mubr.msk.f32.mxu1 %vm8348_vm0, %v12107_v28  ;;  %v902_v13 = vmul.f32 %v8646_v54, %v724_v18  ;;  %v831_v18 = vmul.f32 %v8646_v54, %v369_v30 }
 0x280   :  { %1535 = vperm.xlu1 %7565, %v156_v49  }
 0x281   :  { %v1033_v47 = vadd.f32 %v9660_v25, %v902_v13 }
 0x283   :  { %v1496_v0 = vpop.permute.xlu1 %1495 }
 0x284   :  { %v1662_v15 = vmul.f32 %v8656_v59, %v1496_v0  ;;  %7566 = vset.pattern.permute.xlu1 %v12106_v32 }
 0x285   :  { %413 = vperm.xlu1 %7566, %v84_v14  }
 0x286   :  { %v1787_v57 = vadd.f32 %v1662_v15, %v1033_v47 }
 0x287   :  { %v7745_v49 = vpop.eup %7744 }
 0x288   :  { %7750 = vtanh.f32 %v1787_v57  ;;  %v9934_v45 = vpop.f32.mrf.mxu0  ;;  %6423 = vmatmul.mubr.msk.f32.gmra.mxu0 %vm1936_vm1, %v7745_v49  ;;  %v364_v4 = vpop.permute.xlu1 %363  ;;  %v1591_v57 = vmul.f32 %v8656_v59, %v12138_v40  ;;  %v962_v49 = vadd.f32 %v9660_v25, %v831_v18 }
 0x289   :  { %7567 = vset.pattern.permute.xlu1 %v12105_v53  ;;  %6425 = vmatprep.mubr.msk.f32.mxu0 %vm8348_vm0, %v12107_v28  ;;  %v7747_v60 = vpop.eup %7746  ;;  %v830_v13 = vmul.f32 %v8646_v54, %v364_v4 }
 0x28a   :  { %v6376_v0 = vpop.f32.mrf.mxu0  ;;  %1247 = vperm.xlu1 %7567, %v84_v14   ;;  %v903_v14 = vmul.f32 %v8646_v54, %v729_v62  ;;  %v1716_v61 = vadd.f32 %v1591_v57, %v962_v49  ;;  %v739_v49 = vpop.permute.xlu0 %738 }
 0x28b   :  { %v7749_v47 = vpop.eup %7748  ;;  %v961_v4 = vadd.f32 %v9660_v25, %v830_v13  ;;  %v8336_v0 = vld [vmem:[%s12079_s0 + $0x3d8] sm:$0xff] }
 0x28c   :  { %6426 = vmatmul.mubr.msk.f32.gmra.mxu0 %vm1936_vm1, %v7747_v60  ;;  %6642 = vmatmul.mubr.msk.f32.gmra.mxu1 %vm1936_vm1, %v7749_v47  ;;  %v9944_v15 = vpop.f32.mrf.mxu0  ;;  %v9949_v30 = vpop.f32.mrf.mxu1  ;;  %v1034_v62 = vadd.f32 %v9660_v25, %v903_v14 }
 0x28d   :  { %12139 = vst [vmem:[#allocation8_spill] sm:$0xff] %v9949_v30  ;;  %v1208_v58 = vpop.permute.xlu1 %1207  ;;  %6644 = vmatprep.mubr.msk.f32.mxu1 %vm8348_vm0, %v12107_v28  ;;  %6428 = vmatprep.mubr.msk.f32.mxu0 %vm8348_vm0, %v12107_v28  ;;  %v158_v30 = vld [vmem:[%s12079_s0 + $0x3e0] sm:$0xff] }
 0x28e   :  { %v1590_v60 = vmul.f32 %v8656_v59, %v1208_v58  ;;  %1539 = vperm.xlu1 %7567, %v8336_v0   ;;  %v6379_v18 = vpop.f32.mrf.mxu0  ;;  %v6595_v47 = vpop.f32.mrf.mxu1 }
 0x290   :  { %v1715_v40 = vadd.f32 %v1590_v60, %v961_v4 }
 0x291   :  { %v1500_v34 = vpop.permute.xlu1 %1499 }
 0x292   :  { %7752 = vtanh.f32 %v1715_v40  ;;  %v1663_v13 = vmul.f32 %v8656_v59, %v1500_v34  ;;  %7568 = vset.pattern.permute.xlu1 %v12106_v32 }
 0x293   :  { %783 = vperm.xlu1 %7568, %v158_v30   ;;  %7754 = vtanh.f32 %v1716_v61 }
 0x294   :  { %v1788_v58 = vadd.f32 %v1663_v13, %v1034_v62 }
 0x295   :  { %v7751_v24 = vpop.eup %7750 }
 0x296   :  { %7756 = vtanh.f32 %v1788_v58  ;;  %v9967_v0 = vpop.f32.mrf.mxu1  ;;  %6645 = vmatmul.mubr.msk.f32.gmra.mxu1 %vm1936_vm1, %v7751_v24  ;;  %v734_v4 = vpop.permute.xlu1 %733 }
 0x297   :  { %12140 = vst [vmem:[#allocation33_spill] sm:$0xff] %v9967_v0  ;;  %7570 = vset.pattern.permute.xlu1 %v12105_v53  ;;  %6647 = vmatprep.mubr.msk.f32.mxu1 %vm8348_vm0, %v12107_v28  ;;  %v904_v57 = vmul.f32 %v8646_v54, %v734_v4  ;;  %v379_v53 = vpop.permute.xlu0 %378  ;;  %v12141_v4 = vld [vmem:[#allocation9_spill] sm:$0xff] }
 0x298   :  { %v6598_v34 = vpop.f32.mrf.mxu1  ;;  %1543 = vperm.xlu1 %7570, %v158_v30   ;;  %v833_v30 = vmul.f32 %v8646_v54, %v379_v53 }
 0x299   :  { %v1035_v60 = vadd.f32 %v9660_v25, %v904_v57  ;;  %v1593_v57 = vmul.f32 %v8656_v59, %v12141_v4 }
 0x29a   :  { %v964_v34 = vadd.f32 %v9660_v25, %v833_v30 }
 0x29b   :  { %v1504_v14 = vpop.permute.xlu1 %1503 }
 0x29c   :  { %v1664_v61 = vmul.f32 %v8656_v59, %v1504_v14  ;;  %7571 = vset.pattern.permute.xlu1 %v12106_v32  ;;  %v1718_v30 = vadd.f32 %v1593_v57, %v964_v34 }
 0x29d   :  { %423 = vperm.xlu1 %7571, %v9552_v22  }
 0x29e   :  { %v1789_v24 = vadd.f32 %v1664_v61, %v1035_v60  ;;  %v905_v60 = vmul.f32 %v8646_v54, %v739_v49 }
 0x29f   :  { %v7753_v18 = vpop.eup %7752 }
 0x2a0   :  { %7758 = vtanh.f32 %v1789_v24  ;;  %v9978_v47 = vpop.f32.mrf.mxu0  ;;  %6429 = vmatmul.mubr.msk.f32.gmra.mxu0 %vm1936_vm1, %v7753_v18  ;;  %v374_v40 = vpop.permute.xlu1 %373 }
 0x2a1   :  { %428 = vperm.xlu1 %7571, %v9569_v33   ;;  %6431 = vmatprep.mubr.msk.f32.mxu0 %vm8348_vm0, %v12107_v28  ;;  %v7755_v62 = vpop.eup %7754  ;;  %v832_v32 = vmul.f32 %v8646_v54, %v374_v40 }
 0x2a2   :  { %v6382_v22 = vpop.f32.mrf.mxu0 }
 0x2a3   :  { %v7757_v13 = vpop.eup %7756  ;;  %v963_v61 = vadd.f32 %v9660_v25, %v832_v32 }
 0x2a4   :  { %v9986_v58 = vpop.f32.mrf.mxu0  ;;  %6432 = vmatmul.mubr.msk.f32.gmra.mxu0 %vm1936_vm1, %v7755_v62  ;;  %6648 = vmatmul.mubr.msk.f32.gmra.mxu1 %vm1936_vm1, %v7757_v13  ;;  %v9993_v33 = vpop.f32.mrf.mxu1  ;;  %v1036_v62 = vadd.f32 %v9660_v25, %v905_v60 }
 0x2a5   :  { %12142 = vst [vmem:[#allocation9_spill] sm:$0xff] %v9993_v33  ;;  %433 = vperm.xlu1 %7571, %v9587_v37   ;;  %v1216_v14 = vpop.permute.xlu1 %1215  ;;  %6650 = vmatprep.mubr.msk.f32.mxu1 %vm8348_vm0, %v12107_v28 }
 0x2a6   :  { %v1592_v24 = vmul.f32 %v8656_v59, %v1216_v14  ;;  %v6385_v18 = vpop.f32.mrf.mxu0  ;;  %6434 = vmatprep.mubr.msk.f32.mxu0 %vm8348_vm0, %v12107_v28  ;;  %v6601_v53 = vpop.f32.mrf.mxu1 }
 0x2a8   :  { %v1717_v40 = vadd.f32 %v1592_v24, %v963_v61 }
 0x2a9   :  { %438 = vperm.xlu1 %7571, %v9613_v55   ;;  %v1508_v37 = vpop.permute.xlu1 %1507  ;;  %v749_v55 = vpop.permute.xlu0 %748 }
 0x2aa   :  { %7760 = vtanh.f32 %v1717_v40  ;;  %v1665_v22 = vmul.f32 %v8656_v59, %v1508_v37 }
 0x2ab   :  { %7762 = vtanh.f32 %v1718_v30 }
 0x2ac   :  { %v1790_v49 = vadd.f32 %v1665_v22, %v1036_v62 }
 0x2ad   :  { %v7759_v13 = vpop.eup %7758  ;;  %443 = vperm.xlu1 %7571, %v9626_v27   ;;  %v389_v61 = vpop.permute.xlu0 %388 }
 0x2ae   :  { %7764 = vtanh.f32 %v1790_v49  ;;  %v10007_v32 = vpop.f32.mrf.mxu1  ;;  %6651 = vmatmul.mubr.msk.f32.gmra.mxu1 %vm1936_vm1, %v7759_v13  ;;  %v744_v4 = vpop.permute.xlu1 %743  ;;  %v835_v30 = vmul.f32 %v8646_v54, %v389_v61 }
 0x2af   :  { %12143 = vst [vmem:[#allocation34_spill] sm:$0xff] %v10007_v32  ;;  %6653 = vmatprep.mubr.msk.f32.mxu1 %vm8348_vm0, %v12107_v28  ;;  %v906_v57 = vmul.f32 %v8646_v54, %v744_v4  ;;  %v907_v4 = vmul.f32 %v8646_v54, %v749_v55 }
 0x2b0   :  { %v6604_v34 = vpop.f32.mrf.mxu1  ;;  %v966_v13 = vadd.f32 %v9660_v25, %v835_v30 }
 0x2b1   :  { %448 = vperm.xlu1 %7571, %v9640_v48   ;;  %v1037_v60 = vadd.f32 %v9660_v25, %v906_v57 }
 0x2b3   :  { %v1512_v14 = vpop.permute.xlu1 %1511 }
 0x2b4   :  { %v1666_v27 = vmul.f32 %v8656_v59, %v1512_v14 }
 0x2b5   :  { %453 = vperm.xlu1 %7571, %v9654_v50  }
 0x2b6   :  { %v1791_v24 = vadd.f32 %v1666_v27, %v1037_v60  ;;  %v12145_v27 = vld [vmem:[#allocation10_spill] sm:$0xff] }
 0x2b7   :  { %v7761_v18 = vpop.eup %7760  ;;  %v1595_v61 = vmul.f32 %v8656_v59, %v12145_v27 }
 0x2b8   :  { %7766 = vtanh.f32 %v1791_v24  ;;  %v10017_v53 = vpop.f32.mrf.mxu0  ;;  %6435 = vmatmul.mubr.msk.f32.gmra.mxu0 %vm1936_vm1, %v7761_v18  ;;  %v384_v40 = vpop.permute.xlu1 %383 }
 0x2b9   :  { %458 = vperm.xlu1 %7571, %v9672_v63   ;;  %6437 = vmatprep.mubr.msk.f32.mxu0 %vm8348_vm0, %v12107_v28  ;;  %v7763_v48 = vpop.eup %7762  ;;  %v834_v37 = vmul.f32 %v8646_v54, %v384_v40  ;;  %v1038_v40 = vadd.f32 %v9660_v25, %v907_v4 }
 0x2ba   :  { %v6388_v50 = vpop.f32.mrf.mxu0 }
 0x2bb   :  { %v7765_v62 = vpop.eup %7764  ;;  %v965_v57 = vadd.f32 %v9660_v25, %v834_v37 }
 0x2bc   :  { %v10025_v22 = vpop.f32.mrf.mxu0  ;;  %6438 = vmatmul.mubr.msk.f32.gmra.mxu0 %vm1936_vm1, %v7763_v48  ;;  %v10028_v49 = vpop.f32.mrf.mxu1  ;;  %6654 = vmatmul.mubr.msk.f32.gmra.mxu1 %vm1936_vm1, %v7765_v62 }
 0x2bd   :  { %12144 = vst [vmem:[#allocation35_spill] sm:$0xff] %v10028_v49  ;;  %463 = vperm.xlu1 %7571, %v9689_v44   ;;  %v1224_v63 = vpop.permute.xlu1 %1223  ;;  %6656 = vmatprep.mubr.msk.f32.mxu1 %vm8348_vm0, %v12107_v28  ;;  %v1720_v44 = vadd.f32 %v1595_v61, %v966_v13  ;;  %v4330_v13 = vld [vmem:[%s12084_s7 + $0x10] sm:$0xff] }
 0x2be   :  { %v1594_v34 = vmul.f32 %v8656_v59, %v1224_v63  ;;  %v6391_v14 = vpop.f32.mrf.mxu0  ;;  %v6607_v60 = vpop.f32.mrf.mxu1  ;;  %6440 = vmatprep.mubr.msk.f32.mxu0 %vm8348_vm0, %v12107_v28  ;;  %7069 = vmatpush3.msra.mxu0 %v4330_v13 }
 0x2bf   :  { %v759_v63 = vpop.permute.xlu0 %758  ;;  %7070 = vmatprep.subr.mxu0 %v12107_v28 }
 0x2c0   :  { %v1719_v24 = vadd.f32 %v1594_v34, %v965_v57 }
 0x2c1   :  { %468 = vperm.xlu1 %7571, %v9715_v1   ;;  %v1516_v18 = vpop.permute.xlu1 %1515 }
 0x2c2   :  { %7768 = vtanh.f32 %v1719_v24  ;;  %v1667_v55 = vmul.f32 %v8656_v59, %v1516_v18 }
 0x2c3   :  { %7770 = vtanh.f32 %v1720_v44  ;;  %v399_v60 = vpop.permute.xlu0 %398 }
 0x2c4   :  { %v1792_v30 = vadd.f32 %v1667_v55, %v1038_v40  ;;  %v837_v44 = vmul.f32 %v8646_v54, %v399_v60 }
 0x2c5   :  { %v7767_v48 = vpop.eup %7766  ;;  %473 = vperm.xlu1 %7571, %v9725_v38  }
 0x2c6   :  { %7772 = vtanh.f32 %v1792_v30  ;;  %v10046_v37 = vpop.f32.mrf.mxu1  ;;  %6657 = vmatmul.mubr.msk.f32.gmra.mxu1 %vm1936_vm1, %v7767_v48  ;;  %v754_v50 = vpop.permute.xlu1 %753 }
 0x2c7   :  { %12146 = vst [vmem:[#allocation10_spill] sm:$0xff] %v10046_v37  ;;  %6659 = vmatprep.mubr.msk.f32.mxu1 %vm8348_vm0, %v12107_v28  ;;  %v908_v1 = vmul.f32 %v8646_v54, %v754_v50  ;;  %v968_v50 = vadd.f32 %v9660_v25, %v837_v44 }
 0x2c8   :  { %v6610_v62 = vpop.f32.mrf.mxu1 }
 0x2c9   :  { %v1039_v4 = vadd.f32 %v9660_v25, %v908_v1  ;;  %v909_v62 = vmul.f32 %v8646_v54, %v759_v63 }
 0x2cb   :  { %v1520_v38 = vpop.permute.xlu1 %1519 }
 0x2cc   :  { %v1668_v57 = vmul.f32 %v8656_v59, %v1520_v38 }
 0x2ce   :  { %v1793_v34 = vadd.f32 %v1668_v57, %v1039_v4 }
 0x2cf   :  { %v7769_v14 = vpop.eup %7768 }
 0x2d0   :  { %7774 = vtanh.f32 %v1793_v34  ;;  %6441 = vmatmul.mubr.msk.f32.gmra.mxu0 %vm1936_vm1, %v7769_v14  ;;  %v394_v27 = vpop.permute.xlu1 %393  ;;  %v10059_v61 = vpop.f32.mrf.mxu0  ;;  %v12148_v34 = vld [vmem:[#allocation11_spill] sm:$0xff] }
 0x2d1   :  { %6443 = vmatprep.mubr.msk.f32.mxu0 %vm8348_vm0, %v12107_v28  ;;  %v7771_v24 = vpop.eup %7770  ;;  %v836_v40 = vmul.f32 %v8646_v54, %v394_v27  ;;  %v1597_v14 = vmul.f32 %v8656_v59, %v12148_v34 }
 0x2d2   :  { %v6394_v55 = vpop.f32.mrf.mxu0 }
 0x2d3   :  { %v7773_v18 = vpop.eup %7772  ;;  %v967_v13 = vadd.f32 %v9660_v25, %v836_v40  ;;  %v1722_v27 = vadd.f32 %v1597_v14, %v968_v50 }
 0x2d4   :  { %6444 = vmatmul.mubr.msk.f32.gmra.mxu0 %vm1936_vm1, %v7771_v24  ;;  %6660 = vmatmul.mubr.msk.f32.gmra.mxu1 %vm1936_vm1, %v7773_v18  ;;  %v10067_v30 = vpop.f32.mrf.mxu0  ;;  %v1040_v18 = vadd.f32 %v9660_v25, %v909_v62  ;;  %v10092_v62 = vld [vmem:[%s12082_s2] ss:$0 sm:$0xff] }
 0x2d5   :  { %v10069_v48 = vpop.f32.mrf.mxu1  ;;  %6662 = vmatprep.mubr.msk.f32.mxu1 %vm8348_vm0, %v12107_v28  ;;  %6446 = vmatprep.mubr.msk.f32.mxu0 %vm8348_vm0, %v12107_v28  ;;  %v1232_v1 = vpop.permute.xlu1 %1231 }
 0x2d6   :  { %12147 = vst [vmem:[#allocation36_spill] sm:$0xff] %v10069_v48  ;;  %v1596_v38 = vmul.f32 %v8656_v59, %v1232_v1  ;;  %v6397_v4 = vpop.f32.mrf.mxu0  ;;  %v769_v1 = vpop.permute.xlu0 %768 }
 0x2d7   :  { %v6613_v57 = vpop.f32.mrf.mxu1 }
 0x2d8   :  { %v1721_v60 = vadd.f32 %v1596_v38, %v967_v13 }
 0x2d9   :  { %v1524_v24 = vpop.permute.xlu1 %1523 }
 0x2da   :  { %7776 = vtanh.f32 %v1721_v60  ;;  %v1669_v44 = vmul.f32 %v8656_v59, %v1524_v24 }
 0x2db   :  { %7778 = vtanh.f32 %v1722_v27 }
 0x2dc   :  { %v1794_v48 = vadd.f32 %v1669_v44, %v1040_v18 }
 0x2dd   :  { %v7775_v55 = vpop.eup %7774 }
 0x2de   :  { %6663 = vmatmul.mubr.msk.f32.gmra.mxu1 %vm1936_vm1, %v7775_v55  ;;  %v764_v63 = vpop.permute.xlu1 %763  ;;  %7780 = vtanh.f32 %v1794_v48  ;;  %v10084_v40 = vpop.f32.mrf.mxu1 }
 0x2df   :  { %12149 = vst [vmem:[#allocation11_spill] sm:$0xff] %v10084_v40  ;;  %6665 = vmatprep.mubr.msk.f32.mxu1 %vm8348_vm0, %v12107_v28  ;;  %v910_v50 = vmul.f32 %v8646_v54, %v764_v63  ;;  %v409_v48 = vpop.permute.xlu0 %408 }
 0x2e0   :  { %v6616_v13 = vpop.f32.mrf.mxu1  ;;  %v839_v27 = vmul.f32 %v8646_v54, %v409_v48 }
 0x2e1   :  { %v1041_v38 = vadd.f32 %v10092_v62, %v910_v50 }
 0x2e2   :  { %v970_v13 = vadd.f32 %v10092_v62, %v839_v27 }
 0x2e3   :  { %v1528_v25 = vpop.permute.xlu1 %1527 }
 0x2e4   :  { %v1670_v4 = vmul.f32 %v8656_v59, %v1528_v25 }
 0x2e6   :  { %v1795_v57 = vadd.f32 %v1670_v4, %v1041_v38  ;;  %v911_v38 = vmul.f32 %v8646_v54, %v769_v1 }
 0x2e7   :  { %v7777_v34 = vpop.eup %7776 }
 0x2e8   :  { %7782 = vtanh.f32 %v1795_v57  ;;  %v10096_v14 = vpop.f32.mrf.mxu0  ;;  %v404_v60 = vpop.permute.xlu1 %403  ;;  %6447 = vmatmul.mubr.msk.f32.gmra.mxu0 %vm1936_vm1, %v7777_v34  ;;  %v1042_v1 = vadd.f32 %v10092_v62, %v911_v38 }
 0x2e9   :  { %v838_v24 = vmul.f32 %v8646_v54, %v404_v60  ;;  %6449 = vmatprep.mubr.msk.f32.mxu0 %vm8348_vm0, %v12107_v28  ;;  %v7779_v44 = vpop.eup %7778  ;;  %v12151_v60 = vld [vmem:[#allocation12_spill] sm:$0xff] }
 0x2ea   :  { %v6400_v18 = vpop.f32.mrf.mxu0  ;;  %v1599_v27 = vmul.f32 %v8656_v59, %v12151_v60 }
 0x2eb   :  { %v7781_v55 = vpop.eup %7780  ;;  %v969_v4 = vadd.f32 %v10092_v62, %v838_v24 }
 0x2ec   :  { %v10103_v63 = vpop.f32.mrf.mxu0  ;;  %v10105_v50 = vpop.f32.mrf.mxu1  ;;  %6450 = vmatmul.mubr.msk.f32.gmra.mxu0 %vm1936_vm1, %v7779_v44  ;;  %6666 = vmatmul.mubr.msk.f32.gmra.mxu1 %vm1936_vm1, %v7781_v55  ;;  %v1724_v44 = vadd.f32 %v1599_v27, %v970_v13 }
 0x2ed   :  { %12150 = vst [vmem:[#allocation37_spill] sm:$0xff] %v10105_v50  ;;  %v1240_v25 = vpop.permute.xlu1 %1239  ;;  %6668 = vmatprep.mubr.msk.f32.mxu1 %vm8348_vm0, %v12107_v28  ;;  %6452 = vmatprep.mubr.msk.f32.mxu0 %vm8348_vm0, %v12107_v28 }
 0x2ee   :  { %v1598_v48 = vmul.f32 %v8656_v59, %v1240_v25  ;;  %v6403_v57 = vpop.f32.mrf.mxu0  ;;  %v6619_v34 = vpop.f32.mrf.mxu1 }
 0x2ef   :  { %v779_v34 = vpop.permute.xlu0 %778 }
 0x2f0   :  { %v1723_v18 = vadd.f32 %v1598_v48, %v969_v4 }
 0x2f1   :  { %v1532_v55 = vpop.permute.xlu1 %1531 }
 0x2f2   :  { %7784 = vtanh.f32 %v1723_v18  ;;  %v1671_v24 = vmul.f32 %v8656_v59, %v1532_v55 }
 0x2f3   :  { %7786 = vtanh.f32 %v1724_v44  ;;  %v419_v38 = vpop.permute.xlu0 %418 }
 0x2f4   :  { %v1796_v25 = vadd.f32 %v1671_v24, %v1042_v1  ;;  %v4329_v24 = vld [vmem:[%s12084_s7 + $0x8] sm:$0xff] }
 0x2f5   :  { %v7783_v57 = vpop.eup %7782  ;;  %7071 = vmatpush3.msra.mxu0 %v4329_v24 }
 0x2f6   :  { %7788 = vtanh.f32 %v1796_v25  ;;  %v10121_v50 = vpop.f32.mrf.mxu1  ;;  %6669 = vmatmul.mubr.msk.f32.gmra.mxu1 %vm1936_vm1, %v7783_v57  ;;  %v774_v40 = vpop.permute.xlu1 %773  ;;  %7072 = vmatprep.subr.mxu0 %v12107_v28 }
 0x2f7   :  { %12152 = vst [vmem:[#allocation12_spill] sm:$0xff] %v10121_v50  ;;  %6671 = vmatprep.mubr.msk.f32.mxu1 %vm8348_vm0, %v12107_v28  ;;  %v912_v13 = vmul.f32 %v8646_v54, %v774_v40  ;;  %v841_v40 = vmul.f32 %v8646_v54, %v419_v38  ;;  %v1252_v25 = vpop.permute.xlu0 %1251 }
 0x2f8   :  { %v6622_v4 = vpop.f32.mrf.mxu1 }
 0x2f9   :  { %v1043_v60 = vadd.f32 %v10092_v62, %v912_v13  ;;  %v972_v38 = vadd.f32 %v10092_v62, %v841_v40 }
 0x2fb   :  { %v1536_v48 = vpop.permute.xlu1 %1535 }
 0x2fc   :  { %v1672_v27 = vmul.f32 %v8656_v59, %v1536_v48 }
 0x2fe   :  { %v1797_v18 = vadd.f32 %v1672_v27, %v1043_v60 }
 0x2ff   :  { %v7785_v44 = vpop.eup %7784 }
 0x300   :  { %7790 = vtanh.f32 %v1797_v18  ;;  %v10129_v55 = vpop.f32.mrf.mxu0  ;;  %6453 = vmatmul.mubr.msk.f32.gmra.mxu0 %vm1936_vm1, %v7785_v44  ;;  %v414_v1 = vpop.permute.xlu1 %413  ;;  %v1601_v18 = vmul.f32 %v8656_v59, %v1252_v25 }
 0x301   :  { %6455 = vmatprep.mubr.msk.f32.mxu0 %vm8348_vm0, %v12107_v28  ;;  %v7787_v57 = vpop.eup %7786  ;;  %v840_v13 = vmul.f32 %v8646_v54, %v414_v1  ;;  %v1256_v44 = vpop.permute.xlu0 %1255  ;;  %v913_v1 = vmul.f32 %v8646_v54, %v779_v34 }
 0x302   :  { %v6406_v4 = vpop.f32.mrf.mxu0  ;;  %v1726_v40 = vadd.f32 %v1601_v18, %v972_v38 }
 0x303   :  { %v7789_v48 = vpop.eup %7788  ;;  %v1044_v25 = vadd.f32 %v10092_v62, %v913_v1 }
 0x304   :  { %v10140_v60 = vpop.f32.mrf.mxu0  ;;  %6456 = vmatmul.mubr.msk.f32.gmra.mxu0 %vm1936_vm1, %v7787_v57  ;;  %v10143_v27 = vpop.f32.mrf.mxu1  ;;  %6672 = vmatmul.mubr.msk.f32.gmra.mxu1 %vm1936_vm1, %v7789_v48  ;;  %v971_v57 = vadd.f32 %v10092_v62, %v840_v13 }
 0x305   :  { %12153 = vst [vmem:[#allocation38_spill] sm:$0xff] %v10143_v27  ;;  %v1248_v24 = vpop.permute.xlu1 %1247  ;;  %6674 = vmatprep.mubr.msk.f32.mxu1 %vm8348_vm0, %v12107_v28  ;;  %6458 = vmatprep.mubr.msk.f32.mxu0 %vm8348_vm0, %v12107_v28  ;;  %v1260_v32 = vpop.permute.xlu0 %1259 }
 0x306   :  { %v1600_v4 = vmul.f32 %v8656_v59, %v1248_v24  ;;  %v6409_v27 = vpop.f32.mrf.mxu0  ;;  %v6625_v48 = vpop.f32.mrf.mxu1 }
 0x308   :  { %v1725_v50 = vadd.f32 %v1600_v4, %v971_v57 }
 0x309   :  { %v1540_v37 = vpop.permute.xlu1 %1539  ;;  %v1264_v18 = vpop.permute.xlu0 %1263 }
 0x30a   :  { %7792 = vtanh.f32 %v1725_v50  ;;  %v1673_v49 = vmul.f32 %v8656_v59, %v1540_v37 }
 0x30b   :  { %7794 = vtanh.f32 %v1726_v40 }
 0x30c   :  { %v1798_v33 = vadd.f32 %v1673_v49, %v1044_v25 }
 0x30d   :  { %v7791_v0 = vpop.eup %7790 }
 0x30e   :  { %7796 = vtanh.f32 %v1798_v33  ;;  %v10157_v34 = vpop.f32.mrf.mxu1  ;;  %6675 = vmatmul.mubr.msk.f32.gmra.mxu1 %vm1936_vm1, %v7791_v0  ;;  %v784_v13 = vpop.permute.xlu1 %783  ;;  %v10168_v33 = vld [vmem:[%s12085_s4] ss:$0 sm:$0xff] }
 0x30f   :  { %6677 = vmatprep.mubr.msk.f32.mxu1 %vm8348_vm0, %v12107_v28  ;;  %v914_v27 = vmul.f32 %v8646_v54, %v784_v13  ;;  %v1268_v0 = vpop.permute.xlu0 %1267  ;;  %v2379_v57 = vadd.f32 %v10168_v33, %v9343_v35  ;;  %v2384_v35 = vadd.f32 %v10168_v33, %v9506_v41 }
 0x310   :  { %v6628_v38 = vpop.f32.mrf.mxu1 }
 0x311   :  { %v1045_v37 = vadd.f32 %v10092_v62, %v914_v27  ;;  %v1602_v38 = vmul.f32 %v8656_v59, %v1256_v44 }
 0x313   :  { %v1544_v50 = vpop.permute.xlu1 %1543 }
 0x314   :  { %v1674_v49 = vmul.f32 %v8656_v59, %v1544_v50 }
 0x316   :  { %v1799_v24 = vadd.f32 %v1674_v49, %v1045_v37 }
 0x317   :  { %v7793_v1 = vpop.eup %7792 }
 0x318   :  { %7798 = vtanh.f32 %v1799_v24  ;;  %v10172_v4 = vpop.f32.mrf.mxu0  ;;  %6459 = vmatmul.mubr.msk.f32.gmra.mxu0 %vm1936_vm1, %v7793_v1  ;;  %v424_v48 = vpop.permute.xlu1 %423 }
 0x319   :  { %v842_v40 = vmul.f32 %v8646_v54, %v424_v48  ;;  %6461 = vmatprep.mubr.msk.f32.mxu0 %vm8348_vm0, %v12107_v28  ;;  %v7795_v25 = vpop.eup %7794  ;;  %7800 = vtanh.f32 %v2379_v57  ;;  %v1272_v24 = vpop.permute.xlu0 %1271 }
 0x31a   :  { %v6412_v13 = vpop.f32.mrf.mxu0 }
 0x31b   :  { %v7797_v27 = vpop.eup %7796  ;;  %v973_v50 = vadd.f32 %v10092_v62, %v842_v40  ;;  %v2389_v40 = vadd.f32 %v10168_v33, %v9524_v11 }
 0x31c   :  { %v10182_v37 = vpop.f32.mrf.mxu0  ;;  %6462 = vmatmul.mubr.msk.f32.gmra.mxu0 %vm1936_vm1, %v7795_v25  ;;  %v10185_v49 = vpop.f32.mrf.mxu1  ;;  %6678 = vmatmul.mubr.msk.f32.gmra.mxu1 %vm1936_vm1, %v7797_v27  ;;  %v1603_v25 = vmul.f32 %v8656_v59, %v1260_v32 }
 0x31d   :  { %12154 = vst [vmem:[#allocation39_spill] sm:$0xff] %v10185_v49  ;;  %v1727_v1 = vadd.f32 %v1602_v38, %v973_v50  ;;  %v429_v48 = vpop.permute.xlu1 %428  ;;  %6680 = vmatprep.mubr.msk.f32.mxu1 %vm8348_vm0, %v12107_v28  ;;  %6464 = vmatprep.mubr.msk.f32.mxu0 %vm8348_vm0, %v12107_v28  ;;  %v2394_v49 = vadd.f32 %v10168_v33, %v9533_v9 }
 0x31e   :  { %v843_v44 = vmul.f32 %v8646_v54, %v429_v48  ;;  %v6415_v41 = vpop.f32.mrf.mxu0  ;;  %v6631_v57 = vpop.f32.mrf.mxu1  ;;  %v1605_v9 = vmul.f32 %v8656_v59, %v1268_v0 }
 0x31f   :  { %7802 = vtanh.f32 %v1727_v1  ;;  %v1276_v48 = vpop.permute.xlu0 %1275  ;;  %v1604_v41 = vmul.f32 %v8656_v59, %v1264_v18 }
 0x320   :  { %7804 = vtanh.f32 %v2384_v35  ;;  %v974_v13 = vadd.f32 %v10092_v62, %v843_v44 }
 0x321   :  { %v434_v27 = vpop.permute.xlu1 %433  ;;  %7806 = vtanh.f32 %v2389_v40  ;;  %v2399_v40 = vadd.f32 %v10168_v33, %v9542_v36  ;;  %v2404_v36 = vadd.f32 %v10168_v33, %v9558_v10  ;;  %v2409_v10 = vadd.f32 %v10168_v33, %v9572_v43 }
 0x322   :  { %v1728_v38 = vadd.f32 %v1603_v25, %v974_v13  ;;  %v844_v50 = vmul.f32 %v8646_v54, %v434_v27 }
 0x323   :  { %v1280_v27 = vpop.permute.xlu0 %1279 }
 0x324   :  { %7808 = vtanh.f32 %v1728_v38  ;;  %v975_v11 = vadd.f32 %v10092_v62, %v844_v50 }
 0x325   :  { %v7799_v1 = vpop.eup %7798  ;;  %v439_v35 = vpop.permute.xlu1 %438  ;;  %7810 = vtanh.f32 %v2394_v49  ;;  %v1606_v49 = vmul.f32 %v8656_v59, %v1272_v24 }
 0x326   :  { %v1729_v57 = vadd.f32 %v1604_v41, %v975_v11  ;;  %v845_v32 = vmul.f32 %v8646_v54, %v439_v35  ;;  %v10203_v44 = vpop.f32.mrf.mxu1  ;;  %6681 = vmatmul.mubr.msk.f32.gmra.mxu1 %vm1936_vm1, %v7799_v1  ;;  %v7801_v13 = vpop.eup %7800 }
 0x327   :  { %6691 = vmatprep.mubr.msk.f32.mxu1 %vm8348_vm0, %v12107_v28  ;;  %v1284_v24 = vpop.permute.xlu0 %1283 }
 0x328   :  { %7812 = vtanh.f32 %v1729_v57  ;;  %v976_v18 = vadd.f32 %v10092_v62, %v845_v32  ;;  %v6634_v25 = vpop.f32.mrf.mxu1 }
 0x329   :  { %v444_v38 = vpop.permute.xlu1 %443  ;;  %7814 = vtanh.f32 %v2399_v40 }
 0x32a   :  { %v1730_v50 = vadd.f32 %v1605_v9, %v976_v18  ;;  %v846_v41 = vmul.f32 %v8646_v54, %v444_v38  ;;  %6692 = vmatmul.mubr.msk.f32.vlgmr.msra.gmra.mxu1 %vm1936_vm1, %v7801_v13  ;;  %v1607_v9 = vmul.f32 %v8656_v59, %v1276_v48 }
 0x32b   :  { %6694 = vmatprep.mubr.msk.f32.mxu1 %vm8348_vm0, %v12107_v28 }
 0x32c   :  { %v7803_v0 = vpop.eup %7802  ;;  %7816 = vtanh.f32 %v1730_v50  ;;  %v977_v11 = vadd.f32 %v10092_v62, %v846_v41 }
 0x32d   :  { %v7805_v1 = vpop.eup %7804  ;;  %v449_v35 = vpop.permute.xlu1 %448  ;;  %6465 = vmatmul.mubr.msk.f32.gmra.mxu0 %vm1936_vm1, %v7803_v0  ;;  %7818 = vtanh.f32 %v2404_v36  ;;  %v2414_v36 = vadd.f32 %v10168_v33, %v9590_v26  ;;  %v1608_v0 = vmul.f32 %v8656_v59, %v1280_v27  ;;  %v2419_v27 = vadd.f32 %v10168_v33, %v9616_v39 }
 0x32e   :  { %v1731_v57 = vadd.f32 %v1606_v49, %v977_v11  ;;  %v847_v32 = vmul.f32 %v8646_v54, %v449_v35  ;;  %6695 = vmatmul.mubr.msk.f32.gmra.mxu1 %vm1936_vm1, %v7805_v1  ;;  %6467 = vmatprep.mubr.msk.f32.mxu0 %vm8348_vm0, %v12107_v28  ;;  %v7807_v40 = vpop.eup %7806  ;;  %v2424_v39 = vadd.f32 %v10168_v33, %v9628_v51 }
 0x32f   :  { %6697 = vmatprep.mubr.msk.f32.mxu1 %vm8348_vm0, %v12107_v28 }
 0x330   :  { %7820 = vtanh.f32 %v1731_v57  ;;  %v978_v18 = vadd.f32 %v10092_v62, %v847_v32  ;;  %v10231_v25 = vpop.f32.mrf.mxu0  ;;  %v1288_v57 = vpop.permute.xlu0 %1287 }
 0x331   :  { %v7809_v13 = vpop.eup %7808  ;;  %v454_v38 = vpop.permute.xlu1 %453  ;;  %7822 = vtanh.f32 %v2409_v10 }
 0x332   :  { %v1732_v50 = vadd.f32 %v1607_v9, %v978_v18  ;;  %v848_v41 = vmul.f32 %v8646_v54, %v454_v38  ;;  %6468 = vmatmul.mubr.msk.f32.gmra.mxu0 %vm1936_vm1, %v7809_v13  ;;  %v6418_v43 = vpop.f32.mrf.mxu0  ;;  %6698 = vmatmul.mubr.msk.f32.gmra.mxu1 %vm1936_vm1, %v7807_v40  ;;  %v7811_v48 = vpop.eup %7810  ;;  %v1609_v13 = vmul.f32 %v8656_v59, %v1284_v24 }
 0x333   :  { %6470 = vmatprep.mubr.msk.f32.mxu0 %vm8348_vm0, %v12107_v28  ;;  %6700 = vmatprep.mubr.msk.f32.mxu1 %vm8348_vm0, %v12107_v28 }
 0x334   :  { %7824 = vtanh.f32 %v1732_v50  ;;  %v979_v49 = vadd.f32 %v10092_v62, %v848_v41  ;;  %v10244_v11 = vpop.f32.mrf.mxu0  ;;  %v10246_v1 = vpop.f32.mrf.mxu1 }
 0x335   :  { %v7813_v35 = vpop.eup %7812  ;;  %v459_v32 = vpop.permute.xlu1 %458  ;;  %7826 = vtanh.f32 %v2414_v36 }
 0x336   :  { %v1733_v26 = vadd.f32 %v1608_v0, %v979_v49  ;;  %v849_v10 = vmul.f32 %v8646_v54, %v459_v32  ;;  %6471 = vmatmul.mubr.msk.f32.gmra.mxu0 %vm1936_vm1, %v7813_v35  ;;  %v6421_v40 = vpop.f32.mrf.mxu0  ;;  %v6637_v9 = vpop.f32.mrf.mxu1  ;;  %6701 = vmatmul.mubr.msk.f32.gmra.mxu1 %vm1936_vm1, %v7811_v48  ;;  %v1610_v0 = vmul.f32 %v8656_v59, %v1288_v57 }
 0x337   :  { %6473 = vmatprep.mubr.msk.f32.mxu0 %vm8348_vm0, %v12107_v28  ;;  %6703 = vmatprep.mubr.msk.f32.mxu1 %vm8348_vm0, %v12107_v28  ;;  %v7815_v18 = vpop.eup %7814  ;;  %v1292_v48 = vpop.permute.xlu0 %1291  ;;  %v2429_v40 = vadd.f32 %v10168_v33, %v9643_v17  ;;  %v2434_v17 = vadd.f32 %v10168_v33, %v9664_v16 }
 0x338   :  { %7828 = vtanh.f32 %v1733_v26  ;;  %v980_v38 = vadd.f32 %v10092_v62, %v849_v10  ;;  %v1611_v9 = vmul.f32 %v8656_v59, %v1292_v48 }
 0x339   :  { %v7817_v50 = vpop.eup %7816  ;;  %v464_v41 = vpop.permute.xlu1 %463  ;;  %7830 = vtanh.f32 %v2419_v27 }
 0x33a   :  { %v1734_v43 = vadd.f32 %v1609_v13, %v980_v38  ;;  %v850_v36 = vmul.f32 %v8646_v54, %v464_v41  ;;  %6474 = vmatmul.mubr.msk.f32.gmra.mxu0 %vm1936_vm1, %v7817_v50  ;;  %6704 = vmatmul.mubr.msk.f32.gmra.mxu1 %vm1936_vm1, %v7815_v18  ;;  %v7819_v24 = vpop.eup %7818 }
 0x33b   :  { %6476 = vmatprep.mubr.msk.f32.mxu0 %vm8348_vm0, %v12107_v28  ;;  %6706 = vmatprep.mubr.msk.f32.mxu1 %vm8348_vm0, %v12107_v28  ;;  %v1296_v38 = vpop.permute.xlu0 %1295 }
 0x33c   :  { %7832 = vtanh.f32 %v1734_v43  ;;  %v981_v49 = vadd.f32 %v10092_v62, %v850_v36  ;;  %v4328_v36 = vld [vmem:[%s12084_s7] sm:$0xff] }
 0x33d   :  { %v7821_v35 = vpop.eup %7820  ;;  %v469_v32 = vpop.permute.xlu1 %468  ;;  %7834 = vtanh.f32 %v2424_v39  ;;  %7073 = vmatpush3.msra.mxu0 %v4328_v36 }
 0x33e   :  { %v1735_v26 = vadd.f32 %v1610_v0, %v981_v49  ;;  %v851_v10 = vmul.f32 %v8646_v54, %v469_v32  ;;  %6477 = vmatmul.mubr.msk.f32.gmra.mxu0 %vm1936_vm1, %v7821_v35  ;;  %v10272_v51 = vpop.f32.mrf.mxu1  ;;  %6707 = vmatmul.mubr.msk.f32.gmra.mxu1 %vm1936_vm1, %v7819_v24  ;;  %v7823_v57 = vpop.eup %7822 }
 0x33f   :  { %6479 = vmatprep.mubr.msk.f32.mxu0 %vm8348_vm0, %v12107_v28  ;;  %6709 = vmatprep.mubr.msk.f32.mxu1 %vm8348_vm0, %v12107_v28 }
 0x340   :  { %7836 = vtanh.f32 %v1735_v26  ;;  %v982_v27 = vadd.f32 %v10092_v62, %v851_v10  ;;  %v6640_v18 = vpop.f32.mrf.mxu1 }
 0x341   :  { %v7825_v13 = vpop.eup %7824  ;;  %v474_v50 = vpop.permute.xlu1 %473  ;;  %7838 = vtanh.f32 %v2429_v40 }
 0x342   :  { %v1736_v41 = vadd.f32 %v1611_v9, %v982_v27  ;;  %v852_v43 = vmul.f32 %v8646_v54, %v474_v50  ;;  %6480 = vmatmul.mubr.msk.f32.gmra.mxu0 %vm1936_vm1, %v7825_v13  ;;  %6710 = vmatmul.mubr.msk.f32.gmra.mxu1 %vm1936_vm1, %v7823_v57  ;;  %v7827_v39 = vpop.eup %7826  ;;  %v1612_v54 = vmul.f32 %v8656_v59, %v1296_v38 }
 0x343   :  { %6482 = vmatprep.mubr.msk.f32.mxu0 %vm8348_vm0, %v12107_v28  ;;  %6712 = vmatprep.mubr.msk.f32.mxu1 %vm8348_vm0, %v12107_v28  ;;  %v2439_v59 = vadd.f32 %v10168_v33, %v9676_v5  ;;  %v2444_v5 = vadd.f32 %v10168_v33, %v9703_v46  ;;  %v2449_v46 = vadd.f32 %v10168_v33, %v9739_v2 }
 0x344   :  { %7840 = vtanh.f32 %v1736_v41  ;;  %v983_v48 = vadd.f32 %v10092_v62, %v852_v43  ;;  %v2454_v38 = vadd.f32 %v10168_v33, %v9749_v12  ;;  %v2459_v41 = vadd.f32 %v10168_v33, %v9789_v6 }
 0x345   :  { %v7829_v24 = vpop.eup %7828  ;;  %7842 = vtanh.f32 %v2434_v17  ;;  %v2464_v12 = vadd.f32 %v10168_v33, %v9799_v31  ;;  %v2469_v6 = vadd.f32 %v10168_v33, %v9835_v7  ;;  %v2474_v31 = vadd.f32 %v10168_v33, %v9845_v56 }
 0x346   :  { %v1737_v0 = vadd.f32 %v1612_v54, %v983_v48  ;;  %6483 = vmatmul.mubr.msk.f32.gmra.mxu0 %vm1936_vm1, %v7829_v24  ;;  %6713 = vmatmul.mubr.msk.f32.gmra.mxu1 %vm1936_vm1, %v7827_v39  ;;  %v7831_v16 = vpop.eup %7830  ;;  %v2484_v56 = vadd.f32 %v10168_v33, %v9894_v42  ;;  %v2494_v42 = vadd.f32 %v10168_v33, %v9944_v15 }
 0x347   :  { %6485 = vmatprep.mubr.msk.f32.mxu0 %vm8348_vm0, %v12107_v28  ;;  %6715 = vmatprep.mubr.msk.f32.mxu1 %vm8348_vm0, %v12107_v28  ;;  %v2504_v15 = vadd.f32 %v10168_v33, %v9986_v58  ;;  %v2514_v58 = vadd.f32 %v10168_v33, %v10025_v22  ;;  %v2524_v22 = vadd.f32 %v10168_v33, %v10067_v30 }
 0x348   :  { %7844 = vtanh.f32 %v1737_v0  ;;  %v10305_v62 = vpop.f32.mrf.mxu0  ;;  %v2534_v30 = vadd.f32 %v10168_v33, %v10103_v63  ;;  %v2544_v63 = vadd.f32 %v10168_v33, %v10140_v60  ;;  %v2554_v60 = vadd.f32 %v10168_v33, %v10182_v37 }
 0x349   :  { %v7833_v49 = vpop.eup %7832  ;;  %7846 = vtanh.f32 %v2439_v59  ;;  %v2564_v37 = vadd.f32 %v10168_v33, %v10244_v11 }
 0x34a   :  { %6486 = vmatmul.mubr.msk.f32.gmra.mxu0 %vm1936_vm1, %v7833_v49  ;;  %v6424_v35 = vpop.f32.mrf.mxu0  ;;  %6716 = vmatmul.mubr.msk.f32.gmra.mxu1 %vm1936_vm1, %v7831_v16  ;;  %v7835_v32 = vpop.eup %7834  ;;  %7848 = vtanh.f32 %v2444_v5  ;;  %v2479_v49 = vadd.f32 %v10168_v33, %v9881_v23  ;;  %v2489_v23 = vadd.f32 %v10168_v33, %v9934_v45  ;;  %v2499_v45 = vadd.f32 %v10168_v33, %v9978_v47 }
 0x34b   :  { %6488 = vmatprep.mubr.msk.f32.mxu0 %vm8348_vm0, %v12107_v28  ;;  %6718 = vmatprep.mubr.msk.f32.mxu1 %vm8348_vm0, %v12107_v28  ;;  %7850 = vtanh.f32 %v2449_v46 }
 0x34c   :  { %v10315_v26 = vpop.f32.mrf.mxu0  ;;  %v10317_v10 = vpop.f32.mrf.mxu1  ;;  %7852 = vtanh.f32 %v2454_v38 }
 0x34d   :  { %v7837_v40 = vpop.eup %7836  ;;  %7854 = vtanh.f32 %v2459_v41  ;;  %v2574_v11 = vadd.f32 %v10168_v33, %v10315_v26 }
 0x34e   :  { %6489 = vmatmul.mubr.msk.f32.gmra.mxu0 %vm1936_vm1, %v7837_v40  ;;  %v6427_v57 = vpop.f32.mrf.mxu0  ;;  %v6643_v9 = vpop.f32.mrf.mxu1  ;;  %6719 = vmatmul.mubr.msk.f32.gmra.mxu1 %vm1936_vm1, %v7835_v32  ;;  %7856 = vtanh.f32 %v2464_v12 }
 0x34f   :  { %6491 = vmatprep.mubr.msk.f32.mxu0 %vm8348_vm0, %v12107_v28  ;;  %6721 = vmatprep.mubr.msk.f32.mxu1 %vm8348_vm0, %v12107_v28  ;;  %v7839_v27 = vpop.eup %7838  ;;  %7858 = vtanh.f32 %v2469_v6 }
 0x350   :  { %7860 = vtanh.f32 %v2474_v31 }
 0x351   :  { %v7841_v18 = vpop.eup %7840  ;;  %7862 = vtanh.f32 %v2479_v49 }
 0x352   :  { %6492 = vmatmul.mubr.msk.f32.gmra.mxu0 %vm1936_vm1, %v7841_v18  ;;  %6722 = vmatmul.mubr.msk.f32.gmra.mxu1 %vm1936_vm1, %v7839_v27  ;;  %v7843_v13 = vpop.eup %7842  ;;  %7864 = vtanh.f32 %v2484_v56 }
 0x353   :  { %6494 = vmatprep.mubr.msk.f32.mxu0 %vm8348_vm0, %v12107_v28  ;;  %6724 = vmatprep.mubr.msk.f32.mxu1 %vm8348_vm0, %v12107_v28  ;;  %7866 = vtanh.f32 %v2489_v23 }
 0x354   :  { %7868 = vtanh.f32 %v2494_v42 }
 0x355   :  { %v7845_v50 = vpop.eup %7844  ;;  %7870 = vtanh.f32 %v2499_v45 }
 0x356   :  { %6495 = vmatmul.mubr.msk.f32.gmra.mxu0 %vm1936_vm1, %v7845_v50  ;;  %v10336_v2 = vpop.f32.mrf.mxu1  ;;  %6725 = vmatmul.mubr.msk.f32.gmra.mxu1 %vm1936_vm1, %v7843_v13  ;;  %v7847_v17 = vpop.eup %7846  ;;  %7872 = vtanh.f32 %v2504_v15 }
 0x357   :  { %6727 = vmatprep.mubr.msk.f32.mxu1 %vm8348_vm0, %v12107_v28  ;;  %7074 = vmatprep.mubr.msk.f32.mxu0 %vm8348_vm0, %v12107_v28  ;;  %v7849_v36 = vpop.eup %7848 }
 0x358   :  { %v6646_v43 = vpop.f32.mrf.mxu1  ;;  %v7851_v54 = vpop.eup %7850 }
 0x359   :  { %v7853_v16 = vpop.eup %7852  ;;  %v2509_v43 = vadd.f32 %v10168_v33, %v10017_v53  ;;  %v2519_v53 = vadd.f32 %v10168_v33, %v10059_v61  ;;  %v2529_v61 = vadd.f32 %v10168_v33, %v10096_v14 }
 0x35a   :  { %6728 = vmatmul.mubr.msk.f32.gmra.mxu1 %vm1936_vm1, %v7847_v17  ;;  %v7855_v35 = vpop.eup %7854 }
 0x35b   :  { %6730 = vmatprep.mubr.msk.f32.mxu1 %vm8348_vm0, %v12107_v28  ;;  %v7857_v32 = vpop.eup %7856  ;;  %7874 = vtanh.f32 %v2509_v43 }
 0x35c   :  { %v7859_v57 = vpop.eup %7858  ;;  %7876 = vtanh.f32 %v2514_v58 }
 0x35d   :  { %v7861_v9 = vpop.eup %7860  ;;  %7878 = vtanh.f32 %v2519_v53 }
 0x35e   :  { %6731 = vmatmul.mubr.msk.f32.gmra.mxu1 %vm1936_vm1, %v7849_v36  ;;  %v7863_v46 = vpop.eup %7862  ;;  %7880 = vtanh.f32 %v2524_v22 }
 0x35f   :  { %6733 = vmatprep.mubr.msk.f32.mxu1 %vm8348_vm0, %v12107_v28  ;;  %v7865_v50 = vpop.eup %7864  ;;  %7882 = vtanh.f32 %v2529_v61 }
 0x360   :  { %v10355_v39 = vpop.f32.mrf.mxu0  ;;  %v7867_v17 = vpop.eup %7866  ;;  %7884 = vtanh.f32 %v2534_v30 }
 0x361   :  { %v7869_v12 = vpop.eup %7868 }
 0x362   :  { %v6430_v48 = vpop.f32.mrf.mxu0  ;;  %6734 = vmatmul.mubr.msk.f32.gmra.mxu1 %vm1936_vm1, %v7851_v54  ;;  %v7871_v54 = vpop.eup %7870 }
 0x363   :  { %6736 = vmatprep.mubr.msk.f32.mxu1 %vm8348_vm0, %v12107_v28  ;;  %v7873_v48 = vpop.eup %7872 }
 0x364   :  { %v10362_v24 = vpop.f32.mrf.mxu0  ;;  %v10364_v0 = vpop.f32.mrf.mxu1 }
 0x365   :  { %v2584_v26 = vadd.f32 %v10168_v33, %v10362_v24 }
 0x366   :  { %v6433_v59 = vpop.f32.mrf.mxu0  ;;  %v6649_v7 = vpop.f32.mrf.mxu1  ;;  %6737 = vmatmul.mubr.msk.f32.gmra.mxu1 %vm1936_vm1, %v7853_v16 }
 0x367   :  { %6739 = vmatprep.mubr.msk.f32.mxu1 %vm8348_vm0, %v12107_v28 }
 0x368   :  { %v7875_v16 = vpop.eup %7874 }
 0x36a   :  { %6740 = vmatmul.mubr.msk.f32.gmra.mxu1 %vm1936_vm1, %v7855_v35  ;;  %v7877_v35 = vpop.eup %7876 }
 0x36b   :  { %6742 = vmatprep.mubr.msk.f32.mxu1 %vm8348_vm0, %v12107_v28  ;;  %v7879_v23 = vpop.eup %7878 }
 0x36e   :  { %v10376_v5 = vpop.f32.mrf.mxu1  ;;  %6743 = vmatmul.mubr.msk.f32.gmra.mxu1 %vm1936_vm1, %v7857_v32  ;;  %v2539_v32 = vadd.f32 %v10168_v33, %v10129_v55  ;;  %v2549_v55 = vadd.f32 %v10168_v33, %v10172_v4  ;;  %v2559_v4 = vadd.f32 %v10168_v33, %v10231_v25 }
 0x36f   :  { %6745 = vmatprep.mubr.msk.f32.mxu1 %vm8348_vm0, %v12107_v28 }
 0x370   :  { %v6652_v40 = vpop.f32.mrf.mxu1  ;;  %7886 = vtanh.f32 %v2539_v32 }
 0x371   :  { %v7881_v40 = vpop.eup %7880  ;;  %7888 = vtanh.f32 %v2544_v63 }
 0x372   :  { %6746 = vmatmul.mubr.msk.f32.gmra.mxu1 %vm1936_vm1, %v7859_v57  ;;  %7890 = vtanh.f32 %v2549_v55 }
 0x373   :  { %6748 = vmatprep.mubr.msk.f32.mxu1 %vm8348_vm0, %v12107_v28  ;;  %7892 = vtanh.f32 %v2554_v60 }
 0x374   :  { %7894 = vtanh.f32 %v2559_v4 }
 0x375   :  { %7896 = vtanh.f32 %v2564_v37 }
 0x376   :  { %6749 = vmatmul.mubr.msk.f32.gmra.mxu1 %vm1936_vm1, %v7861_v9  ;;  %v7883_v9 = vpop.eup %7882 }
 0x377   :  { %6751 = vmatprep.mubr.msk.f32.mxu1 %vm8348_vm0, %v12107_v28  ;;  %v7885_v45 = vpop.eup %7884 }
 0x378   :  { %v10393_v27 = vpop.f32.mrf.mxu0 }
 0x37a   :  { %v6436_v18 = vpop.f32.mrf.mxu0  ;;  %6752 = vmatmul.mubr.msk.f32.gmra.mxu1 %vm1936_vm1, %v7863_v46 }
 0x37b   :  { %6754 = vmatprep.mubr.msk.f32.mxu1 %vm8348_vm0, %v12107_v28 }
 0x37c   :  { %v10400_v13 = vpop.f32.mrf.mxu0  ;;  %v10402_v38 = vpop.f32.mrf.mxu1 }
 0x37d   :  { %v7887_v46 = vpop.eup %7886  ;;  %v2594_v24 = vadd.f32 %v10168_v33, %v10400_v13 }
 0x37e   :  { %v6439_v41 = vpop.f32.mrf.mxu0  ;;  %v6655_v47 = vpop.f32.mrf.mxu1  ;;  %6755 = vmatmul.mubr.msk.f32.gmra.mxu1 %vm1936_vm1, %v7865_v50 }
 0x37f   :  { %6757 = vmatprep.mubr.msk.f32.mxu1 %vm8348_vm0, %v12107_v28  ;;  %v7889_v50 = vpop.eup %7888 }
 0x380   :  { %v7891_v58 = vpop.eup %7890 }
 0x382   :  { %6758 = vmatmul.mubr.msk.f32.gmra.mxu1 %vm1936_vm1, %v7867_v17  ;;  %v2569_v17 = vadd.f32 %v10168_v33, %v10305_v62  ;;  %v2579_v62 = vadd.f32 %v10168_v33, %v10355_v39  ;;  %v2589_v39 = vadd.f32 %v10168_v33, %v10393_v27 }
 0x383   :  { %6760 = vmatprep.mubr.msk.f32.mxu1 %vm8348_vm0, %v12107_v28 }
 0x384   :  { %7898 = vtanh.f32 %v2569_v17 }
 0x385   :  { %7900 = vtanh.f32 %v2574_v11 }
 0x386   :  { %v10414_v36 = vpop.f32.mrf.mxu1  ;;  %6761 = vmatmul.mubr.msk.f32.gmra.mxu1 %vm1936_vm1, %v7869_v12  ;;  %v7893_v12 = vpop.eup %7892  ;;  %7902 = vtanh.f32 %v2579_v62  ;;  %v10559_v62 = vld [vmem:[%s12086_s6] ss:$0 sm:$0xff] }
 0x387   :  { %6763 = vmatprep.mubr.msk.f32.mxu1 %vm8348_vm0, %v12107_v28  ;;  %7904 = vtanh.f32 %v2584_v26 }
 0x388   :  { %v6658_v6 = vpop.f32.mrf.mxu1  ;;  %7906 = vtanh.f32 %v2589_v39 }
 0x389   :  { %7908 = vtanh.f32 %v2594_v24 }
 0x38a   :  { %6764 = vmatmul.mubr.msk.f32.gmra.mxu1 %vm1936_vm1, %v7871_v54  ;;  %v7895_v54 = vpop.eup %7894 }
 0x38b   :  { %6766 = vmatprep.mubr.msk.f32.mxu1 %vm8348_vm0, %v12107_v28  ;;  %v7897_v22 = vpop.eup %7896 }
 0x38e   :  { %6767 = vmatmul.mubr.msk.f32.gmra.mxu1 %vm1936_vm1, %v7873_v48 }
 0x38f   :  { %6769 = vmatprep.mubr.msk.f32.mxu1 %vm8348_vm0, %v12107_v28 }
 0x390   :  { %v10431_v31 = vpop.f32.mrf.mxu0 }
 0x391   :  { %v7899_v61 = vpop.eup %7898  ;;  %v2599_v27 = vadd.f32 %v10168_v33, %v10431_v31 }
 0x392   :  { %v6442_v59 = vpop.f32.mrf.mxu0  ;;  %6770 = vmatmul.mubr.msk.f32.gmra.mxu1 %vm1936_vm1, %v7875_v16 }
 0x393   :  { %6772 = vmatprep.mubr.msk.f32.mxu1 %vm8348_vm0, %v12107_v28  ;;  %7910 = vtanh.f32 %v2599_v27 }
 0x394   :  { %v10438_v7 = vpop.f32.mrf.mxu0  ;;  %v10440_v49 = vpop.f32.mrf.mxu1 }
 0x395   :  { %v2604_v13 = vadd.f32 %v10168_v33, %v10438_v7 }
 0x396   :  { %v6445_v56 = vpop.f32.mrf.mxu0  ;;  %v6661_v14 = vpop.f32.mrf.mxu1  ;;  %6773 = vmatmul.mubr.msk.f32.gmra.mxu1 %vm1936_vm1, %v7877_v35 }
 0x397   :  { %6775 = vmatprep.mubr.msk.f32.mxu1 %vm8348_vm0, %v12107_v28  ;;  %v7901_v35 = vpop.eup %7900  ;;  %7912 = vtanh.f32 %v2604_v13 }
 0x398   :  { %v7903_v32 = vpop.eup %7902 }
 0x39a   :  { %6776 = vmatmul.mubr.msk.f32.gmra.mxu1 %vm1936_vm1, %v7879_v23  ;;  %v7905_v23 = vpop.eup %7904 }
 0x39b   :  { %6778 = vmatprep.mubr.msk.f32.mxu1 %vm8348_vm0, %v12107_v28  ;;  %v7907_v55 = vpop.eup %7906 }
 0x39e   :  { %v10452_v57 = vpop.f32.mrf.mxu1  ;;  %6779 = vmatmul.mubr.msk.f32.gmra.mxu1 %vm1936_vm1, %v7881_v40 }
 0x39f   :  { %6781 = vmatprep.mubr.msk.f32.mxu1 %vm8348_vm0, %v12107_v28 }
 0x3a0   :  { %v6664_v42 = vpop.f32.mrf.mxu1 }
 0x3a1   :  { %v7909_v42 = vpop.eup %7908 }
 0x3a2   :  { %6782 = vmatmul.mubr.msk.f32.gmra.mxu1 %vm1936_vm1, %v7883_v9 }
 0x3a3   :  { %6784 = vmatprep.mubr.msk.f32.mxu1 %vm8348_vm0, %v12107_v28 }
 0x3a6   :  { %6785 = vmatmul.mubr.msk.f32.gmra.mxu1 %vm1936_vm1, %v7885_v45  ;;  %v7911_v45 = vpop.eup %7910 }
 0x3a7   :  { %6787 = vmatprep.mubr.msk.f32.mxu1 %vm8348_vm0, %v12107_v28  ;;  %v7913_v37 = vpop.eup %7912 }
 0x3a8   :  { %v10469_v18 = vpop.f32.mrf.mxu0 }
 0x3a9   :  { %v2609_v31 = vadd.f32 %v10168_v33, %v10469_v18 }
 0x3aa   :  { %6788 = vmatmul.mubr.msk.f32.gmra.mxu1 %vm1936_vm1, %v7887_v46  ;;  %v6448_v15 = vpop.f32.mrf.mxu0 }
 0x3ab   :  { %6790 = vmatprep.mubr.msk.f32.mxu1 %vm8348_vm0, %v12107_v28  ;;  %7914 = vtanh.f32 %v2609_v31 }
 0x3ac   :  { %v2613_v41 = vpop.f32.mrf.mxu0  ;;  %v10476_v47 = vpop.f32.mrf.mxu1 }
 0x3ad   :  { %v2614_v7 = vadd.f32 %v10168_v33, %v2613_v41 }
 0x3ae   :  { %6791 = vmatmul.mubr.msk.f32.gmra.mxu1 %vm1936_vm1, %v7889_v50  ;;  %v6451_v25 = vpop.f32.mrf.mxu0  ;;  %v6667_v43 = vpop.f32.mrf.mxu1 }
 0x3af   :  { %6793 = vmatprep.mubr.msk.f32.mxu1 %vm8348_vm0, %v12107_v28  ;;  %7916 = vtanh.f32 %v2614_v7 }
 0x3b2   :  { %6794 = vmatmul.mubr.msk.f32.gmra.mxu1 %vm1936_vm1, %v7891_v58 }
 0x3b3   :  { %6796 = vmatprep.mubr.msk.f32.mxu1 %vm8348_vm0, %v12107_v28 }
 0x3b6   :  { %v10488_v53 = vpop.f32.mrf.mxu1  ;;  %6797 = vmatmul.mubr.msk.f32.gmra.mxu1 %vm1936_vm1, %v7893_v12 }
 0x3b7   :  { %6799 = vmatprep.mubr.msk.f32.mxu1 %vm8348_vm0, %v12107_v28 }
 0x3b8   :  { %v6670_v6 = vpop.f32.mrf.mxu1  ;;  %v7915_v43 = vpop.eup %7914 }
 0x3ba   :  { %6800 = vmatmul.mubr.msk.f32.gmra.mxu1 %vm1936_vm1, %v7895_v54 }
 0x3bb   :  { %6802 = vmatprep.mubr.msk.f32.mxu1 %vm8348_vm0, %v12107_v28 }
 0x3bc   :  { %v7917_v58 = vpop.eup %7916 }
 0x3be   :  { %6803 = vmatmul.mubr.msk.f32.gmra.mxu1 %vm1936_vm1, %v7897_v22 }
 0x3bf   :  { %6805 = vmatprep.mubr.msk.f32.mxu1 %vm8348_vm0, %v12107_v28 }
 0x3c0   :  { %v2618_v48 = vpop.f32.mrf.mxu0 }
 0x3c1   :  { %v2619_v9 = vadd.f32 %v10168_v33, %v2618_v48 }
 0x3c2   :  { %v6454_v16 = vpop.f32.mrf.mxu0  ;;  %6806 = vmatmul.mubr.msk.f32.gmra.mxu1 %vm1936_vm1, %v7899_v61 }
 0x3c3   :  { %6808 = vmatprep.mubr.msk.f32.mxu1 %vm8348_vm0, %v12107_v28  ;;  %7918 = vtanh.f32 %v2619_v9 }
 0x3c4   :  { %v2623_v59 = vpop.f32.mrf.mxu0  ;;  %v10510_v30 = vpop.f32.mrf.mxu1 }
 0x3c5   :  { %v2624_v46 = vadd.f32 %v10168_v33, %v2623_v59 }
 0x3c6   :  { %v6457_v56 = vpop.f32.mrf.mxu0  ;;  %v6673_v14 = vpop.f32.mrf.mxu1  ;;  %6809 = vmatmul.mubr.msk.f32.gmra.mxu1 %vm1936_vm1, %v7901_v35 }
 0x3c7   :  { %6811 = vmatprep.mubr.msk.f32.mxu1 %vm8348_vm0, %v12107_v28  ;;  %7920 = vtanh.f32 %v2624_v46 }
 0x3ca   :  { %6812 = vmatmul.mubr.msk.f32.gmra.mxu1 %vm1936_vm1, %v7903_v32 }
 0x3cb   :  { %6814 = vmatprep.mubr.msk.f32.mxu1 %vm8348_vm0, %v12107_v28 }
 0x3ce   :  { %v10522_v63 = vpop.f32.mrf.mxu1  ;;  %6815 = vmatmul.mubr.msk.f32.gmra.mxu1 %vm1936_vm1, %v7905_v23 }
 0x3cf   :  { %6817 = vmatprep.mubr.msk.f32.mxu1 %vm8348_vm0, %v12107_v28 }
 0x3d0   :  { %v6676_v40 = vpop.f32.mrf.mxu1  ;;  %v7919_v6 = vpop.eup %7918 }
 0x3d2   :  { %6818 = vmatmul.mubr.msk.f32.gmra.mxu1 %vm1936_vm1, %v7907_v55 }
 0x3d3   :  { %6820 = vmatprep.mubr.msk.f32.mxu1 %vm8348_vm0, %v12107_v28 }
 0x3d4   :  { %v7921_v39 = vpop.eup %7920 }
 0x3d6   :  { %6821 = vmatmul.mubr.msk.f32.gmra.mxu1 %vm1936_vm1, %v7909_v42 }
 0x3d7   :  { %6823 = vmatprep.mubr.msk.f32.mxu1 %vm8348_vm0, %v12107_v28 }
 0x3d8   :  { %v2628_v60 = vpop.f32.mrf.mxu0 }
 0x3d9   :  { %v2629_v25 = vadd.f32 %v10168_v33, %v2628_v60 }
 0x3da   :  { %v6460_v4 = vpop.f32.mrf.mxu0  ;;  %6824 = vmatmul.mubr.msk.f32.gmra.mxu1 %vm1936_vm1, %v7911_v45 }
 0x3db   :  { %6826 = vmatprep.mubr.msk.f32.mxu1 %vm8348_vm0, %v12107_v28  ;;  %7922 = vtanh.f32 %v2629_v25 }
 0x3dc   :  { %v2633_v18 = vpop.f32.mrf.mxu0  ;;  %v10541_v15 = vpop.f32.mrf.mxu1 }
 0x3dd   :  { %v2634_v17 = vadd.f32 %v10168_v33, %v2633_v18 }
 0x3de   :  { %v6463_v50 = vpop.f32.mrf.mxu0  ;;  %v6679_v41 = vpop.f32.mrf.mxu1  ;;  %6827 = vmatmul.mubr.msk.f32.gmra.mxu1 %vm1936_vm1, %v7913_v37 }
 0x3df   :  { %6829 = vmatprep.mubr.msk.f32.mxu1 %vm8348_vm0, %v12107_v28  ;;  %7924 = vtanh.f32 %v2634_v17 }
 0x3e2   :  { %6830 = vmatmul.mubr.msk.f32.gmra.mxu1 %vm1936_vm1, %v7915_v43 }
 0x3e3   :  { %6832 = vmatprep.mubr.msk.f32.mxu1 %vm8348_vm0, %v12107_v28 }
 0x3e6   :  { %v10551_v11 = vpop.f32.mrf.mxu1  ;;  %6833 = vmatmul.mubr.msk.f32.gmra.mxu1 %vm1936_vm1, %v7917_v58 }
 0x3e7   :  { %6835 = vmatprep.mubr.msk.f32.mxu1 %vm8348_vm0, %v12107_v28 }
 0x3e8   :  { %v6682_v12 = vpop.f32.mrf.mxu1  ;;  %v7923_v56 = vpop.eup %7922 }
 0x3ea   :  { %v3579_v54 = vpop.f32.mrf.mxu1  ;;  %6836 = vmatmul.mubr.msk.f32.gmra.mxu1 %vm1936_vm1, %v7919_v6 }
 0x3eb   :  { %v3580_v26 = vadd.f32 %v10559_v62, %v3579_v54  ;;  %6838 = vmatprep.mubr.msk.f32.mxu1 %vm8348_vm0, %v12107_v28 }
 0x3ec   :  { %v6693_v22 = vpop.f32.mrf.mxu1  ;;  %v7925_v40 = vpop.eup %7924 }
 0x3ed   :  { %7926 = vtanh.f32 %v3580_v26  ;;  %v2638_v48 = vpop.f32.mrf.mxu0 }
 0x3ee   :  { %v2639_v61 = vadd.f32 %v10168_v33, %v2638_v48  ;;  %v3584_v16 = vpop.f32.mrf.mxu1  ;;  %6839 = vmatmul.mubr.msk.f32.gmra.mxu1 %vm1936_vm1, %v7921_v39 }
 0x3ef   :  { %v3585_v24 = vadd.f32 %v10559_v62, %v3584_v16  ;;  %v6466_v59 = vpop.f32.mrf.mxu0  ;;  %6841 = vmatprep.mubr.msk.f32.mxu1 %vm8348_vm0, %v12107_v28 }
 0x3f0   :  { %7928 = vtanh.f32 %v2639_v61  ;;  %v6696_v35 = vpop.f32.mrf.mxu1 }
 0x3f1   :  { %7930 = vtanh.f32 %v3585_v24 }
 0x3f2   :  { %v2643_v14 = vpop.f32.mrf.mxu0  ;;  %v3589_v27 = vpop.f32.mrf.mxu1  ;;  %6842 = vmatmul.mubr.msk.f32.gmra.mxu1 %vm1936_vm1, %v7923_v56 }
 0x3f3   :  { %v2644_v32 = vadd.f32 %v10168_v33, %v2643_v14  ;;  %v3590_v13 = vadd.f32 %v10559_v62, %v3589_v27  ;;  %6844 = vmatprep.mubr.msk.f32.mxu1 %vm8348_vm0, %v12107_v28 }
 0x3f4   :  { %v6469_v23 = vpop.f32.mrf.mxu0  ;;  %v6699_v31 = vpop.f32.mrf.mxu1 }
 0x3f5   :  { %7932 = vtanh.f32 %v2644_v32 }
 0x3f6   :  { %7934 = vtanh.f32 %v3590_v13  ;;  %v2648_v55 = vpop.f32.mrf.mxu0  ;;  %v3594_v7 = vpop.f32.mrf.mxu1  ;;  %6845 = vmatmul.mubr.msk.f32.gmra.mxu1 %vm1936_vm1, %v7925_v40 }
 0x3f7   :  { %v2649_v42 = vadd.f32 %v10168_v33, %v2648_v55  ;;  %v3595_v9 = vadd.f32 %v10559_v62, %v3594_v7  ;;  %6847 = vmatprep.mubr.msk.f32.mxu1 %vm8348_vm0, %v12107_v28 }
 0x3f8   :  { %v6472_v60 = vpop.f32.mrf.mxu0  ;;  %v6702_v45 = vpop.f32.mrf.mxu1 }
 0x3f9   :  { %7936 = vtanh.f32 %v2649_v42 }
 0x3fa   :  { %v7927_v4 = vpop.eup %7926  ;;  %7938 = vtanh.f32 %v3595_v9  ;;  %v2653_v46 = vpop.f32.mrf.mxu0 }
 0x3fb   :  { %v3599_v18 = vpop.f32.mrf.mxu1  ;;  %v2654_v37 = vadd.f32 %v10168_v33, %v2653_v46  ;;  %7075 = vmatmul.mubr.msk.f32.vlgmr.msra.gmra.mxu0 %vm1936_vm1, %v7927_v4 }
 0x3fc   :  { %v3600_v50 = vadd.f32 %v10559_v62, %v3599_v18  ;;  %v6475_v41 = vpop.f32.mrf.mxu0  ;;  %7077 = vmatprep.mubr.msk.f32.mxu0 %vm8348_vm0, %v12107_v28 }
 0x3fd   :  { %v6705_v25 = vpop.f32.mrf.mxu1  ;;  %v7929_v43 = vpop.eup %7928  ;;  %7940 = vtanh.f32 %v2654_v37 }
 0x3fe   :  { %v7931_v17 = vpop.eup %7930  ;;  %7942 = vtanh.f32 %v3600_v50  ;;  %v2658_v58 = vpop.f32.mrf.mxu0  ;;  %6848 = vmatmul.mubr.msk.f32.gmra.mxu1 %vm1936_vm1, %v7929_v43 }
 0x3ff   :  { %v3604_v12 = vpop.f32.mrf.mxu1  ;;  %v2659_v6 = vadd.f32 %v10168_v33, %v2658_v58  ;;  %7078 = vmatmul.mubr.msk.f32.gmra.mxu0 %vm1936_vm1, %v7931_v17  ;;  %6850 = vmatprep.mubr.msk.f32.mxu1 %vm8348_vm0, %v12107_v28  ;;  %v10596_v33 = vld [vmem:[%s12085_s4] ss:$0 sm:$0xff] }
 0x400   :  { %v3605_v54 = vadd.f32 %v10559_v62, %v3604_v12  ;;  %v6478_v26 = vpop.f32.mrf.mxu0  ;;  %7080 = vmatprep.mubr.msk.f32.mxu0 %vm8348_vm0, %v12107_v28 }
 0x401   :  { %v6708_v22 = vpop.f32.mrf.mxu1  ;;  %7944 = vtanh.f32 %v2659_v6 }
 0x402   :  { %v7933_v39 = vpop.eup %7932  ;;  %7946 = vtanh.f32 %v3605_v54  ;;  %v2663_v48 = vpop.f32.mrf.mxu0 }
 0x403   :  { %v3609_v61 = vpop.f32.mrf.mxu1  ;;  %v7935_v16 = vpop.eup %7934  ;;  %v2664_v24 = vadd.f32 %v10596_v33, %v2663_v48  ;;  %6851 = vmatmul.mubr.msk.f32.gmra.mxu1 %vm1936_vm1, %v7933_v39 }
 0x404   :  { %v3610_v59 = vadd.f32 %v10559_v62, %v3609_v61  ;;  %v6481_v35 = vpop.f32.mrf.mxu0  ;;  %7081 = vmatmul.mubr.msk.f32.gmra.mxu0 %vm1936_vm1, %v7935_v16  ;;  %6853 = vmatprep.mubr.msk.f32.mxu1 %vm8348_vm0, %v12107_v28 }
 0x405   :  { %v6711_v56 = vpop.f32.mrf.mxu1  ;;  %7948 = vtanh.f32 %v2664_v24  ;;  %7083 = vmatprep.mubr.msk.f32.mxu0 %vm8348_vm0, %v12107_v28 }
 0x406   :  { %v7937_v14 = vpop.eup %7936  ;;  %7950 = vtanh.f32 %v3610_v59  ;;  %v2668_v27 = vpop.f32.mrf.mxu0 }
 0x407   :  { %v3614_v32 = vpop.f32.mrf.mxu1  ;;  %v7939_v13 = vpop.eup %7938  ;;  %v2669_v23 = vadd.f32 %v10596_v33, %v2668_v27  ;;  %6854 = vmatmul.mubr.msk.f32.gmra.mxu1 %vm1936_vm1, %v7937_v14 }
 0x408   :  { %v3615_v31 = vadd.f32 %v10559_v62, %v3614_v32  ;;  %v6484_v40 = vpop.f32.mrf.mxu0  ;;  %7084 = vmatmul.mubr.msk.f32.gmra.mxu0 %vm1936_vm1, %v7939_v13  ;;  %6856 = vmatprep.mubr.msk.f32.mxu1 %vm8348_vm0, %v12107_v28  ;;  %v2694_v32 = vadd.f32 %v10596_v33, %v9262_v21  ;;  %v2699_v21 = vadd.f32 %v10596_v33, %v9275_v52 }
 0x409   :  { %v6714_v55 = vpop.f32.mrf.mxu1  ;;  %7952 = vtanh.f32 %v2669_v23  ;;  %7086 = vmatprep.mubr.msk.f32.mxu0 %vm8348_vm0, %v12107_v28  ;;  %v2704_v52 = vadd.f32 %v10596_v33, %v9279_v20  ;;  %v2709_v20 = vadd.f32 %v10596_v33, %v9286_v29  ;;  %v2714_v29 = vadd.f32 %v10596_v33, %v9294_v8 }
 0x40a   :  { %v7941_v7 = vpop.eup %7940  ;;  %7954 = vtanh.f32 %v3615_v31  ;;  %v2673_v42 = vpop.f32.mrf.mxu0  ;;  %v2719_v8 = vadd.f32 %v10596_v33, %v9302_v3  ;;  %v2724_v3 = vadd.f32 %v10596_v33, %v9316_v19 }
 0x40b   :  { %v3619_v9 = vpop.f32.mrf.mxu1  ;;  %v7943_v60 = vpop.eup %7942  ;;  %v2674_v45 = vadd.f32 %v10596_v33, %v2673_v42  ;;  %6857 = vmatmul.mubr.msk.f32.gmra.mxu1 %vm1936_vm1, %v7941_v7 }
 0x40c   :  { %v3620_v4 = vadd.f32 %v10559_v62, %v3619_v9  ;;  %v6487_v46 = vpop.f32.mrf.mxu0  ;;  %7087 = vmatmul.mubr.msk.f32.gmra.mxu0 %vm1936_vm1, %v7943_v60  ;;  %6859 = vmatprep.mubr.msk.f32.mxu1 %vm8348_vm0, %v12107_v28 }
 0x40d   :  { %v6717_v18 = vpop.f32.mrf.mxu1  ;;  %7956 = vtanh.f32 %v2674_v45  ;;  %7089 = vmatprep.mubr.msk.f32.mxu0 %vm8348_vm0, %v12107_v28 }
 0x40e   :  { %v7945_v37 = vpop.eup %7944  ;;  %7958 = vtanh.f32 %v3620_v4  ;;  %v2678_v50 = vpop.f32.mrf.mxu0 }
 0x40f   :  { %v3624_v41 = vpop.f32.mrf.mxu1  ;;  %v7947_v25 = vpop.eup %7946  ;;  %v2679_v43 = vadd.f32 %v10596_v33, %v2678_v50  ;;  %6860 = vmatmul.mubr.msk.f32.gmra.mxu1 %vm1936_vm1, %v7945_v37 }
 0x410   :  { %v3625_v17 = vadd.f32 %v10559_v62, %v3624_v41  ;;  %v6490_v58 = vpop.f32.mrf.mxu0  ;;  %7090 = vmatmul.mubr.msk.f32.gmra.mxu0 %vm1936_vm1, %v7947_v25  ;;  %6862 = vmatprep.mubr.msk.f32.mxu1 %vm8348_vm0, %v12107_v28 }
 0x411   :  { %v6720_v12 = vpop.f32.mrf.mxu1  ;;  %7960 = vtanh.f32 %v2679_v43  ;;  %7092 = vmatprep.mubr.msk.f32.mxu0 %vm8348_vm0, %v12107_v28 }
 0x412   :  { %v7949_v6 = vpop.eup %7948  ;;  %7962 = vtanh.f32 %v3625_v17  ;;  %v2683_v54 = vpop.f32.mrf.mxu0 }
 0x413   :  { %v3629_v26 = vpop.f32.mrf.mxu1  ;;  %v7951_v22 = vpop.eup %7950  ;;  %v2684_v39 = vadd.f32 %v10596_v33, %v2683_v54  ;;  %6863 = vmatmul.mubr.msk.f32.gmra.mxu1 %vm1936_vm1, %v7949_v6 }
 0x414   :  { %v3630_v48 = vadd.f32 %v10559_v62, %v3629_v26  ;;  %v6493_v61 = vpop.f32.mrf.mxu0  ;;  %7093 = vmatmul.mubr.msk.f32.gmra.mxu0 %vm1936_vm1, %v7951_v22  ;;  %6865 = vmatprep.mubr.msk.f32.mxu1 %vm8348_vm0, %v12107_v28 }
 0x415   :  { %v6723_v16 = vpop.f32.mrf.mxu1  ;;  %7964 = vtanh.f32 %v2684_v39  ;;  %7095 = vmatprep.mubr.msk.f32.mxu0 %vm8348_vm0, %v12107_v28 }
 0x416   :  { %v7953_v24 = vpop.eup %7952  ;;  %7966 = vtanh.f32 %v3630_v48  ;;  %v2688_v59 = vpop.f32.mrf.mxu0 }
 0x417   :  { %v3634_v35 = vpop.f32.mrf.mxu1  ;;  %v7955_v56 = vpop.eup %7954  ;;  %v2689_v14 = vadd.f32 %v10596_v33, %v2688_v59  ;;  %6866 = vmatmul.mubr.msk.f32.gmra.mxu1 %vm1936_vm1, %v7953_v24 }
 0x418   :  { %v3635_v27 = vadd.f32 %v10559_v62, %v3634_v35  ;;  %v6496_v13 = vpop.f32.mrf.mxu0  ;;  %7096 = vmatmul.mubr.msk.f32.gmra.mxu0 %vm1936_vm1, %v7955_v56  ;;  %6868 = vmatprep.mubr.msk.f32.mxu1 %vm8348_vm0, %v12107_v28 }
 0x419   :  { %v6726_v23 = vpop.f32.mrf.mxu1  ;;  %7968 = vtanh.f32 %v2689_v14  ;;  %7098 = vmatprep.mubr.msk.f32.mxu0 %vm8348_vm0, %v12107_v28  ;;  %v12155_v13 = vld [vmem:[#allocation13_spill] sm:$0xff] }
 0x41a   :  { %v7957_v31 = vpop.eup %7956  ;;  %7970 = vtanh.f32 %v3635_v27  ;;  %v2729_v19 = vadd.f32 %v10596_v33, %v12155_v13  ;;  %v12161_v13 = vld [vmem:[#allocation19_spill] sm:$0xff] }
 0x41b   :  { %v3639_v40 = vpop.f32.mrf.mxu1  ;;  %v7959_v55 = vpop.eup %7958  ;;  %6869 = vmatmul.mubr.msk.f32.gmra.mxu1 %vm1936_vm1, %v7957_v31  ;;  %7972 = vtanh.f32 %v2694_v32 }
 0x41c   :  { %v3640_v7 = vadd.f32 %v10559_v62, %v3639_v40  ;;  %7099 = vmatmul.mubr.msk.f32.gmra.mxu0 %vm1936_vm1, %v7959_v55  ;;  %6871 = vmatprep.mubr.msk.f32.mxu1 %vm8348_vm0, %v12107_v28  ;;  %v14_v40 = vstv %s12087_s8 }
 0x41d   :  { %v6729_v42 = vpop.f32.mrf.mxu1  ;;  %7101 = vmatprep.mubr.msk.f32.mxu0 %vm8348_vm0, %v12107_v28  ;;  %15 = vst [vmem:[#allocation2] sm:$0x1] %v14_v40 }
 0x41e   :  { %7974 = vtanh.f32 %v3640_v7  ;;  %v7961_v9 = vpop.eup %7960  ;;  %v12156_v42 = vld [vmem:[#allocation14_spill] sm:$0xff] }
 0x41f   :  { %v3644_v60 = vpop.f32.mrf.mxu1  ;;  %v7963_v45 = vpop.eup %7962  ;;  %6872 = vmatmul.mubr.msk.f32.gmra.mxu1 %vm1936_vm1, %v7961_v9  ;;  %7976 = vtanh.f32 %v2699_v21  ;;  %v2734_v9 = vadd.f32 %v10596_v33, %v12156_v42 }
 0x420   :  { %v3645_v4 = vadd.f32 %v10559_v62, %v3644_v60  ;;  %7102 = vmatmul.mubr.msk.f32.gmra.mxu0 %vm1936_vm1, %v7963_v45  ;;  %6874 = vmatprep.mubr.msk.f32.mxu1 %vm8348_vm0, %v12107_v28 }
 0x421   :  { %v6732_v46 = vpop.f32.mrf.mxu1  ;;  %7104 = vmatprep.mubr.msk.f32.mxu0 %vm8348_vm0, %v12107_v28 }
 0x422   :  { %7978 = vtanh.f32 %v3645_v4  ;;  %v7965_v18 = vpop.eup %7964 }
 0x423   :  { %v3649_v37 = vpop.f32.mrf.mxu1  ;;  %v7967_v50 = vpop.eup %7966  ;;  %6875 = vmatmul.mubr.msk.f32.gmra.mxu1 %vm1936_vm1, %v7965_v18  ;;  %7980 = vtanh.f32 %v2704_v52  ;;  %v12157_v18 = vld [vmem:[#allocation15_spill] sm:$0xff] }
 0x424   :  { %v3650_v41 = vadd.f32 %v10559_v62, %v3649_v37  ;;  %7105 = vmatmul.mubr.msk.f32.gmra.mxu0 %vm1936_vm1, %v7967_v50  ;;  %6877 = vmatprep.mubr.msk.f32.mxu1 %vm8348_vm0, %v12107_v28  ;;  %v2739_v37 = vadd.f32 %v10596_v33, %v12157_v18 }
 0x425   :  { %v6735_v25 = vpop.f32.mrf.mxu1  ;;  %7107 = vmatprep.mubr.msk.f32.mxu0 %vm8348_vm0, %v12107_v28 }
 0x426   :  { %7982 = vtanh.f32 %v3650_v41  ;;  %v7969_v43 = vpop.eup %7968 }
 0x427   :  { %v3654_v17 = vpop.f32.mrf.mxu1  ;;  %v7971_v58 = vpop.eup %7970  ;;  %6878 = vmatmul.mubr.msk.f32.gmra.mxu1 %vm1936_vm1, %v7969_v43  ;;  %7984 = vtanh.f32 %v2709_v20 }
 0x428   :  { %v3655_v12 = vadd.f32 %v10559_v62, %v3654_v17  ;;  %7108 = vmatmul.mubr.msk.f32.gmra.mxu0 %vm1936_vm1, %v7971_v58  ;;  %6880 = vmatprep.mubr.msk.f32.mxu1 %vm8348_vm0, %v12107_v28  ;;  %v7973_v54 = vpop.eup %7972  ;;  %v12158_v17 = vld [vmem:[#allocation16_spill] sm:$0xff] }
 0x429   :  { %v6738_v6 = vpop.f32.mrf.mxu1  ;;  %7110 = vmatprep.mubr.msk.f32.mxu0 %vm8348_vm0, %v12107_v28  ;;  %v2744_v58 = vadd.f32 %v10596_v33, %v12158_v17 }
 0x42a   :  { %7986 = vtanh.f32 %v3655_v12 }
 0x42b   :  { %v7975_v26 = vpop.eup %7974  ;;  %v3659_v22 = vpop.f32.mrf.mxu1  ;;  %6881 = vmatmul.mubr.msk.f32.gmra.mxu1 %vm1936_vm1, %v7973_v54  ;;  %7988 = vtanh.f32 %v2714_v29 }
 0x42c   :  { %v3660_v39 = vadd.f32 %v10559_v62, %v3659_v22  ;;  %7111 = vmatmul.mubr.msk.f32.gmra.mxu0 %vm1936_vm1, %v7975_v26  ;;  %6883 = vmatprep.mubr.msk.f32.mxu1 %vm8348_vm0, %v12107_v28  ;;  %v7977_v61 = vpop.eup %7976  ;;  %v12159_v22 = vld [vmem:[#allocation17_spill] sm:$0xff] }
 0x42d   :  { %v6741_v48 = vpop.f32.mrf.mxu1  ;;  %7113 = vmatprep.mubr.msk.f32.mxu0 %vm8348_vm0, %v12107_v28 }
 0x42e   :  { %7990 = vtanh.f32 %v3660_v39  ;;  %v2749_v39 = vadd.f32 %v10596_v33, %v12159_v22 }
 0x42f   :  { %v7979_v16 = vpop.eup %7978  ;;  %v3664_v24 = vpop.f32.mrf.mxu1  ;;  %6884 = vmatmul.mubr.msk.f32.gmra.mxu1 %vm1936_vm1, %v7977_v61  ;;  %7992 = vtanh.f32 %v2719_v8 }
 0x430   :  { %v3665_v59 = vadd.f32 %v10559_v62, %v3664_v24  ;;  %7114 = vmatmul.mubr.msk.f32.gmra.mxu0 %vm1936_vm1, %v7979_v16  ;;  %6886 = vmatprep.mubr.msk.f32.mxu1 %vm8348_vm0, %v12107_v28  ;;  %v7981_v56 = vpop.eup %7980 }
 0x431   :  { %v6744_v35 = vpop.f32.mrf.mxu1  ;;  %7116 = vmatprep.mubr.msk.f32.mxu0 %vm8348_vm0, %v12107_v28 }
 0x432   :  { %7994 = vtanh.f32 %v3665_v59  ;;  %v12160_v59 = vld [vmem:[#allocation18_spill] sm:$0xff] }
 0x433   :  { %v7983_v14 = vpop.eup %7982  ;;  %v3669_v27 = vpop.f32.mrf.mxu1  ;;  %6887 = vmatmul.mubr.msk.f32.gmra.mxu1 %vm1936_vm1, %v7981_v56  ;;  %7996 = vtanh.f32 %v2724_v3  ;;  %v2754_v3 = vadd.f32 %v10596_v33, %v12160_v59 }
 0x434   :  { %v3670_v32 = vadd.f32 %v10559_v62, %v3669_v27  ;;  %7117 = vmatmul.mubr.msk.f32.gmra.mxu0 %vm1936_vm1, %v7983_v14  ;;  %6889 = vmatprep.mubr.msk.f32.mxu1 %vm8348_vm0, %v12107_v28  ;;  %v7985_v31 = vpop.eup %7984 }
 0x435   :  { %v6747_v23 = vpop.f32.mrf.mxu1  ;;  %7119 = vmatprep.mubr.msk.f32.mxu0 %vm8348_vm0, %v12107_v28 }
 0x436   :  { %7998 = vtanh.f32 %v3670_v32 }
 0x437   :  { %v7987_v55 = vpop.eup %7986  ;;  %v3674_v7 = vpop.f32.mrf.mxu1  ;;  %6890 = vmatmul.mubr.msk.f32.gmra.mxu1 %vm1936_vm1, %v7985_v31  ;;  %8000 = vtanh.f32 %v2729_v19  ;;  %v2759_v19 = vadd.f32 %v10596_v33, %v12161_v13 }
 0x438   :  { %v3675_v21 = vadd.f32 %v10559_v62, %v3674_v7  ;;  %7120 = vmatmul.mubr.msk.f32.gmra.mxu0 %vm1936_vm1, %v7987_v55  ;;  %6892 = vmatprep.mubr.msk.f32.mxu1 %vm8348_vm0, %v12107_v28  ;;  %v7989_v45 = vpop.eup %7988 }
 0x439   :  { %v6750_v60 = vpop.f32.mrf.mxu1  ;;  %7122 = vmatprep.mubr.msk.f32.mxu0 %vm8348_vm0, %v12107_v28 }
 0x43a   :  { %8002 = vtanh.f32 %v3675_v21  ;;  %v12162_v21 = vld [vmem:[#allocation20_spill] sm:$0xff] }
 0x43b   :  { %v7991_v4 = vpop.eup %7990  ;;  %v3679_v52 = vpop.f32.mrf.mxu1  ;;  %6893 = vmatmul.mubr.msk.f32.gmra.mxu1 %vm1936_vm1, %v7989_v45  ;;  %8004 = vtanh.f32 %v2734_v9  ;;  %v2764_v42 = vadd.f32 %v10596_v33, %v12162_v21 }
 0x43c   :  { %v3680_v46 = vadd.f32 %v10559_v62, %v3679_v52  ;;  %7123 = vmatmul.mubr.msk.f32.gmra.mxu0 %vm1936_vm1, %v7991_v4  ;;  %6895 = vmatprep.mubr.msk.f32.mxu1 %vm8348_vm0, %v12107_v28  ;;  %v7993_v41 = vpop.eup %7992 }
 0x43d   :  { %v6753_v50 = vpop.f32.mrf.mxu1  ;;  %7125 = vmatprep.mubr.msk.f32.mxu0 %vm8348_vm0, %v12107_v28 }
 0x43e   :  { %8006 = vtanh.f32 %v3680_v46  ;;  %v12163_v46 = vld [vmem:[#allocation21_spill] sm:$0xff] }
 0x43f   :  { %v7995_v20 = vpop.eup %7994  ;;  %v3684_v25 = vpop.f32.mrf.mxu1  ;;  %6896 = vmatmul.mubr.msk.f32.gmra.mxu1 %vm1936_vm1, %v7993_v41  ;;  %8008 = vtanh.f32 %v2739_v37  ;;  %v2769_v18 = vadd.f32 %v10596_v33, %v12163_v46 }
 0x440   :  { %v3685_v43 = vadd.f32 %v10559_v62, %v3684_v25  ;;  %7126 = vmatmul.mubr.msk.f32.gmra.mxu0 %vm1936_vm1, %v7995_v20  ;;  %6898 = vmatprep.mubr.msk.f32.mxu1 %vm8348_vm0, %v12107_v28  ;;  %v7997_v29 = vpop.eup %7996 }
 0x441   :  { %v6756_v12 = vpop.f32.mrf.mxu1  ;;  %7128 = vmatprep.mubr.msk.f32.mxu0 %vm8348_vm0, %v12107_v28 }
 0x442   :  { %8010 = vtanh.f32 %v3685_v43  ;;  %v12164_v43 = vld [vmem:[#allocation22_spill] sm:$0xff] }
 0x443   :  { %v7999_v6 = vpop.eup %7998  ;;  %v3689_v54 = vpop.f32.mrf.mxu1  ;;  %6899 = vmatmul.mubr.msk.f32.gmra.mxu1 %vm1936_vm1, %v7997_v29  ;;  %8012 = vtanh.f32 %v2744_v58  ;;  %v2774_v17 = vadd.f32 %v10596_v33, %v12164_v43 }
 0x444   :  { %v3690_v26 = vadd.f32 %v10559_v62, %v3689_v54  ;;  %7129 = vmatmul.mubr.msk.f32.gmra.mxu0 %vm1936_vm1, %v7999_v6  ;;  %6901 = vmatprep.mubr.msk.f32.mxu1 %vm8348_vm0, %v12107_v28  ;;  %v8001_v48 = vpop.eup %8000 }
 0x445   :  { %v6759_v8 = vpop.f32.mrf.mxu1  ;;  %7131 = vmatprep.mubr.msk.f32.mxu0 %vm8348_vm0, %v12107_v28 }
 0x446   :  { %8014 = vtanh.f32 %v3690_v26  ;;  %v12165_v26 = vld [vmem:[#allocation23_spill] sm:$0xff] }
 0x447   :  { %v8003_v61 = vpop.eup %8002  ;;  %v3694_v16 = vpop.f32.mrf.mxu1  ;;  %6902 = vmatmul.mubr.msk.f32.gmra.mxu1 %vm1936_vm1, %v8001_v48  ;;  %8016 = vtanh.f32 %v2749_v39  ;;  %v2779_v22 = vadd.f32 %v10596_v33, %v12165_v26 }
 0x448   :  { %v3695_v24 = vadd.f32 %v10559_v62, %v3694_v16  ;;  %7132 = vmatmul.mubr.msk.f32.gmra.mxu0 %vm1936_vm1, %v8003_v61  ;;  %6904 = vmatprep.mubr.msk.f32.mxu1 %vm8348_vm0, %v12107_v28  ;;  %v8005_v56 = vpop.eup %8004 }
 0x449   :  { %v6762_v35 = vpop.f32.mrf.mxu1  ;;  %7134 = vmatprep.mubr.msk.f32.mxu0 %vm8348_vm0, %v12107_v28 }
 0x44a   :  { %8018 = vtanh.f32 %v3695_v24  ;;  %v12166_v24 = vld [vmem:[#allocation24_spill] sm:$0xff] }
 0x44b   :  { %v8007_v14 = vpop.eup %8006  ;;  %v3699_v27 = vpop.f32.mrf.mxu1  ;;  %6905 = vmatmul.mubr.msk.f32.gmra.mxu1 %vm1936_vm1, %v8005_v56  ;;  %8020 = vtanh.f32 %v2754_v3  ;;  %v2784_v59 = vadd.f32 %v10596_v33, %v12166_v24 }
 0x44c   :  { %v3700_v32 = vadd.f32 %v10559_v62, %v3699_v27  ;;  %7135 = vmatmul.mubr.msk.f32.gmra.mxu0 %vm1936_vm1, %v8007_v14  ;;  %6907 = vmatprep.mubr.msk.f32.mxu1 %vm8348_vm0, %v12107_v28  ;;  %v8009_v31 = vpop.eup %8008 }
 0x44d   :  { %v6765_v23 = vpop.f32.mrf.mxu1  ;;  %7137 = vmatprep.mubr.msk.f32.mxu0 %vm8348_vm0, %v12107_v28 }
 0x44e   :  { %8022 = vtanh.f32 %v3700_v32  ;;  %v12167_v32 = vld [vmem:[#allocation25_spill] sm:$0xff] }
 0x44f   :  { %v8011_v40 = vpop.eup %8010  ;;  %v3704_v55 = vpop.f32.mrf.mxu1  ;;  %6908 = vmatmul.mubr.msk.f32.gmra.mxu1 %vm1936_vm1, %v8009_v31  ;;  %8024 = vtanh.f32 %v2759_v19  ;;  %v2789_v13 = vadd.f32 %v10596_v33, %v12167_v32 }
 0x450   :  { %v3705_v7 = vadd.f32 %v10559_v62, %v3704_v55  ;;  %7138 = vmatmul.mubr.msk.f32.gmra.mxu0 %vm1936_vm1, %v8011_v40  ;;  %6910 = vmatprep.mubr.msk.f32.mxu1 %vm8348_vm0, %v12107_v28  ;;  %v8013_v60 = vpop.eup %8012 }
 0x451   :  { %v6768_v9 = vpop.f32.mrf.mxu1  ;;  %7140 = vmatprep.mubr.msk.f32.mxu0 %vm8348_vm0, %v12107_v28 }
 0x452   :  { %8026 = vtanh.f32 %v3705_v7  ;;  %v12168_v7 = vld [vmem:[#allocation26_spill] sm:$0xff] }
 0x453   :  { %v8015_v45 = vpop.eup %8014  ;;  %v3709_v4 = vpop.f32.mrf.mxu1  ;;  %6911 = vmatmul.mubr.msk.f32.gmra.mxu1 %vm1936_vm1, %v8013_v60  ;;  %8028 = vtanh.f32 %v2764_v42  ;;  %v2794_v21 = vadd.f32 %v10596_v33, %v12168_v7 }
 0x454   :  { %v3710_v52 = vadd.f32 %v10559_v62, %v3709_v4  ;;  %7141 = vmatmul.mubr.msk.f32.gmra.mxu0 %vm1936_vm1, %v8015_v45  ;;  %6913 = vmatprep.mubr.msk.f32.mxu1 %vm8348_vm0, %v12107_v28  ;;  %v8017_v50 = vpop.eup %8016 }
 0x455   :  { %v6771_v37 = vpop.f32.mrf.mxu1  ;;  %7143 = vmatprep.mubr.msk.f32.mxu0 %vm8348_vm0, %v12107_v28 }
 0x456   :  { %8030 = vtanh.f32 %v3710_v52  ;;  %v12169_v52 = vld [vmem:[#allocation27_spill] sm:$0xff] }
 0x457   :  { %v8019_v41 = vpop.eup %8018  ;;  %v3714_v20 = vpop.f32.mrf.mxu1  ;;  %6914 = vmatmul.mubr.msk.f32.gmra.mxu1 %vm1936_vm1, %v8017_v50  ;;  %8032 = vtanh.f32 %v2769_v18  ;;  %v2799_v46 = vadd.f32 %v10596_v33, %v12169_v52 }
 0x458   :  { %v3715_v25 = vadd.f32 %v10559_v62, %v3714_v20  ;;  %7144 = vmatmul.mubr.msk.f32.gmra.mxu0 %vm1936_vm1, %v8019_v41  ;;  %6916 = vmatprep.mubr.msk.f32.mxu1 %vm8348_vm0, %v12107_v28  ;;  %v8021_v12 = vpop.eup %8020 }
 0x459   :  { %v6774_v58 = vpop.f32.mrf.mxu1  ;;  %7146 = vmatprep.mubr.msk.f32.mxu0 %vm8348_vm0, %v12107_v28 }
 0x45a   :  { %8034 = vtanh.f32 %v3715_v25  ;;  %v12170_v25 = vld [vmem:[#allocation28_spill] sm:$0xff] }
 0x45b   :  { %v8023_v29 = vpop.eup %8022  ;;  %v3719_v6 = vpop.f32.mrf.mxu1  ;;  %6917 = vmatmul.mubr.msk.f32.gmra.mxu1 %vm1936_vm1, %v8021_v12  ;;  %8036 = vtanh.f32 %v2774_v17  ;;  %v2804_v43 = vadd.f32 %v10596_v33, %v12170_v25 }
 0x45c   :  { %v3720_v54 = vadd.f32 %v10559_v62, %v3719_v6  ;;  %7147 = vmatmul.mubr.msk.f32.gmra.mxu0 %vm1936_vm1, %v8023_v29  ;;  %6919 = vmatprep.mubr.msk.f32.mxu1 %vm8348_vm0, %v12107_v28  ;;  %v8025_v8 = vpop.eup %8024 }
 0x45d   :  { %v6777_v39 = vpop.f32.mrf.mxu1  ;;  %7149 = vmatprep.mubr.msk.f32.mxu0 %vm8348_vm0, %v12107_v28 }
 0x45e   :  { %8038 = vtanh.f32 %v3720_v54  ;;  %v12171_v54 = vld [vmem:[#allocation3_spill] sm:$0xff] }
 0x45f   :  { %v8027_v48 = vpop.eup %8026  ;;  %v3724_v61 = vpop.f32.mrf.mxu1  ;;  %6920 = vmatmul.mubr.msk.f32.gmra.mxu1 %vm1936_vm1, %v8025_v8  ;;  %8040 = vtanh.f32 %v2779_v22  ;;  %v2809_v26 = vadd.f32 %v10596_v33, %v12171_v54 }
 0x460   :  { %v3725_v16 = vadd.f32 %v10559_v62, %v3724_v61  ;;  %7150 = vmatmul.mubr.msk.f32.gmra.mxu0 %vm1936_vm1, %v8027_v48  ;;  %6922 = vmatprep.mubr.msk.f32.mxu1 %vm8348_vm0, %v12107_v28  ;;  %v8029_v35 = vpop.eup %8028 }
 0x461   :  { %v6780_v3 = vpop.f32.mrf.mxu1  ;;  %7152 = vmatprep.mubr.msk.f32.mxu0 %vm8348_vm0, %v12107_v28 }
 0x462   :  { %8042 = vtanh.f32 %v3725_v16  ;;  %v12172_v16 = vld [vmem:[#allocation29_spill] sm:$0xff] }
 0x463   :  { %v8031_v56 = vpop.eup %8030  ;;  %v3729_v14 = vpop.f32.mrf.mxu1  ;;  %6923 = vmatmul.mubr.msk.f32.gmra.mxu1 %vm1936_vm1, %v8029_v35  ;;  %8044 = vtanh.f32 %v2784_v59  ;;  %v2814_v24 = vadd.f32 %v10596_v33, %v12172_v16 }
 0x464   :  { %v3730_v27 = vadd.f32 %v10559_v62, %v3729_v14  ;;  %7153 = vmatmul.mubr.msk.f32.gmra.mxu0 %vm1936_vm1, %v8031_v56  ;;  %6925 = vmatprep.mubr.msk.f32.mxu1 %vm8348_vm0, %v12107_v28  ;;  %v8033_v23 = vpop.eup %8032 }
 0x465   :  { %v6783_v19 = vpop.f32.mrf.mxu1  ;;  %7155 = vmatprep.mubr.msk.f32.mxu0 %vm8348_vm0, %v12107_v28 }
 0x466   :  { %8046 = vtanh.f32 %v3730_v27  ;;  %v12173_v27 = vld [vmem:[#allocation4_spill] sm:$0xff] }
 0x467   :  { %v8035_v31 = vpop.eup %8034  ;;  %v3734_v40 = vpop.f32.mrf.mxu1  ;;  %6926 = vmatmul.mubr.msk.f32.gmra.mxu1 %vm1936_vm1, %v8033_v23  ;;  %8048 = vtanh.f32 %v2789_v13  ;;  %v2819_v32 = vadd.f32 %v10596_v33, %v12173_v27 }
 0x468   :  { %v3735_v55 = vadd.f32 %v10559_v62, %v3734_v40  ;;  %7156 = vmatmul.mubr.msk.f32.gmra.mxu0 %vm1936_vm1, %v8035_v31  ;;  %6928 = vmatprep.mubr.msk.f32.mxu1 %vm8348_vm0, %v12107_v28  ;;  %v8037_v9 = vpop.eup %8036 }
 0x469   :  { %v6786_v42 = vpop.f32.mrf.mxu1  ;;  %7158 = vmatprep.mubr.msk.f32.mxu0 %vm8348_vm0, %v12107_v28 }
 0x46a   :  { %8050 = vtanh.f32 %v3735_v55  ;;  %v12174_v55 = vld [vmem:[#allocation30_spill] sm:$0xff] }
 0x46b   :  { %v8039_v60 = vpop.eup %8038  ;;  %v3739_v45 = vpop.f32.mrf.mxu1  ;;  %6929 = vmatmul.mubr.msk.f32.gmra.mxu1 %vm1936_vm1, %v8037_v9  ;;  %8052 = vtanh.f32 %v2794_v21  ;;  %v2824_v7 = vadd.f32 %v10596_v33, %v12174_v55 }
 0x46c   :  { %v3740_v4 = vadd.f32 %v10559_v62, %v3739_v45  ;;  %7159 = vmatmul.mubr.msk.f32.gmra.mxu0 %vm1936_vm1, %v8039_v60  ;;  %6931 = vmatprep.mubr.msk.f32.mxu1 %vm8348_vm0, %v12107_v28  ;;  %v8041_v37 = vpop.eup %8040 }
 0x46d   :  { %v6789_v18 = vpop.f32.mrf.mxu1  ;;  %7161 = vmatprep.mubr.msk.f32.mxu0 %vm8348_vm0, %v12107_v28 }
 0x46e   :  { %8054 = vtanh.f32 %v3740_v4  ;;  %v12175_v4 = vld [vmem:[#allocation5_spill] sm:$0xff] }
 0x46f   :  { %v8043_v50 = vpop.eup %8042  ;;  %v3744_v41 = vpop.f32.mrf.mxu1  ;;  %6932 = vmatmul.mubr.msk.f32.gmra.mxu1 %vm1936_vm1, %v8041_v37  ;;  %8056 = vtanh.f32 %v2799_v46  ;;  %v2829_v52 = vadd.f32 %v10596_v33, %v12175_v4 }
 0x470   :  { %v3745_v20 = vadd.f32 %v10559_v62, %v3744_v41  ;;  %7162 = vmatmul.mubr.msk.f32.gmra.mxu0 %vm1936_vm1, %v8043_v50  ;;  %6934 = vmatprep.mubr.msk.f32.mxu1 %vm8348_vm0, %v12107_v28  ;;  %v8045_v58 = vpop.eup %8044 }
 0x471   :  { %v6792_v17 = vpop.f32.mrf.mxu1  ;;  %7164 = vmatprep.mubr.msk.f32.mxu0 %vm8348_vm0, %v12107_v28 }
 0x472   :  { %8058 = vtanh.f32 %v3745_v20  ;;  %v12176_v20 = vld [vmem:[#allocation31_spill] sm:$0xff] }
 0x473   :  { %v8047_v12 = vpop.eup %8046  ;;  %v3749_v29 = vpop.f32.mrf.mxu1  ;;  %6935 = vmatmul.mubr.msk.f32.gmra.mxu1 %vm1936_vm1, %v8045_v58  ;;  %8060 = vtanh.f32 %v2804_v43  ;;  %v2834_v25 = vadd.f32 %v10596_v33, %v12176_v20 }
 0x474   :  { %v3750_v6 = vadd.f32 %v10559_v62, %v3749_v29  ;;  %7165 = vmatmul.mubr.msk.f32.gmra.mxu0 %vm1936_vm1, %v8047_v12  ;;  %6937 = vmatprep.mubr.msk.f32.mxu1 %vm8348_vm0, %v12107_v28  ;;  %v8049_v39 = vpop.eup %8048 }
 0x475   :  { %v6795_v22 = vpop.f32.mrf.mxu1  ;;  %7167 = vmatprep.mubr.msk.f32.mxu0 %vm8348_vm0, %v12107_v28 }
 0x476   :  { %8062 = vtanh.f32 %v3750_v6  ;;  %v12177_v6 = vld [vmem:[#allocation6_spill] sm:$0xff] }
 0x477   :  { %v8051_v8 = vpop.eup %8050  ;;  %v3754_v48 = vpop.f32.mrf.mxu1  ;;  %6938 = vmatmul.mubr.msk.f32.gmra.mxu1 %vm1936_vm1, %v8049_v39  ;;  %8064 = vtanh.f32 %v2809_v26  ;;  %v2839_v54 = vadd.f32 %v10596_v33, %v12177_v6 }
 0x478   :  { %v3755_v61 = vadd.f32 %v10559_v62, %v3754_v48  ;;  %7168 = vmatmul.mubr.msk.f32.gmra.mxu0 %vm1936_vm1, %v8051_v8  ;;  %6940 = vmatprep.mubr.msk.f32.mxu1 %vm8348_vm0, %v12107_v28  ;;  %v8053_v3 = vpop.eup %8052 }
 0x479   :  { %v6798_v59 = vpop.f32.mrf.mxu1  ;;  %7170 = vmatprep.mubr.msk.f32.mxu0 %vm8348_vm0, %v12107_v28 }
 0x47a   :  { %8066 = vtanh.f32 %v3755_v61  ;;  %v12178_v61 = vld [vmem:[#allocation32_spill] sm:$0xff] }
 0x47b   :  { %v8055_v35 = vpop.eup %8054  ;;  %v3759_v56 = vpop.f32.mrf.mxu1  ;;  %6941 = vmatmul.mubr.msk.f32.gmra.mxu1 %vm1936_vm1, %v8053_v3  ;;  %8068 = vtanh.f32 %v2814_v24  ;;  %v2844_v16 = vadd.f32 %v10596_v33, %v12178_v61 }
 0x47c   :  { %v3760_v14 = vadd.f32 %v10559_v62, %v3759_v56  ;;  %7171 = vmatmul.mubr.msk.f32.gmra.mxu0 %vm1936_vm1, %v8055_v35  ;;  %6943 = vmatprep.mubr.msk.f32.mxu1 %vm8348_vm0, %v12107_v28  ;;  %v8057_v19 = vpop.eup %8056 }
 0x47d   :  { %v6801_v13 = vpop.f32.mrf.mxu1  ;;  %7173 = vmatprep.mubr.msk.f32.mxu0 %vm8348_vm0, %v12107_v28 }
 0x47e   :  { %8070 = vtanh.f32 %v3760_v14  ;;  %v12179_v14 = vld [vmem:[#allocation7_spill] sm:$0xff] }
 0x47f   :  { %v8059_v23 = vpop.eup %8058  ;;  %v3764_v31 = vpop.f32.mrf.mxu1  ;;  %6944 = vmatmul.mubr.msk.f32.gmra.mxu1 %vm1936_vm1, %v8057_v19  ;;  %8072 = vtanh.f32 %v2819_v32  ;;  %v2849_v27 = vadd.f32 %v10596_v33, %v12179_v14 }
 0x480   :  { %v3765_v40 = vadd.f32 %v10559_v62, %v3764_v31  ;;  %7174 = vmatmul.mubr.msk.f32.gmra.mxu0 %vm1936_vm1, %v8059_v23  ;;  %6946 = vmatprep.mubr.msk.f32.mxu1 %vm8348_vm0, %v12107_v28  ;;  %v8061_v42 = vpop.eup %8060 }
 0x481   :  { %v6804_v21 = vpop.f32.mrf.mxu1  ;;  %7176 = vmatprep.mubr.msk.f32.mxu0 %vm8348_vm0, %v12107_v28 }
 0x482   :  { %8074 = vtanh.f32 %v3765_v40  ;;  %v12180_v40 = vld [vmem:[#allocation8_spill] sm:$0xff] }
 0x483   :  { %v8063_v9 = vpop.eup %8062  ;;  %v3769_v60 = vpop.f32.mrf.mxu1  ;;  %6947 = vmatmul.mubr.msk.f32.gmra.mxu1 %vm1936_vm1, %v8061_v42  ;;  %8076 = vtanh.f32 %v2824_v7  ;;  %v2854_v55 = vadd.f32 %v10596_v33, %v12180_v40 }
 0x484   :  { %v3770_v45 = vadd.f32 %v10559_v62, %v3769_v60  ;;  %7177 = vmatmul.mubr.msk.f32.gmra.mxu0 %vm1936_vm1, %v8063_v9  ;;  %6949 = vmatprep.mubr.msk.f32.mxu1 %vm8348_vm0, %v12107_v28  ;;  %v8065_v18 = vpop.eup %8064 }
 0x485   :  { %v6807_v46 = vpop.f32.mrf.mxu1  ;;  %7179 = vmatprep.mubr.msk.f32.mxu0 %vm8348_vm0, %v12107_v28 }
 0x486   :  { %8078 = vtanh.f32 %v3770_v45  ;;  %v12181_v45 = vld [vmem:[#allocation33_spill] sm:$0xff] }
 0x487   :  { %v8067_v37 = vpop.eup %8066  ;;  %v3774_v50 = vpop.f32.mrf.mxu1  ;;  %6950 = vmatmul.mubr.msk.f32.gmra.mxu1 %vm1936_vm1, %v8065_v18  ;;  %8080 = vtanh.f32 %v2829_v52  ;;  %v2859_v4 = vadd.f32 %v10596_v33, %v12181_v45 }
 0x488   :  { %v3775_v41 = vadd.f32 %v10559_v62, %v3774_v50  ;;  %7180 = vmatmul.mubr.msk.f32.gmra.mxu0 %vm1936_vm1, %v8067_v37  ;;  %6952 = vmatprep.mubr.msk.f32.mxu1 %vm8348_vm0, %v12107_v28  ;;  %v8069_v17 = vpop.eup %8068 }
 0x489   :  { %v6810_v43 = vpop.f32.mrf.mxu1  ;;  %7182 = vmatprep.mubr.msk.f32.mxu0 %vm8348_vm0, %v12107_v28 }
 0x48a   :  { %8082 = vtanh.f32 %v3775_v41  ;;  %v12182_v41 = vld [vmem:[#allocation9_spill] sm:$0xff] }
 0x48b   :  { %v8071_v58 = vpop.eup %8070  ;;  %v3779_v12 = vpop.f32.mrf.mxu1  ;;  %6953 = vmatmul.mubr.msk.f32.gmra.mxu1 %vm1936_vm1, %v8069_v17  ;;  %8084 = vtanh.f32 %v2834_v25  ;;  %v2864_v20 = vadd.f32 %v10596_v33, %v12182_v41 }
 0x48c   :  { %v3780_v29 = vadd.f32 %v10559_v62, %v3779_v12  ;;  %7183 = vmatmul.mubr.msk.f32.gmra.mxu0 %vm1936_vm1, %v8071_v58  ;;  %6955 = vmatprep.mubr.msk.f32.mxu1 %vm8348_vm0, %v12107_v28  ;;  %v8073_v22 = vpop.eup %8072 }
 0x48d   :  { %v6813_v26 = vpop.f32.mrf.mxu1  ;;  %7185 = vmatprep.mubr.msk.f32.mxu0 %vm8348_vm0, %v12107_v28 }
 0x48e   :  { %8086 = vtanh.f32 %v3780_v29  ;;  %v12183_v29 = vld [vmem:[#allocation34_spill] sm:$0xff] }
 0x48f   :  { %v8075_v39 = vpop.eup %8074  ;;  %v3784_v8 = vpop.f32.mrf.mxu1  ;;  %6956 = vmatmul.mubr.msk.f32.gmra.mxu1 %vm1936_vm1, %v8073_v22  ;;  %8088 = vtanh.f32 %v2839_v54  ;;  %v2869_v6 = vadd.f32 %v10596_v33, %v12183_v29 }
 0x490   :  { %v3785_v48 = vadd.f32 %v10559_v62, %v3784_v8  ;;  %7186 = vmatmul.mubr.msk.f32.gmra.mxu0 %vm1936_vm1, %v8075_v39  ;;  %6958 = vmatprep.mubr.msk.f32.mxu1 %vm8348_vm0, %v12107_v28  ;;  %v8077_v59 = vpop.eup %8076  ;;  %v10924_v62 = vld [vmem:[%s12086_s6] ss:$0 sm:$0xff] }
 0x491   :  { %v6816_v24 = vpop.f32.mrf.mxu1  ;;  %7188 = vmatprep.mubr.msk.f32.mxu0 %vm8348_vm0, %v12107_v28 }
 0x492   :  { %8090 = vtanh.f32 %v3785_v48  ;;  %v12184_v48 = vld [vmem:[#allocation35_spill] sm:$0xff] }
 0x493   :  { %v8079_v3 = vpop.eup %8078  ;;  %v3789_v35 = vpop.f32.mrf.mxu1  ;;  %6959 = vmatmul.mubr.msk.f32.gmra.mxu1 %vm1936_vm1, %v8077_v59  ;;  %8092 = vtanh.f32 %v2844_v16  ;;  %v2874_v61 = vadd.f32 %v10596_v33, %v12184_v48  ;;  %v10985_v33 = vld [vmem:[%s12085_s4] ss:$0 sm:$0xff] }
 0x494   :  { %v3790_v56 = vadd.f32 %v10924_v62, %v3789_v35  ;;  %7189 = vmatmul.mubr.msk.f32.gmra.mxu0 %vm1936_vm1, %v8079_v3  ;;  %6961 = vmatprep.mubr.msk.f32.mxu1 %vm8348_vm0, %v12107_v28  ;;  %v8081_v13 = vpop.eup %8080 }
 0x495   :  { %v6819_v32 = vpop.f32.mrf.mxu1  ;;  %7191 = vmatprep.mubr.msk.f32.mxu0 %vm8348_vm0, %v12107_v28 }
 0x496   :  { %8094 = vtanh.f32 %v3790_v56  ;;  %v12185_v56 = vld [vmem:[#allocation10_spill] sm:$0xff] }
 0x497   :  { %v8083_v19 = vpop.eup %8082  ;;  %v3794_v23 = vpop.f32.mrf.mxu1  ;;  %6962 = vmatmul.mubr.msk.f32.gmra.mxu1 %vm1936_vm1, %v8081_v13  ;;  %8096 = vtanh.f32 %v2849_v27  ;;  %v2879_v14 = vadd.f32 %v10985_v33, %v12185_v56 }
 0x498   :  { %v3795_v31 = vadd.f32 %v10924_v62, %v3794_v23  ;;  %7192 = vmatmul.mubr.msk.f32.gmra.mxu0 %vm1936_vm1, %v8083_v19  ;;  %6964 = vmatprep.mubr.msk.f32.mxu1 %vm8348_vm0, %v12107_v28  ;;  %v8085_v21 = vpop.eup %8084 }
 0x499   :  { %v6822_v7 = vpop.f32.mrf.mxu1  ;;  %7194 = vmatprep.mubr.msk.f32.mxu0 %vm8348_vm0, %v12107_v28 }
 0x49a   :  { %8098 = vtanh.f32 %v3795_v31  ;;  %v12186_v31 = vld [vmem:[#allocation36_spill] sm:$0xff] }
 0x49b   :  { %v8087_v42 = vpop.eup %8086  ;;  %v3799_v9 = vpop.f32.mrf.mxu1  ;;  %6965 = vmatmul.mubr.msk.f32.gmra.mxu1 %vm1936_vm1, %v8085_v21  ;;  %8100 = vtanh.f32 %v2854_v55  ;;  %v2884_v40 = vadd.f32 %v10985_v33, %v12186_v31 }
 0x49c   :  { %v3800_v60 = vadd.f32 %v10924_v62, %v3799_v9  ;;  %7195 = vmatmul.mubr.msk.f32.gmra.mxu0 %vm1936_vm1, %v8087_v42  ;;  %6967 = vmatprep.mubr.msk.f32.mxu1 %vm8348_vm0, %v12107_v28  ;;  %v8089_v46 = vpop.eup %8088 }
 0x49d   :  { %v6825_v52 = vpop.f32.mrf.mxu1  ;;  %7197 = vmatprep.mubr.msk.f32.mxu0 %vm8348_vm0, %v12107_v28 }
 0x49e   :  { %8102 = vtanh.f32 %v3800_v60  ;;  %v12187_v60 = vld [vmem:[#allocation11_spill] sm:$0xff] }
 0x49f   :  { %v8091_v18 = vpop.eup %8090  ;;  %v3804_v37 = vpop.f32.mrf.mxu1  ;;  %6968 = vmatmul.mubr.msk.f32.gmra.mxu1 %vm1936_vm1, %v8089_v46  ;;  %8104 = vtanh.f32 %v2859_v4  ;;  %v2889_v45 = vadd.f32 %v10985_v33, %v12187_v60 }
 0x4a0   :  { %v3805_v50 = vadd.f32 %v10924_v62, %v3804_v37  ;;  %7198 = vmatmul.mubr.msk.f32.gmra.mxu0 %vm1936_vm1, %v8091_v18  ;;  %6970 = vmatprep.mubr.msk.f32.mxu1 %vm8348_vm0, %v12107_v28  ;;  %v8093_v43 = vpop.eup %8092 }
 0x4a1   :  { %v6828_v25 = vpop.f32.mrf.mxu1  ;;  %7200 = vmatprep.mubr.msk.f32.mxu0 %vm8348_vm0, %v12107_v28 }
 0x4a2   :  { %8106 = vtanh.f32 %v3805_v50 }
 0x4a3   :  { %v8095_v17 = vpop.eup %8094  ;;  %v3809_v58 = vpop.f32.mrf.mxu1  ;;  %6971 = vmatmul.mubr.msk.f32.gmra.mxu1 %vm1936_vm1, %v8093_v43  ;;  %8108 = vtanh.f32 %v2864_v20  ;;  %v12188_v20 = vld [vmem:[#allocation37_spill] sm:$0xff]  ;;  %v11021_v43 = vld [vmem:[#allocation2] ss:$0 sm:$0xff] }
 0x4a4   :  { %v3810_v12 = vadd.f32 %v10924_v62, %v3809_v58  ;;  %7201 = vmatmul.mubr.msk.f32.gmra.mxu0 %vm1936_vm1, %v8095_v17  ;;  %6973 = vmatprep.mubr.msk.f32.mxu1 %vm8348_vm0, %v12107_v28  ;;  %v8097_v26 = vpop.eup %8096  ;;  %v2894_v25 = vadd.f32 %v10985_v33, %v12188_v20 }
 0x4a5   :  { %v6831_v54 = vpop.f32.mrf.mxu1  ;;  %7203 = vmatprep.mubr.msk.f32.mxu0 %vm8348_vm0, %v12107_v28 }
 0x4a6   :  { %8110 = vtanh.f32 %v3810_v12  ;;  %v12189_v12 = vld [vmem:[#allocation12_spill] sm:$0xff] }
 0x4a7   :  { %v8099_v22 = vpop.eup %8098  ;;  %v3814_v39 = vpop.f32.mrf.mxu1  ;;  %6974 = vmatmul.mubr.msk.f32.gmra.mxu1 %vm1936_vm1, %v8097_v26  ;;  %8112 = vtanh.f32 %v2869_v6  ;;  %v2899_v29 = vadd.f32 %v10985_v33, %v12189_v12 }
 0x4a8   :  { %v3815_v8 = vadd.f32 %v10924_v62, %v3814_v39  ;;  %7204 = vmatmul.mubr.msk.f32.gmra.mxu0 %vm1936_vm1, %v8099_v22  ;;  %6976 = vmatprep.mubr.msk.f32.mxu1 %vm8348_vm0, %v12107_v28  ;;  %v8101_v24 = vpop.eup %8100 }
 0x4a9   :  { %v6834_v16 = vpop.f32.mrf.mxu1  ;;  %7206 = vmatprep.mubr.msk.f32.mxu0 %vm8348_vm0, %v12107_v28 }
 0x4aa   :  { %8114 = vtanh.f32 %v3815_v8 }
 0x4ab   :  { %v8103_v59 = vpop.eup %8102  ;;  %v3819_v3 = vpop.f32.mrf.mxu1  ;;  %6977 = vmatmul.mubr.msk.f32.gmra.mxu1 %vm1936_vm1, %v8101_v24  ;;  %8116 = vtanh.f32 %v2874_v61 }
 0x4ac   :  { %v3820_v35 = vadd.f32 %v10924_v62, %v3819_v3  ;;  %7207 = vmatmul.mubr.msk.f32.gmra.mxu0 %vm1936_vm1, %v8103_v59  ;;  %6979 = vmatprep.mubr.msk.f32.mxu1 %vm8348_vm0, %v12107_v28  ;;  %v8105_v32 = vpop.eup %8104  ;;  %v12190_v59 = vld [vmem:[#allocation38_spill] sm:$0xff] }
 0x4ad   :  { %v6837_v27 = vpop.f32.mrf.mxu1  ;;  %7209 = vmatprep.mubr.msk.f32.mxu0 %vm8348_vm0, %v12107_v28  ;;  %v2904_v3 = vadd.f32 %v10985_v33, %v12190_v59 }
 0x4ae   :  { %8118 = vtanh.f32 %v3820_v35 }
 0x4af   :  { %v8107_v13 = vpop.eup %8106  ;;  %v3824_v19 = vpop.f32.mrf.mxu1  ;;  %6980 = vmatmul.mubr.msk.f32.gmra.mxu1 %vm1936_vm1, %v8105_v32  ;;  %8120 = vtanh.f32 %v2879_v14 }
 0x4b0   :  { %v3825_v23 = vadd.f32 %v10924_v62, %v3824_v19  ;;  %7210 = vmatmul.mubr.msk.f32.gmra.mxu0 %vm1936_vm1, %v8107_v13  ;;  %6982 = vmatprep.mubr.msk.f32.mxu1 %vm8348_vm0, %v12107_v28  ;;  %v8109_v7 = vpop.eup %8108  ;;  %v2909_v19 = vadd.f32 %v10985_v33, %v10157_v34 }
 0x4b1   :  { %v6840_v55 = vpop.f32.mrf.mxu1  ;;  %7212 = vmatprep.mubr.msk.f32.mxu0 %vm8348_vm0, %v12107_v28 }
 0x4b2   :  { %8122 = vtanh.f32 %v3825_v23 }
 0x4b3   :  { %v8111_v21 = vpop.eup %8110  ;;  %v3829_v42 = vpop.f32.mrf.mxu1  ;;  %6983 = vmatmul.mubr.msk.f32.gmra.mxu1 %vm1936_vm1, %v8109_v7  ;;  %8124 = vtanh.f32 %v2884_v40 }
 0x4b4   :  { %v3830_v9 = vadd.f32 %v10924_v62, %v3829_v42  ;;  %7213 = vmatmul.mubr.msk.f32.gmra.mxu0 %vm1936_vm1, %v8111_v21  ;;  %6985 = vmatprep.mubr.msk.f32.mxu1 %vm8348_vm0, %v12107_v28  ;;  %v8113_v52 = vpop.eup %8112  ;;  %v12191_v42 = vld [vmem:[#allocation39_spill] sm:$0xff] }
 0x4b5   :  { %v6843_v4 = vpop.f32.mrf.mxu1  ;;  %7215 = vmatprep.mubr.msk.f32.mxu0 %vm8348_vm0, %v12107_v28 }
 0x4b6   :  { %8126 = vtanh.f32 %v3830_v9  ;;  %v2914_v9 = vadd.f32 %v10985_v33, %v12191_v42 }
 0x4b7   :  { %v8115_v46 = vpop.eup %8114  ;;  %v3834_v18 = vpop.f32.mrf.mxu1  ;;  %6986 = vmatmul.mubr.msk.f32.gmra.mxu1 %vm1936_vm1, %v8113_v52  ;;  %8128 = vtanh.f32 %v2889_v45 }
 0x4b8   :  { %v3835_v37 = vadd.f32 %v10924_v62, %v3834_v18  ;;  %7216 = vmatmul.mubr.msk.f32.gmra.mxu0 %vm1936_vm1, %v8115_v46  ;;  %6988 = vmatprep.mubr.msk.f32.mxu1 %vm8348_vm0, %v12107_v28  ;;  %v8117_v41 = vpop.eup %8116 }
 0x4b9   :  { %v6846_v50 = vpop.f32.mrf.mxu1  ;;  %7218 = vmatprep.mubr.msk.f32.mxu0 %vm8348_vm0, %v12107_v28 }
 0x4ba   :  { %8130 = vtanh.f32 %v3835_v37 }
 0x4bb   :  { %v8119_v17 = vpop.eup %8118  ;;  %6989 = vmatmul.mubr.msk.f32.gmra.mxu1 %vm1936_vm1, %v8117_v41  ;;  %v4780_v58 = vpop.f32.mrf.mxu0  ;;  %8132 = vtanh.f32 %v2894_v25  ;;  %v2919_v41 = vadd.f32 %v10985_v33, %v10203_v44  ;;  %v2924_v44 = vadd.f32 %v10985_v33, %v10246_v1  ;;  %v2929_v1 = vadd.f32 %v10985_v33, %v10272_v51 }
 0x4bc   :  { %v4781_v6 = vadd.f32 %v11021_v43, %v4780_v58  ;;  %7219 = vmatmul.mubr.msk.f32.gmra.mxu0 %vm1936_vm1, %v8119_v17  ;;  %6991 = vmatprep.mubr.msk.f32.mxu1 %vm8348_vm0, %v12107_v28  ;;  %v8121_v54 = vpop.eup %8120  ;;  %8134 = vtanh.f32 %v2899_v29 }
 0x4bd   :  { %v7076_v26 = vpop.f32.mrf.mxu0  ;;  %7221 = vmatprep.mubr.msk.f32.mxu0 %vm8348_vm0, %v12107_v28 }
 0x4be   :  { %5405 = vst.msk [vmem:[%s12088_s9] sm:$0xff] %vm5404_vm2, %v4781_v6  ;;  %v3839_v39 = vpop.f32.mrf.mxu1 }
 0x4bf   :  { %v8123_v22 = vpop.eup %8122  ;;  %v3840_v8 = vadd.f32 %v10924_v62, %v3839_v39  ;;  %6992 = vmatmul.mubr.msk.f32.gmra.mxu1 %vm1936_vm1, %v8121_v54  ;;  %v4785_v48 = vpop.f32.mrf.mxu0 }
 0x4c0   :  { %v4786_v61 = vadd.f32 %v11021_v43, %v4785_v48  ;;  %7222 = vmatmul.mubr.msk.f32.gmra.mxu0 %vm1936_vm1, %v8123_v22  ;;  %v6849_v16 = vpop.f32.mrf.mxu1  ;;  %6994 = vmatprep.mubr.msk.f32.mxu1 %vm8348_vm0, %v12107_v28  ;;  %v8125_v24 = vpop.eup %8124 }
 0x4c1   :  { %8136 = vtanh.f32 %v3840_v8  ;;  %v7079_v35 = vpop.f32.mrf.mxu0  ;;  %7224 = vmatprep.mubr.msk.f32.mxu0 %vm8348_vm0, %v12107_v28 }
 0x4c2   :  { %5406 = vst.msk [vmem:[%s12088_s9 + $0x8] sm:$0xff] %vm5404_vm2, %v4786_v61  ;;  %8138 = vtanh.f32 %v2904_v3 }
 0x4c3   :  { %v8127_v56 = vpop.eup %8126  ;;  %v3844_v14 = vpop.f32.mrf.mxu1  ;;  %6995 = vmatmul.mubr.msk.f32.gmra.mxu1 %vm1936_vm1, %v8125_v24 }
 0x4c4   :  { %v3845_v27 = vadd.f32 %v10924_v62, %v3844_v14  ;;  %v4790_v32 = vpop.f32.mrf.mxu0  ;;  %7225 = vmatmul.mubr.msk.f32.gmra.mxu0 %vm1936_vm1, %v8127_v56  ;;  %6997 = vmatprep.mubr.msk.f32.mxu1 %vm8348_vm0, %v12107_v28  ;;  %v8129_v13 = vpop.eup %8128 }
 0x4c5   :  { %v4791_v23 = vadd.f32 %v11021_v43, %v4790_v32  ;;  %v6852_v31 = vpop.f32.mrf.mxu1  ;;  %7227 = vmatprep.mubr.msk.f32.mxu0 %vm8348_vm0, %v12107_v28  ;;  %v2934_v32 = vadd.f32 %v10985_v33, %v10317_v10 }
 0x4c6   :  { %8140 = vtanh.f32 %v3845_v27  ;;  %v7082_v55 = vpop.f32.mrf.mxu0 }
 0x4c7   :  { %v8131_v40 = vpop.eup %8130  ;;  %5407 = vst.msk [vmem:[%s12088_s9 + $0x10] sm:$0xff] %vm5404_vm2, %v4791_v23  ;;  %v3849_v7 = vpop.f32.mrf.mxu1  ;;  %6998 = vmatmul.mubr.msk.f32.gmra.mxu1 %vm1936_vm1, %v8129_v13  ;;  %8142 = vtanh.f32 %v2909_v19 }
 0x4c8   :  { %v3850_v21 = vadd.f32 %v10924_v62, %v3849_v7  ;;  %v4795_v34 = vpop.f32.mrf.mxu0  ;;  %7228 = vmatmul.mubr.msk.f32.gmra.mxu0 %vm1936_vm1, %v8131_v40  ;;  %7000 = vmatprep.mubr.msk.f32.mxu1 %vm8348_vm0, %v12107_v28  ;;  %v8133_v4 = vpop.eup %8132 }
 0x4c9   :  { %v4796_v60 = vadd.f32 %v11021_v43, %v4795_v34  ;;  %v6855_v45 = vpop.f32.mrf.mxu1  ;;  %7230 = vmatprep.mubr.msk.f32.mxu0 %vm8348_vm0, %v12107_v28  ;;  %v8135_v50 = vpop.eup %8134 }
 0x4ca   :  { %8144 = vtanh.f32 %v3850_v21  ;;  %v7085_v52 = vpop.f32.mrf.mxu0  ;;  %v2939_v21 = vadd.f32 %v10985_v33, %v10336_v2 }
 0x4cb   :  { %5408 = vst.msk [vmem:[%s12088_s9 + $0x18] sm:$0xff] %vm5404_vm2, %v4796_v60  ;;  %v3854_v46 = vpop.f32.mrf.mxu1  ;;  %7001 = vmatmul.mubr.msk.f32.gmra.mxu1 %vm1936_vm1, %v8133_v4  ;;  %8146 = vtanh.f32 %v2914_v9 }
 0x4cc   :  { %v3855_v18 = vadd.f32 %v10924_v62, %v3854_v46  ;;  %v4800_v37 = vpop.f32.mrf.mxu0  ;;  %7003 = vmatprep.mubr.msk.f32.mxu1 %vm8348_vm0, %v12107_v28  ;;  %v2944_v46 = vadd.f32 %v10985_v33, %v10364_v0 }
 0x4cd   :  { %v4801_v20 = vadd.f32 %v11021_v43, %v4800_v37  ;;  %v6858_v25 = vpop.f32.mrf.mxu1 }
 0x4ce   :  { %v8137_v17 = vpop.eup %8136  ;;  %8148 = vtanh.f32 %v3855_v18  ;;  %v7088_v58 = vpop.f32.mrf.mxu0 }
 0x4cf   :  { %5409 = vst.msk [vmem:[%s12088_s9 + $0x20] sm:$0xff] %vm5404_vm2, %v4801_v20  ;;  %v3859_v12 = vpop.f32.mrf.mxu1  ;;  %7004 = vmatmul.mubr.msk.f32.gmra.mxu1 %vm1936_vm1, %v8135_v50  ;;  %7231 = vmatmul.mubr.msk.f32.gmra.mxu0 %vm1936_vm1, %v8137_v17  ;;  %8150 = vtanh.f32 %v2919_v41  ;;  %v8139_v22 = vpop.eup %8138  ;;  %v2949_v58 = vadd.f32 %v10985_v33, %v10376_v5 }
 0x4d0   :  { %v3860_v29 = vadd.f32 %v10924_v62, %v3859_v12  ;;  %v4805_v6 = vpop.f32.mrf.mxu0  ;;  %7006 = vmatprep.mubr.msk.f32.mxu1 %vm8348_vm0, %v12107_v28  ;;  %7233 = vmatprep.mubr.msk.f32.mxu0 %vm8348_vm0, %v12107_v28 }
 0x4d1   :  { %v4806_v54 = vadd.f32 %v11021_v43, %v4805_v6  ;;  %v6861_v26 = vpop.f32.mrf.mxu1 }
 0x4d2   :  { %8152 = vtanh.f32 %v3860_v29  ;;  %v7091_v39 = vpop.f32.mrf.mxu0 }
 0x4d3   :  { %v8141_v8 = vpop.eup %8140  ;;  %5410 = vst.msk [vmem:[%s12088_s9 + $0x28] sm:$0xff] %vm5404_vm2, %v4806_v54  ;;  %v3864_v48 = vpop.f32.mrf.mxu1  ;;  %7007 = vmatmul.mubr.msk.f32.gmra.mxu1 %vm1936_vm1, %v8139_v22  ;;  %8154 = vtanh.f32 %v2924_v44  ;;  %v2954_v39 = vadd.f32 %v10985_v33, %v10402_v38 }
 0x4d4   :  { %v3865_v61 = vadd.f32 %v10924_v62, %v3864_v48  ;;  %v4810_v16 = vpop.f32.mrf.mxu0  ;;  %7234 = vmatmul.mubr.msk.f32.gmra.mxu0 %vm1936_vm1, %v8141_v8  ;;  %7009 = vmatprep.mubr.msk.f32.mxu1 %vm8348_vm0, %v12107_v28  ;;  %v8143_v3 = vpop.eup %8142 }
 0x4d5   :  { %v4811_v24 = vadd.f32 %v11021_v43, %v4810_v16  ;;  %v6864_v59 = vpop.f32.mrf.mxu1  ;;  %7236 = vmatprep.mubr.msk.f32.mxu0 %vm8348_vm0, %v12107_v28 }
 0x4d6   :  { %8156 = vtanh.f32 %v3865_v61  ;;  %v7094_v35 = vpop.f32.mrf.mxu0 }
 0x4d7   :  { %v8145_v56 = vpop.eup %8144  ;;  %5411 = vst.msk [vmem:[%s12088_s9 + $0x30] sm:$0xff] %vm5404_vm2, %v4811_v24  ;;  %v3869_v14 = vpop.f32.mrf.mxu1  ;;  %7010 = vmatmul.mubr.msk.f32.gmra.mxu1 %vm1936_vm1, %v8143_v3  ;;  %8158 = vtanh.f32 %v2929_v1  ;;  %v2959_v3 = vadd.f32 %v10985_v33, %v10414_v36 }
 0x4d8   :  { %v3870_v51 = vadd.f32 %v10924_v62, %v3869_v14  ;;  %v4815_v27 = vpop.f32.mrf.mxu0  ;;  %7237 = vmatmul.mubr.msk.f32.gmra.mxu0 %vm1936_vm1, %v8145_v56  ;;  %7012 = vmatprep.mubr.msk.f32.mxu1 %vm8348_vm0, %v12107_v28  ;;  %v8147_v23 = vpop.eup %8146 }
 0x4d9   :  { %v4816_v13 = vadd.f32 %v11021_v43, %v4815_v27  ;;  %v6867_v19 = vpop.f32.mrf.mxu1  ;;  %7239 = vmatprep.mubr.msk.f32.mxu0 %vm8348_vm0, %v12107_v28 }
 0x4da   :  { %8160 = vtanh.f32 %v3870_v51  ;;  %v7097_v31 = vpop.f32.mrf.mxu0  ;;  %v2964_v19 = vadd.f32 %v10985_v33, %v10440_v49 }
 0x4db   :  { %v8149_v40 = vpop.eup %8148  ;;  %5412 = vst.msk [vmem:[%s12088_s9 + $0x38] sm:$0xff] %vm5404_vm2, %v4816_v13  ;;  %v3874_v55 = vpop.f32.mrf.mxu1  ;;  %7013 = vmatmul.mubr.msk.f32.gmra.mxu1 %vm1936_vm1, %v8147_v23  ;;  %8162 = vtanh.f32 %v2934_v32 }
 0x4dc   :  { %v3875_v10 = vadd.f32 %v10924_v62, %v3874_v55  ;;  %v4820_v7 = vpop.f32.mrf.mxu0  ;;  %7240 = vmatmul.mubr.msk.f32.gmra.mxu0 %vm1936_vm1, %v8149_v40  ;;  %7015 = vmatprep.mubr.msk.f32.mxu1 %vm8348_vm0, %v12107_v28  ;;  %v8151_v9 = vpop.eup %8150 }
 0x4dd   :  { %v4821_v34 = vadd.f32 %v11021_v43, %v4820_v7  ;;  %v6870_v42 = vpop.f32.mrf.mxu1  ;;  %7242 = vmatprep.mubr.msk.f32.mxu0 %vm8348_vm0, %v12107_v28 }
 0x4de   :  { %8164 = vtanh.f32 %v3875_v10  ;;  %v7100_v60 = vpop.f32.mrf.mxu0 }
 0x4df   :  { %v8153_v45 = vpop.eup %8152  ;;  %5413 = vst.msk [vmem:[%s12088_s9 + $0x40] sm:$0xff] %vm5404_vm2, %v4821_v34  ;;  %v3879_v4 = vpop.f32.mrf.mxu1  ;;  %7016 = vmatmul.mubr.msk.f32.gmra.mxu1 %vm1936_vm1, %v8151_v9  ;;  %8166 = vtanh.f32 %v2939_v21  ;;  %v2969_v34 = vadd.f32 %v10985_v33, %v10452_v57 }
 0x4e0   :  { %v3880_v2 = vadd.f32 %v10924_v62, %v3879_v4  ;;  %v4825_v52 = vpop.f32.mrf.mxu0  ;;  %7243 = vmatmul.mubr.msk.f32.gmra.mxu0 %vm1936_vm1, %v8153_v45  ;;  %7018 = vmatprep.mubr.msk.f32.mxu1 %vm8348_vm0, %v12107_v28  ;;  %v8155_v50 = vpop.eup %8154 }
 0x4e1   :  { %v4826_v18 = vadd.f32 %v11021_v43, %v4825_v52  ;;  %v6873_v37 = vpop.f32.mrf.mxu1  ;;  %7245 = vmatprep.mubr.msk.f32.mxu0 %vm8348_vm0, %v12107_v28 }
 0x4e2   :  { %8168 = vtanh.f32 %v3880_v2  ;;  %v7103_v41 = vpop.f32.mrf.mxu0 }
 0x4e3   :  { %v8157_v20 = vpop.eup %8156  ;;  %5414 = vst.msk [vmem:[%s12088_s9 + $0x48] sm:$0xff] %vm5404_vm2, %v4826_v18  ;;  %v3884_v25 = vpop.f32.mrf.mxu1  ;;  %7019 = vmatmul.mubr.msk.f32.gmra.mxu1 %vm1936_vm1, %v8155_v50  ;;  %8170 = vtanh.f32 %v2944_v46  ;;  %v2974_v46 = vadd.f32 %v10985_v33, %v10476_v47 }
 0x4e4   :  { %v3885_v0 = vadd.f32 %v10924_v62, %v3884_v25  ;;  %v4830_v17 = vpop.f32.mrf.mxu0  ;;  %7246 = vmatmul.mubr.msk.f32.gmra.mxu0 %vm1936_vm1, %v8157_v20  ;;  %7021 = vmatprep.mubr.msk.f32.mxu1 %vm8348_vm0, %v12107_v28  ;;  %v8159_v6 = vpop.eup %8158 }
 0x4e5   :  { %v4831_v12 = vadd.f32 %v11021_v43, %v4830_v17  ;;  %v6876_v29 = vpop.f32.mrf.mxu1  ;;  %7248 = vmatprep.mubr.msk.f32.mxu0 %vm8348_vm0, %v12107_v28  ;;  %v2979_v17 = vadd.f32 %v10985_v33, %v10488_v53 }
 0x4e6   :  { %8172 = vtanh.f32 %v3885_v0  ;;  %v7106_v44 = vpop.f32.mrf.mxu0 }
 0x4e7   :  { %v8161_v54 = vpop.eup %8160  ;;  %5415 = vst.msk [vmem:[%s12088_s9 + $0x50] sm:$0xff] %vm5404_vm2, %v4831_v12  ;;  %v3889_v26 = vpop.f32.mrf.mxu1  ;;  %7022 = vmatmul.mubr.msk.f32.gmra.mxu1 %vm1936_vm1, %v8159_v6  ;;  %8174 = vtanh.f32 %v2949_v58 }
 0x4e8   :  { %v3890_v5 = vadd.f32 %v10924_v62, %v3889_v26  ;;  %v4835_v22 = vpop.f32.mrf.mxu0  ;;  %7249 = vmatmul.mubr.msk.f32.gmra.mxu0 %vm1936_vm1, %v8161_v54  ;;  %7024 = vmatprep.mubr.msk.f32.mxu1 %vm8348_vm0, %v12107_v28  ;;  %v8163_v61 = vpop.eup %8162 }
 0x4e9   :  { %v4836_v8 = vadd.f32 %v11021_v43, %v4835_v22  ;;  %v6879_v48 = vpop.f32.mrf.mxu1  ;;  %7251 = vmatprep.mubr.msk.f32.mxu0 %vm8348_vm0, %v12107_v28 }
 0x4ea   :  { %8176 = vtanh.f32 %v3890_v5  ;;  %v7109_v16 = vpop.f32.mrf.mxu0  ;;  %v2984_v5 = vadd.f32 %v10985_v33, %v10510_v30 }
 0x4eb   :  { %v8165_v1 = vpop.eup %8164  ;;  %5416 = vst.msk [vmem:[%s12088_s9 + $0x58] sm:$0xff] %vm5404_vm2, %v4836_v8  ;;  %v3894_v24 = vpop.f32.mrf.mxu1  ;;  %7025 = vmatmul.mubr.msk.f32.gmra.mxu1 %vm1936_vm1, %v8163_v61  ;;  %8178 = vtanh.f32 %v2954_v39 }
 0x4ec   :  { %v3895_v38 = vadd.f32 %v10924_v62, %v3894_v24  ;;  %v4840_v59 = vpop.f32.mrf.mxu0  ;;  %7252 = vmatmul.mubr.msk.f32.gmra.mxu0 %vm1936_vm1, %v8165_v1  ;;  %7027 = vmatprep.mubr.msk.f32.mxu1 %vm8348_vm0, %v12107_v28  ;;  %v8167_v14 = vpop.eup %8166  ;;  %v2989_v24 = vadd.f32 %v10985_v33, %v10522_v63 }
 0x4ed   :  { %v4841_v35 = vadd.f32 %v11021_v43, %v4840_v59  ;;  %v6882_v56 = vpop.f32.mrf.mxu1  ;;  %7254 = vmatprep.mubr.msk.f32.mxu0 %vm8348_vm0, %v12107_v28 }
 0x4ee   :  { %8180 = vtanh.f32 %v3895_v38  ;;  %v7112_v51 = vpop.f32.mrf.mxu0 }
 0x4ef   :  { %v8169_v27 = vpop.eup %8168  ;;  %5417 = vst.msk [vmem:[%s12088_s9 + $0x60] sm:$0xff] %vm5404_vm2, %v4841_v35  ;;  %v3899_v32 = vpop.f32.mrf.mxu1  ;;  %7028 = vmatmul.mubr.msk.f32.gmra.mxu1 %vm1936_vm1, %v8167_v14  ;;  %8182 = vtanh.f32 %v2959_v3 }
 0x4f0   :  { %v3900_v36 = vadd.f32 %v10924_v62, %v3899_v32  ;;  %v4845_v13 = vpop.f32.mrf.mxu0  ;;  %7255 = vmatmul.mubr.msk.f32.gmra.mxu0 %vm1936_vm1, %v8169_v27  ;;  %7030 = vmatprep.mubr.msk.f32.mxu1 %vm8348_vm0, %v12107_v28  ;;  %v8171_v40 = vpop.eup %8170  ;;  %v2994_v27 = vadd.f32 %v10985_v33, %v10541_v15 }
 0x4f1   :  { %v4846_v23 = vadd.f32 %v11021_v43, %v4845_v13  ;;  %v6885_v31 = vpop.f32.mrf.mxu1  ;;  %7257 = vmatprep.mubr.msk.f32.mxu0 %vm8348_vm0, %v12107_v28 }
 0x4f2   :  { %8184 = vtanh.f32 %v3900_v36  ;;  %v7115_v55 = vpop.f32.mrf.mxu0 }
 0x4f3   :  { %v8173_v10 = vpop.eup %8172  ;;  %5418 = vst.msk [vmem:[%s12088_s9 + $0x68] sm:$0xff] %vm5404_vm2, %v4846_v23  ;;  %v3904_v7 = vpop.f32.mrf.mxu1  ;;  %7031 = vmatmul.mubr.msk.f32.gmra.mxu1 %vm1936_vm1, %v8171_v40  ;;  %8186 = vtanh.f32 %v2964_v19  ;;  %v2999_v55 = vadd.f32 %v10985_v33, %v10551_v11 }
 0x4f4   :  { %v3905_v49 = vadd.f32 %v10924_v62, %v3904_v7  ;;  %v4850_v21 = vpop.f32.mrf.mxu0  ;;  %7258 = vmatmul.mubr.msk.f32.gmra.mxu0 %vm1936_vm1, %v8173_v10  ;;  %7033 = vmatprep.mubr.msk.f32.mxu1 %vm8348_vm0, %v12107_v28  ;;  %v8175_v60 = vpop.eup %8174 }
 0x4f5   :  { %v4851_v42 = vadd.f32 %v11021_v43, %v4850_v21  ;;  %v6888_v9 = vpop.f32.mrf.mxu1  ;;  %7260 = vmatprep.mubr.msk.f32.mxu0 %vm8348_vm0, %v12107_v28 }
 0x4f6   :  { %8188 = vtanh.f32 %v3905_v49  ;;  %v7118_v45 = vpop.f32.mrf.mxu0 }
 0x4f7   :  { %v8177_v4 = vpop.eup %8176  ;;  %5419 = vst.msk [vmem:[%s12088_s9 + $0x70] sm:$0xff] %vm5404_vm2, %v4851_v42  ;;  %v3909_v2 = vpop.f32.mrf.mxu1  ;;  %7034 = vmatmul.mubr.msk.f32.gmra.mxu1 %vm1936_vm1, %v8175_v60  ;;  %8190 = vtanh.f32 %v2969_v34 }
 0x4f8   :  { %v3910_v57 = vadd.f32 %v10924_v62, %v3909_v2  ;;  %v4855_v52 = vpop.f32.mrf.mxu0  ;;  %7261 = vmatmul.mubr.msk.f32.gmra.mxu0 %vm1936_vm1, %v8177_v4  ;;  %7036 = vmatprep.mubr.msk.f32.mxu1 %vm8348_vm0, %v12107_v28  ;;  %v8179_v50 = vpop.eup %8178 }
 0x4f9   :  { %v4856_v18 = vadd.f32 %v11021_v43, %v4855_v52  ;;  %v6891_v37 = vpop.f32.mrf.mxu1  ;;  %7263 = vmatprep.mubr.msk.f32.mxu0 %vm8348_vm0, %v12107_v28 }
 0x4fa   :  { %8192 = vtanh.f32 %v3910_v57  ;;  %v7121_v41 = vpop.f32.mrf.mxu0 }
 0x4fb   :  { %v8181_v20 = vpop.eup %8180  ;;  %5420 = vst.msk [vmem:[%s12088_s9 + $0x78] sm:$0xff] %vm5404_vm2, %v4856_v18  ;;  %v3914_v25 = vpop.f32.mrf.mxu1  ;;  %7037 = vmatmul.mubr.msk.f32.gmra.mxu1 %vm1936_vm1, %v8179_v50  ;;  %8194 = vtanh.f32 %v2974_v46 }
 0x4fc   :  { %v3915_v47 = vadd.f32 %v10924_v62, %v3914_v25  ;;  %v4860_v0 = vpop.f32.mrf.mxu0  ;;  %7264 = vmatmul.mubr.msk.f32.gmra.mxu0 %vm1936_vm1, %v8181_v20  ;;  %7039 = vmatprep.mubr.msk.f32.mxu1 %vm8348_vm0, %v12107_v28  ;;  %v8183_v29 = vpop.eup %8182 }
 0x4fd   :  { %v4861_v58 = vadd.f32 %v11021_v43, %v4860_v0  ;;  %v6894_v12 = vpop.f32.mrf.mxu1  ;;  %7266 = vmatprep.mubr.msk.f32.mxu0 %vm8348_vm0, %v12107_v28 }
 0x4fe   :  { %8196 = vtanh.f32 %v3915_v47  ;;  %v7124_v6 = vpop.f32.mrf.mxu0 }
 0x4ff   :  { %v8185_v44 = vpop.eup %8184  ;;  %5421 = vst.msk [vmem:[%s12088_s9 + $0x80] sm:$0xff] %vm5404_vm2, %v4861_v58  ;;  %v3919_v54 = vpop.f32.mrf.mxu1  ;;  %7040 = vmatmul.mubr.msk.f32.gmra.mxu1 %vm1936_vm1, %v8183_v29  ;;  %8198 = vtanh.f32 %v2979_v17 }
 0x500   :  { %v3920_v53 = vadd.f32 %v10924_v62, %v3919_v54  ;;  %v4865_v26 = vpop.f32.mrf.mxu0  ;;  %7267 = vmatmul.mubr.msk.f32.gmra.mxu0 %vm1936_vm1, %v8185_v44  ;;  %7042 = vmatprep.mubr.msk.f32.mxu1 %vm8348_vm0, %v12107_v28  ;;  %v8187_v8 = vpop.eup %8186 }
 0x501   :  { %v4866_v22 = vadd.f32 %v11021_v43, %v4865_v26  ;;  %v6897_v39 = vpop.f32.mrf.mxu1  ;;  %7269 = vmatprep.mubr.msk.f32.mxu0 %vm8348_vm0, %v12107_v28 }
 0x502   :  { %8200 = vtanh.f32 %v3920_v53  ;;  %v7127_v48 = vpop.f32.mrf.mxu0 }
 0x503   :  { %v8189_v61 = vpop.eup %8188  ;;  %5422 = vst.msk [vmem:[%s12088_s9 + $0x88] sm:$0xff] %vm5404_vm2, %v4866_v22  ;;  %v3924_v16 = vpop.f32.mrf.mxu1  ;;  %7043 = vmatmul.mubr.msk.f32.gmra.mxu1 %vm1936_vm1, %v8187_v8  ;;  %8202 = vtanh.f32 %v2984_v5 }
 0x504   :  { %v3925_v30 = vadd.f32 %v10924_v62, %v3924_v16  ;;  %v4870_v1 = vpop.f32.mrf.mxu0  ;;  %7270 = vmatmul.mubr.msk.f32.gmra.mxu0 %vm1936_vm1, %v8189_v61  ;;  %7045 = vmatprep.mubr.msk.f32.mxu1 %vm8348_vm0, %v12107_v28  ;;  %v8191_v3 = vpop.eup %8190 }
 0x505   :  { %v4871_v38 = vadd.f32 %v11021_v43, %v4870_v1  ;;  %v6900_v59 = vpop.f32.mrf.mxu1  ;;  %7272 = vmatprep.mubr.msk.f32.mxu0 %vm8348_vm0, %v12107_v28 }
 0x506   :  { %8204 = vtanh.f32 %v3925_v30  ;;  %v7130_v35 = vpop.f32.mrf.mxu0 }
 0x507   :  { %v8193_v56 = vpop.eup %8192  ;;  %5423 = vst.msk [vmem:[%s12088_s9 + $0x90] sm:$0xff] %vm5404_vm2, %v4871_v38  ;;  %v3929_v14 = vpop.f32.mrf.mxu1  ;;  %7046 = vmatmul.mubr.msk.f32.gmra.mxu1 %vm1936_vm1, %v8191_v3  ;;  %8206 = vtanh.f32 %v2989_v24 }
 0x508   :  { %v3930_v63 = vadd.f32 %v10924_v62, %v3929_v14  ;;  %v4875_v51 = vpop.f32.mrf.mxu0  ;;  %7273 = vmatmul.mubr.msk.f32.gmra.mxu0 %vm1936_vm1, %v8193_v56  ;;  %7048 = vmatprep.mubr.msk.f32.mxu1 %vm8348_vm0, %v12107_v28  ;;  %v8195_v13 = vpop.eup %8194 }
 0x509   :  { %v4876_v32 = vadd.f32 %v11021_v43, %v4875_v51  ;;  %v6903_v36 = vpop.f32.mrf.mxu1  ;;  %7275 = vmatprep.mubr.msk.f32.mxu0 %vm8348_vm0, %v12107_v28 }
 0x50a   :  { %8208 = vtanh.f32 %v3930_v63  ;;  %v7133_v19 = vpop.f32.mrf.mxu0 }
 0x50b   :  { %v8197_v23 = vpop.eup %8196  ;;  %5424 = vst.msk [vmem:[%s12088_s9 + $0x98] sm:$0xff] %vm5404_vm2, %v4876_v32  ;;  %v3934_v31 = vpop.f32.mrf.mxu1  ;;  %7049 = vmatmul.mubr.msk.f32.gmra.mxu1 %vm1936_vm1, %v8195_v13  ;;  %8210 = vtanh.f32 %v2994_v27 }
 0x50c   :  { %v3935_v15 = vadd.f32 %v10924_v62, %v3934_v31  ;;  %v4880_v40 = vpop.f32.mrf.mxu0  ;;  %7276 = vmatmul.mubr.msk.f32.gmra.mxu0 %vm1936_vm1, %v8197_v23  ;;  %7051 = vmatprep.mubr.msk.f32.mxu1 %vm8348_vm0, %v12107_v28  ;;  %v8199_v49 = vpop.eup %8198 }
 0x50d   :  { %v4881_v10 = vadd.f32 %v11021_v43, %v4880_v40  ;;  %v6906_v7 = vpop.f32.mrf.mxu1  ;;  %7278 = vmatprep.mubr.msk.f32.mxu0 %vm8348_vm0, %v12107_v28 }
 0x50e   :  { %8212 = vtanh.f32 %v3935_v15  ;;  %v7136_v21 = vpop.f32.mrf.mxu0 }
 0x50f   :  { %v8201_v34 = vpop.eup %8200  ;;  %5425 = vst.msk [vmem:[%s12088_s9 + $0xa0] sm:$0xff] %vm5404_vm2, %v4881_v10  ;;  %v3939_v42 = vpop.f32.mrf.mxu1  ;;  %7052 = vmatmul.mubr.msk.f32.gmra.mxu1 %vm1936_vm1, %v8199_v49  ;;  %8214 = vtanh.f32 %v2999_v55 }
 0x510   :  { %v3940_v11 = vadd.f32 %v10924_v62, %v3939_v42  ;;  %v4885_v33 = vpop.f32.mrf.mxu0  ;;  %7279 = vmatmul.mubr.msk.f32.gmra.mxu0 %vm1936_vm1, %v8201_v34  ;;  %7054 = vmatprep.mubr.msk.f32.mxu1 %vm8348_vm0, %v12107_v28  ;;  %v8203_v45 = vpop.eup %8202 }
 0x511   :  { %v4886_v9 = vadd.f32 %v11021_v43, %v4885_v33  ;;  %v6909_v60 = vpop.f32.mrf.mxu1  ;;  %7281 = vmatprep.mubr.msk.f32.mxu0 %vm8348_vm0, %v12107_v28 }
 0x512   :  { %8216 = vtanh.f32 %v3940_v11  ;;  %v7139_v4 = vpop.f32.mrf.mxu0 }
 0x513   :  { %v8205_v2 = vpop.eup %8204  ;;  %5426 = vst.msk [vmem:[%s12088_s9 + $0xa8] sm:$0xff] %vm5404_vm2, %v4886_v9  ;;  %v3944_v57 = vpop.f32.mrf.mxu1  ;;  %7055 = vmatmul.mubr.msk.f32.gmra.mxu1 %vm1936_vm1, %v8203_v45 }
 0x514   :  { %v3945_v52 = vadd.f32 %v10924_v62, %v3944_v57  ;;  %v4890_v46 = vpop.f32.mrf.mxu0  ;;  %7282 = vmatmul.mubr.msk.f32.gmra.mxu0 %vm1936_vm1, %v8205_v2  ;;  %7057 = vmatprep.mubr.msk.f32.mxu1 %vm8348_vm0, %v12107_v28  ;;  %v8207_v50 = vpop.eup %8206 }
 0x515   :  { %v4891_v18 = vadd.f32 %v11021_v43, %v4890_v46  ;;  %v6912_v37 = vpop.f32.mrf.mxu1  ;;  %7284 = vmatprep.mubr.msk.f32.mxu0 %vm8348_vm0, %v12107_v28 }
 0x516   :  { %8218 = vtanh.f32 %v3945_v52  ;;  %v7142_v41 = vpop.f32.mrf.mxu0 }
 0x517   :  { %v8209_v20 = vpop.eup %8208  ;;  %5427 = vst.msk [vmem:[%s12088_s9 + $0xb0] sm:$0xff] %vm5404_vm2, %v4891_v18  ;;  %v3949_v25 = vpop.f32.mrf.mxu1  ;;  %7058 = vmatmul.mubr.msk.f32.gmra.mxu1 %vm1936_vm1, %v8207_v50 }
 0x518   :  { %v3950_v47 = vadd.f32 %v10924_v62, %v3949_v25  ;;  %v4895_v0 = vpop.f32.mrf.mxu0  ;;  %7285 = vmatmul.mubr.msk.f32.gmra.mxu0 %vm1936_vm1, %v8209_v20  ;;  %7060 = vmatprep.mubr.msk.f32.mxu1 %vm8348_vm0, %v12107_v28  ;;  %v8211_v12 = vpop.eup %8210 }
 0x519   :  { %v4896_v17 = vadd.f32 %v11021_v43, %v4895_v0  ;;  %v6915_v58 = vpop.f32.mrf.mxu1  ;;  %7287 = vmatprep.mubr.msk.f32.mxu0 %vm8348_vm0, %v12107_v28 }
 0x51a   :  { %8220 = vtanh.f32 %v3950_v47  ;;  %v7145_v29 = vpop.f32.mrf.mxu0 }
 0x51b   :  { %v8213_v6 = vpop.eup %8212  ;;  %5428 = vst.msk [vmem:[%s12088_s9 + $0xb8] sm:$0xff] %vm5404_vm2, %v4896_v17  ;;  %v3954_v44 = vpop.f32.mrf.mxu1  ;;  %7061 = vmatmul.mubr.msk.f32.gmra.mxu1 %vm1936_vm1, %v8211_v12 }
 0x51c   :  { %v3955_v54 = vadd.f32 %v10924_v62, %v3954_v44  ;;  %v4900_v53 = vpop.f32.mrf.mxu0  ;;  %7288 = vmatmul.mubr.msk.f32.gmra.mxu0 %vm1936_vm1, %v8213_v6  ;;  %7063 = vmatprep.mubr.msk.f32.mxu1 %vm8348_vm0, %v12107_v28  ;;  %v8215_v22 = vpop.eup %8214 }
 0x51d   :  { %v4901_v26 = vadd.f32 %v11021_v43, %v4900_v53  ;;  %v6918_v5 = vpop.f32.mrf.mxu1  ;;  %7290 = vmatprep.mubr.msk.f32.mxu0 %vm8348_vm0, %v12107_v28 }
 0x51e   :  { %8222 = vtanh.f32 %v3955_v54  ;;  %v7148_v39 = vpop.f32.mrf.mxu0 }
 0x51f   :  { %v8217_v8 = vpop.eup %8216  ;;  %5429 = vst.msk [vmem:[%s12088_s9 + $0xc0] sm:$0xff] %vm5404_vm2, %v4901_v26  ;;  %v3959_v48 = vpop.f32.mrf.mxu1  ;;  %7064 = vmatmul.mubr.msk.f32.gmra.mxu1 %vm1936_vm1, %v8215_v22 }
 0x520   :  { %v3960_v61 = vadd.f32 %v10924_v62, %v3959_v48  ;;  %v4905_v16 = vpop.f32.mrf.mxu0  ;;  %7291 = vmatmul.mubr.msk.f32.gmra.mxu0 %vm1936_vm1, %v8217_v8  ;;  %v11374_v62 = vld [vmem:[%s12086_s6] ss:$0 sm:$0xff] }
 0x521   :  { %v4906_v30 = vadd.f32 %v11021_v43, %v4905_v16  ;;  %v6921_v1 = vpop.f32.mrf.mxu1  ;;  %7293 = vmatprep.mubr.msk.f32.mxu0 %vm8348_vm0, %v12107_v28 }
 0x522   :  { %8224 = vtanh.f32 %v3960_v61  ;;  %v7151_v24 = vpop.f32.mrf.mxu0 }
 0x523   :  { %v8219_v38 = vpop.eup %8218  ;;  %5430 = vst.msk [vmem:[%s12088_s9 + $0xc8] sm:$0xff] %vm5404_vm2, %v4906_v30  ;;  %v3964_v59 = vpop.f32.mrf.mxu1 }
 0x524   :  { %v3965_v3 = vadd.f32 %v11374_v62, %v3964_v59  ;;  %v4910_v35 = vpop.f32.mrf.mxu0  ;;  %7294 = vmatmul.mubr.msk.f32.gmra.mxu0 %vm1936_vm1, %v8219_v38 }
 0x525   :  { %v4911_v56 = vadd.f32 %v11021_v43, %v4910_v35  ;;  %v6924_v14 = vpop.f32.mrf.mxu1  ;;  %7296 = vmatprep.mubr.msk.f32.mxu0 %vm8348_vm0, %v12107_v28 }
 0x526   :  { %8226 = vtanh.f32 %v3965_v3  ;;  %v7154_v63 = vpop.f32.mrf.mxu0 }
 0x527   :  { %v8221_v51 = vpop.eup %8220  ;;  %5431 = vst.msk [vmem:[%s12088_s9 + $0xd0] sm:$0xff] %vm5404_vm2, %v4911_v56  ;;  %v3969_v27 = vpop.f32.mrf.mxu1 }
 0x528   :  { %v3970_v32 = vadd.f32 %v11374_v62, %v3969_v27  ;;  %v4915_v36 = vpop.f32.mrf.mxu0  ;;  %7297 = vmatmul.mubr.msk.f32.gmra.mxu0 %vm1936_vm1, %v8221_v51 }
 0x529   :  { %v4916_v13 = vadd.f32 %v11021_v43, %v4915_v36  ;;  %v6927_v19 = vpop.f32.mrf.mxu1  ;;  %7299 = vmatprep.mubr.msk.f32.mxu0 %vm8348_vm0, %v12107_v28 }
 0x52a   :  { %8228 = vtanh.f32 %v3970_v32  ;;  %v7157_v23 = vpop.f32.mrf.mxu0 }
 0x52b   :  { %v8223_v31 = vpop.eup %8222  ;;  %5432 = vst.msk [vmem:[%s12088_s9 + $0xd8] sm:$0xff] %vm5404_vm2, %v4916_v13  ;;  %v3974_v15 = vpop.f32.mrf.mxu1  ;;  %v11468_v23 = vld [vmem:[#allocation2] ss:$0 sm:$0xff] }
 0x52c   :  { %v3975_v40 = vadd.f32 %v11374_v62, %v3974_v15  ;;  %v4920_v55 = vpop.f32.mrf.mxu0  ;;  %7300 = vmatmul.mubr.msk.f32.gmra.mxu0 %vm1936_vm1, %v8223_v31 }
 0x52d   :  { %v4921_v10 = vadd.f32 %v11021_v43, %v4920_v55  ;;  %v6930_v7 = vpop.f32.mrf.mxu1  ;;  %7302 = vmatprep.mubr.msk.f32.mxu0 %vm8348_vm0, %v12107_v28 }
 0x52e   :  { %8230 = vtanh.f32 %v3975_v40  ;;  %v7160_v49 = vpop.f32.mrf.mxu0 }
 0x52f   :  { %v8225_v21 = vpop.eup %8224  ;;  %5433 = vst.msk [vmem:[%s12088_s9 + $0xe0] sm:$0xff] %vm5404_vm2, %v4921_v10  ;;  %v3979_v34 = vpop.f32.mrf.mxu1 }
 0x530   :  { %v3980_v42 = vadd.f32 %v11374_v62, %v3979_v34  ;;  %v4925_v11 = vpop.f32.mrf.mxu0  ;;  %7303 = vmatmul.mubr.msk.f32.gmra.mxu0 %vm1936_vm1, %v8225_v21 }
 0x531   :  { %v4926_v33 = vadd.f32 %v11021_v43, %v4925_v11  ;;  %v6933_v9 = vpop.f32.mrf.mxu1  ;;  %7305 = vmatprep.mubr.msk.f32.mxu0 %vm8348_vm0, %v12107_v28 }
 0x532   :  { %8232 = vtanh.f32 %v3980_v42  ;;  %v7163_v60 = vpop.f32.mrf.mxu0 }
 0x533   :  { %v8227_v45 = vpop.eup %8226  ;;  %5434 = vst.msk [vmem:[%s12088_s9 + $0xe8] sm:$0xff] %vm5404_vm2, %v4926_v33  ;;  %v3984_v4 = vpop.f32.mrf.mxu1 }
 0x534   :  { %v3985_v2 = vadd.f32 %v11374_v62, %v3984_v4  ;;  %v4930_v57 = vpop.f32.mrf.mxu0  ;;  %7306 = vmatmul.mubr.msk.f32.gmra.mxu0 %vm1936_vm1, %v8227_v45 }
 0x535   :  { %v4931_v52 = vadd.f32 %v11021_v43, %v4930_v57  ;;  %v6936_v46 = vpop.f32.mrf.mxu1  ;;  %7308 = vmatprep.mubr.msk.f32.mxu0 %vm8348_vm0, %v12107_v28 }
 0x536   :  { %8234 = vtanh.f32 %v3985_v2  ;;  %v7166_v18 = vpop.f32.mrf.mxu0 }
 0x537   :  { %v8229_v37 = vpop.eup %8228  ;;  %5435 = vst.msk [vmem:[%s12088_s9 + $0xf0] sm:$0xff] %vm5404_vm2, %v4931_v52  ;;  %v3989_v50 = vpop.f32.mrf.mxu1 }
 0x538   :  { %v3990_v41 = vadd.f32 %v11374_v62, %v3989_v50  ;;  %v4935_v20 = vpop.f32.mrf.mxu0  ;;  %7309 = vmatmul.mubr.msk.f32.gmra.mxu0 %vm1936_vm1, %v8229_v37 }
 0x539   :  { %v4936_v25 = vadd.f32 %v11021_v43, %v4935_v20  ;;  %v6939_v47 = vpop.f32.mrf.mxu1  ;;  %7311 = vmatprep.mubr.msk.f32.mxu0 %vm8348_vm0, %v12107_v28 }
 0x53a   :  { %8236 = vtanh.f32 %v3990_v41  ;;  %v7169_v0 = vpop.f32.mrf.mxu0 }
 0x53b   :  { %v8231_v17 = vpop.eup %8230  ;;  %5436 = vst.msk [vmem:[%s12088_s9 + $0xf8] sm:$0xff] %vm5404_vm2, %v4936_v25  ;;  %v3994_v58 = vpop.f32.mrf.mxu1 }
 0x53c   :  { %v3995_v12 = vadd.f32 %v11374_v62, %v3994_v58  ;;  %v4940_v29 = vpop.f32.mrf.mxu0  ;;  %7312 = vmatmul.mubr.msk.f32.gmra.mxu0 %vm1936_vm1, %v8231_v17 }
 0x53d   :  { %v4941_v6 = vadd.f32 %v11021_v43, %v4940_v29  ;;  %v6942_v44 = vpop.f32.mrf.mxu1  ;;  %7314 = vmatprep.mubr.msk.f32.mxu0 %vm8348_vm0, %v12107_v28 }
 0x53e   :  { %8238 = vtanh.f32 %v3995_v12  ;;  %v7172_v54 = vpop.f32.mrf.mxu0 }
 0x53f   :  { %v8233_v53 = vpop.eup %8232  ;;  %5437 = vst.msk [vmem:[%s12088_s9 + $0x100] sm:$0xff] %vm5404_vm2, %v4941_v6  ;;  %v3999_v26 = vpop.f32.mrf.mxu1 }
 0x540   :  { %v4000_v5 = vadd.f32 %v11374_v62, %v3999_v26  ;;  %v4945_v22 = vpop.f32.mrf.mxu0  ;;  %7315 = vmatmul.mubr.msk.f32.gmra.mxu0 %vm1936_vm1, %v8233_v53 }
 0x541   :  { %v4946_v39 = vadd.f32 %v11021_v43, %v4945_v22  ;;  %v6945_v8 = vpop.f32.mrf.mxu1  ;;  %7317 = vmatprep.mubr.msk.f32.mxu0 %vm8348_vm0, %v12107_v28 }
 0x542   :  { %8240 = vtanh.f32 %v4000_v5  ;;  %v7175_v48 = vpop.f32.mrf.mxu0 }
 0x543   :  { %v8235_v61 = vpop.eup %8234  ;;  %5438 = vst.msk [vmem:[%s12088_s9 + $0x108] sm:$0xff] %vm5404_vm2, %v4946_v39  ;;  %v4004_v16 = vpop.f32.mrf.mxu1 }
 0x544   :  { %v4005_v30 = vadd.f32 %v11374_v62, %v4004_v16  ;;  %v4950_v1 = vpop.f32.mrf.mxu0  ;;  %7318 = vmatmul.mubr.msk.f32.gmra.mxu0 %vm1936_vm1, %v8235_v61 }
 0x545   :  { %v4951_v24 = vadd.f32 %v11021_v43, %v4950_v1  ;;  %v6948_v38 = vpop.f32.mrf.mxu1  ;;  %7320 = vmatprep.mubr.msk.f32.mxu0 %vm8348_vm0, %v12107_v28 }
 0x546   :  { %8242 = vtanh.f32 %v4005_v30  ;;  %v7178_v59 = vpop.f32.mrf.mxu0 }
 0x547   :  { %v8237_v3 = vpop.eup %8236  ;;  %5439 = vst.msk [vmem:[%s12088_s9 + $0x110] sm:$0xff] %vm5404_vm2, %v4951_v24  ;;  %v4009_v35 = vpop.f32.mrf.mxu1 }
 0x548   :  { %v4010_v56 = vadd.f32 %v11374_v62, %v4009_v35  ;;  %v4955_v14 = vpop.f32.mrf.mxu0  ;;  %7321 = vmatmul.mubr.msk.f32.gmra.mxu0 %vm1936_vm1, %v8237_v3 }
 0x549   :  { %v4956_v63 = vadd.f32 %v11021_v43, %v4955_v14  ;;  %v6951_v51 = vpop.f32.mrf.mxu1  ;;  %7323 = vmatprep.mubr.msk.f32.mxu0 %vm8348_vm0, %v12107_v28 }
 0x54a   :  { %8244 = vtanh.f32 %v4010_v56  ;;  %v7181_v27 = vpop.f32.mrf.mxu0 }
 0x54b   :  { %v8239_v32 = vpop.eup %8238  ;;  %5440 = vst.msk [vmem:[%s12088_s9 + $0x118] sm:$0xff] %vm5404_vm2, %v4956_v63  ;;  %v4014_v36 = vpop.f32.mrf.mxu1 }
 0x54c   :  { %v4015_v13 = vadd.f32 %v11374_v62, %v4014_v36  ;;  %v4960_v19 = vpop.f32.mrf.mxu0  ;;  %7324 = vmatmul.mubr.msk.f32.gmra.mxu0 %vm1936_vm1, %v8239_v32 }
 0x54d   :  { %v4961_v43 = vadd.f32 %v11468_v23, %v4960_v19  ;;  %v6954_v31 = vpop.f32.mrf.mxu1  ;;  %7326 = vmatprep.mubr.msk.f32.mxu0 %vm8348_vm0, %v12107_v28 }
 0x54e   :  { %8246 = vtanh.f32 %v4015_v13  ;;  %v7184_v15 = vpop.f32.mrf.mxu0 }
 0x54f   :  { %v8241_v40 = vpop.eup %8240  ;;  %5441 = vst.msk [vmem:[%s12088_s9 + $0x120] sm:$0xff] %vm5404_vm2, %v4961_v43  ;;  %v4019_v55 = vpop.f32.mrf.mxu1 }
 0x550   :  { %v4020_v10 = vadd.f32 %v11374_v62, %v4019_v55  ;;  %v4965_v7 = vpop.f32.mrf.mxu0  ;;  %7327 = vmatmul.mubr.msk.f32.gmra.mxu0 %vm1936_vm1, %v8241_v40 }
 0x551   :  { %v4966_v49 = vadd.f32 %v11468_v23, %v4965_v7  ;;  %v6957_v21 = vpop.f32.mrf.mxu1  ;;  %7329 = vmatprep.mubr.msk.f32.mxu0 %vm8348_vm0, %v12107_v28 }
 0x552   :  { %8248 = vtanh.f32 %v4020_v10  ;;  %v7187_v34 = vpop.f32.mrf.mxu0 }
 0x553   :  { %v8243_v42 = vpop.eup %8242  ;;  %5442 = vst.msk [vmem:[%s12088_s9 + $0x128] sm:$0xff] %vm5404_vm2, %v4966_v49  ;;  %v4024_v11 = vpop.f32.mrf.mxu1 }
 0x554   :  { %v4025_v33 = vadd.f32 %v11374_v62, %v4024_v11  ;;  %v4970_v9 = vpop.f32.mrf.mxu0  ;;  %7330 = vmatmul.mubr.msk.f32.gmra.mxu0 %vm1936_vm1, %v8243_v42 }
 0x555   :  { %v4971_v60 = vadd.f32 %v11468_v23, %v4970_v9  ;;  %v6960_v45 = vpop.f32.mrf.mxu1  ;;  %7332 = vmatprep.mubr.msk.f32.mxu0 %vm8348_vm0, %v12107_v28 }
 0x556   :  { %8250 = vtanh.f32 %v4025_v33  ;;  %v7190_v4 = vpop.f32.mrf.mxu0 }
 0x557   :  { %v8245_v2 = vpop.eup %8244  ;;  %5443 = vst.msk [vmem:[%s12088_s9 + $0x130] sm:$0xff] %vm5404_vm2, %v4971_v60  ;;  %v4029_v57 = vpop.f32.mrf.mxu1 }
 0x558   :  { %v4030_v52 = vadd.f32 %v11374_v62, %v4029_v57  ;;  %v4975_v46 = vpop.f32.mrf.mxu0  ;;  %7333 = vmatmul.mubr.msk.f32.gmra.mxu0 %vm1936_vm1, %v8245_v2 }
 0x559   :  { %v4976_v18 = vadd.f32 %v11468_v23, %v4975_v46  ;;  %v6963_v37 = vpop.f32.mrf.mxu1  ;;  %7335 = vmatprep.mubr.msk.f32.mxu0 %vm8348_vm0, %v12107_v28 }
 0x55a   :  { %8252 = vtanh.f32 %v4030_v52  ;;  %v7193_v50 = vpop.f32.mrf.mxu0 }
 0x55b   :  { %v8247_v41 = vpop.eup %8246  ;;  %5444 = vst.msk [vmem:[%s12088_s9 + $0x138] sm:$0xff] %vm5404_vm2, %v4976_v18  ;;  %v4034_v20 = vpop.f32.mrf.mxu1 }
 0x55c   :  { %v4035_v25 = vadd.f32 %v11374_v62, %v4034_v20  ;;  %v4980_v47 = vpop.f32.mrf.mxu0  ;;  %7336 = vmatmul.mubr.msk.f32.gmra.mxu0 %vm1936_vm1, %v8247_v41 }
 0x55d   :  { %v4981_v0 = vadd.f32 %v11468_v23, %v4980_v47  ;;  %v6966_v17 = vpop.f32.mrf.mxu1  ;;  %7338 = vmatprep.mubr.msk.f32.mxu0 %vm8348_vm0, %v12107_v28 }
 0x55e   :  { %8254 = vtanh.f32 %v4035_v25  ;;  %v7196_v58 = vpop.f32.mrf.mxu0 }
 0x55f   :  { %v8249_v12 = vpop.eup %8248  ;;  %5445 = vst.msk [vmem:[%s12088_s9 + $0x140] sm:$0xff] %vm5404_vm2, %v4981_v0  ;;  %v4039_v29 = vpop.f32.mrf.mxu1 }
 0x560   :  { %v4040_v6 = vadd.f32 %v11374_v62, %v4039_v29  ;;  %v4985_v44 = vpop.f32.mrf.mxu0  ;;  %7339 = vmatmul.mubr.msk.f32.gmra.mxu0 %vm1936_vm1, %v8249_v12 }
 0x561   :  { %v4986_v54 = vadd.f32 %v11468_v23, %v4985_v44  ;;  %v6969_v53 = vpop.f32.mrf.mxu1  ;;  %7341 = vmatprep.mubr.msk.f32.mxu0 %vm8348_vm0, %v12107_v28 }
 0x562   :  { %8256 = vtanh.f32 %v4040_v6  ;;  %v7199_v26 = vpop.f32.mrf.mxu0 }
 0x563   :  { %v8251_v5 = vpop.eup %8250  ;;  %5446 = vst.msk [vmem:[%s12088_s9 + $0x148] sm:$0xff] %vm5404_vm2, %v4986_v54  ;;  %v4044_v22 = vpop.f32.mrf.mxu1 }
 0x564   :  { %v4045_v39 = vadd.f32 %v11374_v62, %v4044_v22  ;;  %v4990_v8 = vpop.f32.mrf.mxu0  ;;  %7342 = vmatmul.mubr.msk.f32.gmra.mxu0 %vm1936_vm1, %v8251_v5 }
 0x565   :  { %v4991_v48 = vadd.f32 %v11468_v23, %v4990_v8  ;;  %v6972_v61 = vpop.f32.mrf.mxu1  ;;  %7344 = vmatprep.mubr.msk.f32.mxu0 %vm8348_vm0, %v12107_v28 }
 0x566   :  { %8258 = vtanh.f32 %v4045_v39  ;;  %v7202_v16 = vpop.f32.mrf.mxu0 }
 0x567   :  { %v8253_v30 = vpop.eup %8252  ;;  %5447 = vst.msk [vmem:[%s12088_s9 + $0x150] sm:$0xff] %vm5404_vm2, %v4991_v48  ;;  %v4049_v1 = vpop.f32.mrf.mxu1 }
 0x568   :  { %v4050_v24 = vadd.f32 %v11374_v62, %v4049_v1  ;;  %v4995_v38 = vpop.f32.mrf.mxu0  ;;  %7345 = vmatmul.mubr.msk.f32.gmra.mxu0 %vm1936_vm1, %v8253_v30 }
 0x569   :  { %v4996_v59 = vadd.f32 %v11468_v23, %v4995_v38  ;;  %v6975_v3 = vpop.f32.mrf.mxu1  ;;  %7347 = vmatprep.mubr.msk.f32.mxu0 %vm8348_vm0, %v12107_v28 }
 0x56a   :  { %8260 = vtanh.f32 %v4050_v24  ;;  %v7205_v35 = vpop.f32.mrf.mxu0 }
 0x56b   :  { %v8255_v56 = vpop.eup %8254  ;;  %5448 = vst.msk [vmem:[%s12088_s9 + $0x158] sm:$0xff] %vm5404_vm2, %v4996_v59  ;;  %v4054_v14 = vpop.f32.mrf.mxu1 }
 0x56c   :  { %v4055_v63 = vadd.f32 %v11374_v62, %v4054_v14  ;;  %v5000_v51 = vpop.f32.mrf.mxu0  ;;  %7348 = vmatmul.mubr.msk.f32.gmra.mxu0 %vm1936_vm1, %v8255_v56 }
 0x56d   :  { %v5001_v27 = vadd.f32 %v11468_v23, %v5000_v51  ;;  %v6978_v32 = vpop.f32.mrf.mxu1  ;;  %7350 = vmatprep.mubr.msk.f32.mxu0 %vm8348_vm0, %v12107_v28 }
 0x56e   :  { %8262 = vtanh.f32 %v4055_v63  ;;  %v7208_v36 = vpop.f32.mrf.mxu0 }
 0x56f   :  { %v8257_v13 = vpop.eup %8256  ;;  %5449 = vst.msk [vmem:[%s12088_s9 + $0x160] sm:$0xff] %vm5404_vm2, %v5001_v27  ;;  %v4059_v19 = vpop.f32.mrf.mxu1 }
 0x570   :  { %v4060_v43 = vadd.f32 %v11374_v62, %v4059_v19  ;;  %v5005_v31 = vpop.f32.mrf.mxu0  ;;  %7351 = vmatmul.mubr.msk.f32.gmra.mxu0 %vm1936_vm1, %v8257_v13 }
 0x571   :  { %v5006_v15 = vadd.f32 %v11468_v23, %v5005_v31  ;;  %v6981_v40 = vpop.f32.mrf.mxu1  ;;  %7353 = vmatprep.mubr.msk.f32.mxu0 %vm8348_vm0, %v12107_v28 }
 0x572   :  { %8264 = vtanh.f32 %v4060_v43  ;;  %v7211_v55 = vpop.f32.mrf.mxu0 }
 0x573   :  { %v8259_v10 = vpop.eup %8258  ;;  %5450 = vst.msk [vmem:[%s12088_s9 + $0x168] sm:$0xff] %vm5404_vm2, %v5006_v15  ;;  %v4064_v7 = vpop.f32.mrf.mxu1 }
 0x574   :  { %v4065_v49 = vadd.f32 %v11374_v62, %v4064_v7  ;;  %v5010_v21 = vpop.f32.mrf.mxu0  ;;  %7354 = vmatmul.mubr.msk.f32.gmra.mxu0 %vm1936_vm1, %v8259_v10 }
 0x575   :  { %v5011_v34 = vadd.f32 %v11468_v23, %v5010_v21  ;;  %v6984_v42 = vpop.f32.mrf.mxu1  ;;  %7356 = vmatprep.mubr.msk.f32.mxu0 %vm8348_vm0, %v12107_v28 }
 0x576   :  { %8266 = vtanh.f32 %v4065_v49  ;;  %v7214_v11 = vpop.f32.mrf.mxu0 }
 0x577   :  { %v8261_v33 = vpop.eup %8260  ;;  %5451 = vst.msk [vmem:[%s12088_s9 + $0x170] sm:$0xff] %vm5404_vm2, %v5011_v34  ;;  %v4069_v9 = vpop.f32.mrf.mxu1 }
 0x578   :  { %v4070_v60 = vadd.f32 %v11374_v62, %v4069_v9  ;;  %v5015_v45 = vpop.f32.mrf.mxu0  ;;  %7357 = vmatmul.mubr.msk.f32.gmra.mxu0 %vm1936_vm1, %v8261_v33 }
 0x579   :  { %v5016_v4 = vadd.f32 %v11468_v23, %v5015_v45  ;;  %v6987_v2 = vpop.f32.mrf.mxu1  ;;  %7359 = vmatprep.mubr.msk.f32.mxu0 %vm8348_vm0, %v12107_v28 }
 0x57a   :  { %8268 = vtanh.f32 %v4070_v60  ;;  %v7217_v57 = vpop.f32.mrf.mxu0 }
 0x57b   :  { %v8263_v52 = vpop.eup %8262  ;;  %5452 = vst.msk [vmem:[%s12088_s9 + $0x178] sm:$0xff] %vm5404_vm2, %v5016_v4  ;;  %v4074_v46 = vpop.f32.mrf.mxu1 }
 0x57c   :  { %v4075_v18 = vadd.f32 %v11374_v62, %v4074_v46  ;;  %v5020_v37 = vpop.f32.mrf.mxu0  ;;  %7360 = vmatmul.mubr.msk.f32.gmra.mxu0 %vm1936_vm1, %v8263_v52 }
 0x57d   :  { %v5021_v50 = vadd.f32 %v11468_v23, %v5020_v37  ;;  %v6990_v41 = vpop.f32.mrf.mxu1  ;;  %7362 = vmatprep.mubr.msk.f32.mxu0 %vm8348_vm0, %v12107_v28 }
 0x57e   :  { %8270 = vtanh.f32 %v4075_v18  ;;  %v7220_v20 = vpop.f32.mrf.mxu0 }
 0x57f   :  { %v8265_v25 = vpop.eup %8264  ;;  %5453 = vst.msk [vmem:[%s12088_s9 + $0x180] sm:$0xff] %vm5404_vm2, %v5021_v50  ;;  %v4079_v47 = vpop.f32.mrf.mxu1 }
 0x580   :  { %v4080_v0 = vadd.f32 %v11374_v62, %v4079_v47  ;;  %v5025_v17 = vpop.f32.mrf.mxu0  ;;  %7363 = vmatmul.mubr.msk.f32.gmra.mxu0 %vm1936_vm1, %v8265_v25 }
 0x581   :  { %v5026_v58 = vadd.f32 %v11468_v23, %v5025_v17  ;;  %v6993_v12 = vpop.f32.mrf.mxu1  ;;  %7365 = vmatprep.mubr.msk.f32.mxu0 %vm8348_vm0, %v12107_v28 }
 0x582   :  { %8272 = vtanh.f32 %v4080_v0  ;;  %v7223_v29 = vpop.f32.mrf.mxu0 }
 0x583   :  { %v8267_v6 = vpop.eup %8266  ;;  %5454 = vst.msk [vmem:[%s12088_s9 + $0x188] sm:$0xff] %vm5404_vm2, %v5026_v58  ;;  %v4084_v44 = vpop.f32.mrf.mxu1 }
 0x584   :  { %v4085_v54 = vadd.f32 %v11374_v62, %v4084_v44  ;;  %v5030_v53 = vpop.f32.mrf.mxu0  ;;  %7366 = vmatmul.mubr.msk.f32.gmra.mxu0 %vm1936_vm1, %v8267_v6 }
 0x585   :  { %v5031_v26 = vadd.f32 %v11468_v23, %v5030_v53  ;;  %v6996_v5 = vpop.f32.mrf.mxu1  ;;  %7368 = vmatprep.mubr.msk.f32.mxu0 %vm8348_vm0, %v12107_v28 }
 0x586   :  { %8274 = vtanh.f32 %v4085_v54  ;;  %v7226_v22 = vpop.f32.mrf.mxu0 }
 0x587   :  { %v8269_v39 = vpop.eup %8268  ;;  %5455 = vst.msk [vmem:[%s12088_s9 + $0x190] sm:$0xff] %vm5404_vm2, %v5031_v26  ;;  %v4089_v8 = vpop.f32.mrf.mxu1 }
 0x588   :  { %v4090_v48 = vadd.f32 %v11374_v62, %v4089_v8  ;;  %v5035_v61 = vpop.f32.mrf.mxu0  ;;  %7369 = vmatmul.mubr.msk.f32.gmra.mxu0 %vm1936_vm1, %v8269_v39 }
 0x589   :  { %v5036_v16 = vadd.f32 %v11468_v23, %v5035_v61  ;;  %v6999_v30 = vpop.f32.mrf.mxu1  ;;  %7371 = vmatprep.mubr.msk.f32.mxu0 %vm8348_vm0, %v12107_v28 }
 0x58a   :  { %8276 = vtanh.f32 %v4090_v48  ;;  %v7229_v1 = vpop.f32.mrf.mxu0 }
 0x58b   :  { %v8271_v24 = vpop.eup %8270  ;;  %5456 = vst.msk [vmem:[%s12088_s9 + $0x198] sm:$0xff] %vm5404_vm2, %v5036_v16  ;;  %v4094_v38 = vpop.f32.mrf.mxu1 }
 0x58c   :  { %v4095_v59 = vadd.f32 %v11374_v62, %v4094_v38  ;;  %7372 = vmatmul.mubr.msk.f32.gmra.mxu0 %vm1936_vm1, %v8271_v24 }
 0x58d   :  { %v7002_v3 = vpop.f32.mrf.mxu1  ;;  %7374 = vmatprep.mubr.msk.f32.mxu0 %vm8348_vm0, %v12107_v28 }
 0x58e   :  { %8278 = vtanh.f32 %v4095_v59 }
 0x58f   :  { %v8273_v35 = vpop.eup %8272  ;;  %v4099_v56 = vpop.f32.mrf.mxu1 }
 0x590   :  { %v5040_v14 = vpop.f32.mrf.mxu0  ;;  %v4100_v63 = vadd.f32 %v11374_v62, %v4099_v56  ;;  %7375 = vmatmul.mubr.msk.f32.gmra.mxu0 %vm1936_vm1, %v8273_v35 }
 0x591   :  { %v5041_v51 = vadd.f32 %v11468_v23, %v5040_v14  ;;  %v7005_v27 = vpop.f32.mrf.mxu1  ;;  %7377 = vmatprep.mubr.msk.f32.mxu0 %vm8348_vm0, %v12107_v28 }
 0x592   :  { %v7232_v32 = vpop.f32.mrf.mxu0  ;;  %8280 = vtanh.f32 %v4100_v63 }
 0x593   :  { %5457 = vst.msk [vmem:[%s12088_s9 + $0x1a0] sm:$0xff] %vm5404_vm2, %v5041_v51  ;;  %v8275_v36 = vpop.eup %8274  ;;  %v4104_v13 = vpop.f32.mrf.mxu1 }
 0x594   :  { %v4105_v19 = vadd.f32 %v11374_v62, %v4104_v13  ;;  %v5045_v43 = vpop.f32.mrf.mxu0  ;;  %7378 = vmatmul.mubr.msk.f32.gmra.mxu0 %vm1936_vm1, %v8275_v36 }
 0x595   :  { %v5046_v31 = vadd.f32 %v11468_v23, %v5045_v43  ;;  %v7008_v15 = vpop.f32.mrf.mxu1  ;;  %7380 = vmatprep.mubr.msk.f32.mxu0 %vm8348_vm0, %v12107_v28 }
 0x596   :  { %8282 = vtanh.f32 %v4105_v19  ;;  %v7235_v40 = vpop.f32.mrf.mxu0 }
 0x597   :  { %v8277_v55 = vpop.eup %8276  ;;  %5458 = vst.msk [vmem:[%s12088_s9 + $0x1a8] sm:$0xff] %vm5404_vm2, %v5046_v31  ;;  %v4109_v10 = vpop.f32.mrf.mxu1 }
 0x598   :  { %v4110_v7 = vadd.f32 %v11374_v62, %v4109_v10  ;;  %v5050_v49 = vpop.f32.mrf.mxu0  ;;  %7381 = vmatmul.mubr.msk.f32.gmra.mxu0 %vm1936_vm1, %v8277_v55 }
 0x599   :  { %v5051_v21 = vadd.f32 %v11468_v23, %v5050_v49  ;;  %v7011_v34 = vpop.f32.mrf.mxu1  ;;  %7383 = vmatprep.mubr.msk.f32.mxu0 %vm8348_vm0, %v12107_v28 }
 0x59a   :  { %8284 = vtanh.f32 %v4110_v7  ;;  %v7238_v42 = vpop.f32.mrf.mxu0 }
 0x59b   :  { %v8279_v11 = vpop.eup %8278  ;;  %5459 = vst.msk [vmem:[%s12088_s9 + $0x1b0] sm:$0xff] %vm5404_vm2, %v5051_v21  ;;  %v4114_v33 = vpop.f32.mrf.mxu1 }
 0x59c   :  { %v4115_v9 = vadd.f32 %v11374_v62, %v4114_v33  ;;  %v5055_v60 = vpop.f32.mrf.mxu0  ;;  %7384 = vmatmul.mubr.msk.f32.gmra.mxu0 %vm1936_vm1, %v8279_v11 }
 0x59d   :  { %v5056_v45 = vadd.f32 %v11468_v23, %v5055_v60  ;;  %v7014_v4 = vpop.f32.mrf.mxu1  ;;  %7386 = vmatprep.mubr.msk.f32.mxu0 %vm8348_vm0, %v12107_v28 }
 0x59e   :  { %8286 = vtanh.f32 %v4115_v9  ;;  %v7241_v2 = vpop.f32.mrf.mxu0 }
 0x59f   :  { %v8281_v57 = vpop.eup %8280  ;;  %5460 = vst.msk [vmem:[%s12088_s9 + $0x1b8] sm:$0xff] %vm5404_vm2, %v5056_v45  ;;  %v4119_v52 = vpop.f32.mrf.mxu1 }
 0x5a0   :  { %v4120_v46 = vadd.f32 %v11374_v62, %v4119_v52  ;;  %v5060_v18 = vpop.f32.mrf.mxu0  ;;  %7387 = vmatmul.mubr.msk.f32.gmra.mxu0 %vm1936_vm1, %v8281_v57 }
 0x5a1   :  { %v5061_v37 = vadd.f32 %v11468_v23, %v5060_v18  ;;  %v7017_v50 = vpop.f32.mrf.mxu1  ;;  %7389 = vmatprep.mubr.msk.f32.mxu0 %vm8348_vm0, %v12107_v28 }
 0x5a2   :  { %8288 = vtanh.f32 %v4120_v46  ;;  %v7244_v41 = vpop.f32.mrf.mxu0 }
 0x5a3   :  { %v8283_v20 = vpop.eup %8282  ;;  %5461 = vst.msk [vmem:[%s12088_s9 + $0x1c0] sm:$0xff] %vm5404_vm2, %v5061_v37  ;;  %v4124_v25 = vpop.f32.mrf.mxu1 }
 0x5a4   :  { %v4125_v47 = vadd.f32 %v11374_v62, %v4124_v25  ;;  %v5065_v0 = vpop.f32.mrf.mxu0  ;;  %7390 = vmatmul.mubr.msk.f32.gmra.mxu0 %vm1936_vm1, %v8283_v20 }
 0x5a5   :  { %v5066_v17 = vadd.f32 %v11468_v23, %v5065_v0  ;;  %v7020_v58 = vpop.f32.mrf.mxu1  ;;  %7392 = vmatprep.mubr.msk.f32.mxu0 %vm8348_vm0, %v12107_v28 }
 0x5a6   :  { %8290 = vtanh.f32 %v4125_v47  ;;  %v7247_v12 = vpop.f32.mrf.mxu0 }
 0x5a7   :  { %v8285_v29 = vpop.eup %8284  ;;  %5462 = vst.msk [vmem:[%s12088_s9 + $0x1c8] sm:$0xff] %vm5404_vm2, %v5066_v17  ;;  %v4129_v6 = vpop.f32.mrf.mxu1 }
 0x5a8   :  { %v4130_v44 = vadd.f32 %v11374_v62, %v4129_v6  ;;  %v5070_v54 = vpop.f32.mrf.mxu0  ;;  %7393 = vmatmul.mubr.msk.f32.gmra.mxu0 %vm1936_vm1, %v8285_v29 }
 0x5a9   :  { %v5071_v53 = vadd.f32 %v11468_v23, %v5070_v54  ;;  %v7023_v26 = vpop.f32.mrf.mxu1  ;;  %7395 = vmatprep.mubr.msk.f32.mxu0 %vm8348_vm0, %v12107_v28 }
 0x5aa   :  { %8292 = vtanh.f32 %v4130_v44  ;;  %v7250_v5 = vpop.f32.mrf.mxu0 }
 0x5ab   :  { %v8287_v22 = vpop.eup %8286  ;;  %5463 = vst.msk [vmem:[%s12088_s9 + $0x1d0] sm:$0xff] %vm5404_vm2, %v5071_v53  ;;  %v4134_v39 = vpop.f32.mrf.mxu1 }
 0x5ac   :  { %v4135_v8 = vadd.f32 %v11374_v62, %v4134_v39  ;;  %v5075_v48 = vpop.f32.mrf.mxu0  ;;  %7396 = vmatmul.mubr.msk.f32.gmra.mxu0 %vm1936_vm1, %v8287_v22 }
 0x5ad   :  { %v5076_v61 = vadd.f32 %v11468_v23, %v5075_v48  ;;  %v7026_v16 = vpop.f32.mrf.mxu1  ;;  %7398 = vmatprep.mubr.msk.f32.mxu0 %vm8348_vm0, %v12107_v28 }
 0x5ae   :  { %8294 = vtanh.f32 %v4135_v8  ;;  %v7253_v30 = vpop.f32.mrf.mxu0 }
 0x5af   :  { %v8289_v1 = vpop.eup %8288  ;;  %5464 = vst.msk [vmem:[%s12088_s9 + $0x1d8] sm:$0xff] %vm5404_vm2, %v5076_v61  ;;  %v4139_v24 = vpop.f32.mrf.mxu1 }
 0x5b0   :  { %v4140_v38 = vadd.f32 %v11374_v62, %v4139_v24  ;;  %v5080_v59 = vpop.f32.mrf.mxu0  ;;  %7399 = vmatmul.mubr.msk.f32.gmra.mxu0 %vm1936_vm1, %v8289_v1 }
 0x5b1   :  { %v5081_v3 = vadd.f32 %v11468_v23, %v5080_v59  ;;  %v7029_v35 = vpop.f32.mrf.mxu1  ;;  %7401 = vmatprep.mubr.msk.f32.mxu0 %vm8348_vm0, %v12107_v28 }
 0x5b2   :  { %8296 = vtanh.f32 %v4140_v38  ;;  %v7256_v56 = vpop.f32.mrf.mxu0 }
 0x5b3   :  { %v8291_v14 = vpop.eup %8290  ;;  %5465 = vst.msk [vmem:[%s12088_s9 + $0x1e0] sm:$0xff] %vm5404_vm2, %v5081_v3  ;;  %v4144_v63 = vpop.f32.mrf.mxu1 }
 0x5b4   :  { %v4145_v51 = vadd.f32 %v11374_v62, %v4144_v63  ;;  %v5085_v27 = vpop.f32.mrf.mxu0  ;;  %7402 = vmatmul.mubr.msk.f32.gmra.mxu0 %vm1936_vm1, %v8291_v14 }
 0x5b5   :  { %v5086_v32 = vadd.f32 %v11468_v23, %v5085_v27  ;;  %v7032_v36 = vpop.f32.mrf.mxu1  ;;  %7404 = vmatprep.mubr.msk.f32.mxu0 %vm8348_vm0, %v12107_v28 }
 0x5b6   :  { %8298 = vtanh.f32 %v4145_v51  ;;  %v7259_v13 = vpop.f32.mrf.mxu0 }
 0x5b7   :  { %v8293_v19 = vpop.eup %8292  ;;  %5466 = vst.msk [vmem:[%s12088_s9 + $0x1e8] sm:$0xff] %vm5404_vm2, %v5086_v32  ;;  %v4149_v43 = vpop.f32.mrf.mxu1 }
 0x5b8   :  { %v4150_v31 = vadd.f32 %v11374_v62, %v4149_v43  ;;  %v5090_v15 = vpop.f32.mrf.mxu0  ;;  %7405 = vmatmul.mubr.msk.f32.gmra.mxu0 %vm1936_vm1, %v8293_v19 }
 0x5b9   :  { %v5091_v40 = vadd.f32 %v11468_v23, %v5090_v15  ;;  %v7035_v55 = vpop.f32.mrf.mxu1  ;;  %7407 = vmatprep.mubr.msk.f32.mxu0 %vm8348_vm0, %v12107_v28 }
 0x5ba   :  { %8300 = vtanh.f32 %v4150_v31  ;;  %v7262_v10 = vpop.f32.mrf.mxu0 }
 0x5bb   :  { %v8295_v7 = vpop.eup %8294  ;;  %5467 = vst.msk [vmem:[%s12088_s9 + $0x1f0] sm:$0xff] %vm5404_vm2, %v5091_v40  ;;  %v4154_v49 = vpop.f32.mrf.mxu1 }
 0x5bc   :  { %v4155_v21 = vadd.f32 %v11374_v62, %v4154_v49  ;;  %v5095_v34 = vpop.f32.mrf.mxu0  ;;  %7408 = vmatmul.mubr.msk.f32.gmra.mxu0 %vm1936_vm1, %v8295_v7 }
 0x5bd   :  { %v5096_v42 = vadd.f32 %v11468_v23, %v5095_v34  ;;  %v7038_v11 = vpop.f32.mrf.mxu1  ;;  %7410 = vmatprep.mubr.msk.f32.mxu0 %vm8348_vm0, %v12107_v28 }
 0x5be   :  { %8302 = vtanh.f32 %v4155_v21  ;;  %v7265_v33 = vpop.f32.mrf.mxu0 }
 0x5bf   :  { %v8297_v9 = vpop.eup %8296  ;;  %5468 = vst.msk [vmem:[%s12088_s9 + $0x1f8] sm:$0xff] %vm5404_vm2, %v5096_v42  ;;  %v4159_v60 = vpop.f32.mrf.mxu1 }
 0x5c0   :  { %v4160_v45 = vadd.f32 %v11374_v62, %v4159_v60  ;;  %v5100_v4 = vpop.f32.mrf.mxu0  ;;  %7411 = vmatmul.mubr.msk.f32.gmra.mxu0 %vm1936_vm1, %v8297_v9 }
 0x5c1   :  { %v5101_v2 = vadd.f32 %v11468_v23, %v5100_v4  ;;  %v7041_v57 = vpop.f32.mrf.mxu1  ;;  %7413 = vmatprep.mubr.msk.f32.mxu0 %vm8348_vm0, %v12107_v28 }
 0x5c2   :  { %8304 = vtanh.f32 %v4160_v45  ;;  %v7268_v52 = vpop.f32.mrf.mxu0 }
 0x5c3   :  { %v8299_v46 = vpop.eup %8298  ;;  %5469 = vst.msk [vmem:[%s12088_s9 + $0x200] sm:$0xff] %vm5404_vm2, %v5101_v2  ;;  %v4164_v18 = vpop.f32.mrf.mxu1 }
 0x5c4   :  { %v4165_v37 = vadd.f32 %v11374_v62, %v4164_v18  ;;  %v5105_v50 = vpop.f32.mrf.mxu0  ;;  %7414 = vmatmul.mubr.msk.f32.gmra.mxu0 %vm1936_vm1, %v8299_v46 }
 0x5c5   :  { %v5106_v41 = vadd.f32 %v11468_v23, %v5105_v50  ;;  %v7044_v20 = vpop.f32.mrf.mxu1  ;;  %7416 = vmatprep.mubr.msk.f32.mxu0 %vm8348_vm0, %v12107_v28 }
 0x5c6   :  { %8306 = vtanh.f32 %v4165_v37  ;;  %v7271_v25 = vpop.f32.mrf.mxu0 }
 0x5c7   :  { %v8301_v47 = vpop.eup %8300  ;;  %5470 = vst.msk [vmem:[%s12088_s9 + $0x208] sm:$0xff] %vm5404_vm2, %v5106_v41  ;;  %v4169_v0 = vpop.f32.mrf.mxu1 }
 0x5c8   :  { %v4170_v17 = vadd.f32 %v11374_v62, %v4169_v0  ;;  %v5110_v58 = vpop.f32.mrf.mxu0  ;;  %7417 = vmatmul.mubr.msk.f32.gmra.mxu0 %vm1936_vm1, %v8301_v47 }
 0x5c9   :  { %v5111_v12 = vadd.f32 %v11468_v23, %v5110_v58  ;;  %v7047_v29 = vpop.f32.mrf.mxu1  ;;  %7419 = vmatprep.mubr.msk.f32.mxu0 %vm8348_vm0, %v12107_v28 }
 0x5ca   :  { %8308 = vtanh.f32 %v4170_v17  ;;  %v7274_v6 = vpop.f32.mrf.mxu0 }
 0x5cb   :  { %v8303_v44 = vpop.eup %8302  ;;  %5471 = vst.msk [vmem:[%s12088_s9 + $0x210] sm:$0xff] %vm5404_vm2, %v5111_v12  ;;  %v4174_v54 = vpop.f32.mrf.mxu1 }
 0x5cc   :  { %v4175_v53 = vadd.f32 %v11374_v62, %v4174_v54  ;;  %v5115_v26 = vpop.f32.mrf.mxu0  ;;  %7420 = vmatmul.mubr.msk.f32.gmra.mxu0 %vm1936_vm1, %v8303_v44 }
 0x5cd   :  { %v5116_v5 = vadd.f32 %v11468_v23, %v5115_v26  ;;  %v7050_v22 = vpop.f32.mrf.mxu1  ;;  %7422 = vmatprep.mubr.msk.f32.mxu0 %vm8348_vm0, %v12107_v28 }
 0x5ce   :  { %8310 = vtanh.f32 %v4175_v53  ;;  %v7277_v39 = vpop.f32.mrf.mxu0 }
 0x5cf   :  { %v8305_v8 = vpop.eup %8304  ;;  %5472 = vst.msk [vmem:[%s12088_s9 + $0x218] sm:$0xff] %vm5404_vm2, %v5116_v5  ;;  %v4179_v48 = vpop.f32.mrf.mxu1 }
 0x5d0   :  { %v4180_v61 = vadd.f32 %v11374_v62, %v4179_v48  ;;  %v5120_v16 = vpop.f32.mrf.mxu0  ;;  %7423 = vmatmul.mubr.msk.f32.gmra.mxu0 %vm1936_vm1, %v8305_v8 }
 0x5d1   :  { %v5121_v30 = vadd.f32 %v11468_v23, %v5120_v16  ;;  %v7053_v1 = vpop.f32.mrf.mxu1  ;;  %7425 = vmatprep.mubr.msk.f32.mxu0 %vm8348_vm0, %v12107_v28 }
 0x5d2   :  { %8312 = vtanh.f32 %v4180_v61  ;;  %v7280_v24 = vpop.f32.mrf.mxu0 }
 0x5d3   :  { %v8307_v38 = vpop.eup %8306  ;;  %5473 = vst.msk [vmem:[%s12088_s9 + $0x220] sm:$0xff] %vm5404_vm2, %v5121_v30  ;;  %v4184_v59 = vpop.f32.mrf.mxu1 }
 0x5d4   :  { %v4185_v3 = vadd.f32 %v11374_v62, %v4184_v59  ;;  %v5125_v35 = vpop.f32.mrf.mxu0  ;;  %7426 = vmatmul.mubr.msk.f32.gmra.mxu0 %vm1936_vm1, %v8307_v38 }
 0x5d5   :  { %v5126_v56 = vadd.f32 %v11468_v23, %v5125_v35  ;;  %v7056_v14 = vpop.f32.mrf.mxu1  ;;  %7428 = vmatprep.mubr.msk.f32.mxu0 %vm8348_vm0, %v12107_v28 }
 0x5d6   :  { %8314 = vtanh.f32 %v4185_v3  ;;  %v7283_v63 = vpop.f32.mrf.mxu0 }
 0x5d7   :  { %v8309_v51 = vpop.eup %8308  ;;  %5474 = vst.msk [vmem:[%s12088_s9 + $0x228] sm:$0xff] %vm5404_vm2, %v5126_v56  ;;  %v4189_v27 = vpop.f32.mrf.mxu1 }
 0x5d8   :  { %v4190_v32 = vadd.f32 %v11374_v62, %v4189_v27  ;;  %v5130_v36 = vpop.f32.mrf.mxu0  ;;  %7429 = vmatmul.mubr.msk.f32.gmra.mxu0 %vm1936_vm1, %v8309_v51 }
 0x5d9   :  { %v5131_v13 = vadd.f32 %v11468_v23, %v5130_v36  ;;  %v7059_v19 = vpop.f32.mrf.mxu1  ;;  %7431 = vmatprep.mubr.msk.f32.mxu0 %vm8348_vm0, %v12107_v28 }
 0x5da   :  { %8316 = vtanh.f32 %v4190_v32  ;;  %v7286_v43 = vpop.f32.mrf.mxu0 }
 0x5db   :  { %v8311_v31 = vpop.eup %8310  ;;  %5475 = vst.msk [vmem:[%s12088_s9 + $0x230] sm:$0xff] %vm5404_vm2, %v5131_v13  ;;  %v4194_v15 = vpop.f32.mrf.mxu1 }
 0x5dc   :  { %v4195_v40 = vadd.f32 %v11374_v62, %v4194_v15  ;;  %v5135_v55 = vpop.f32.mrf.mxu0  ;;  %7432 = vmatmul.mubr.msk.f32.gmra.mxu0 %vm1936_vm1, %v8311_v31  ;;  %v8343_v62 = vld [vmem:[%s12086_s6] ss:$0 sm:$0xff] }
 0x5dd   :  { %v5136_v10 = vadd.f32 %v11468_v23, %v5135_v55  ;;  %v7062_v7 = vpop.f32.mrf.mxu1  ;;  %7434 = vmatprep.mubr.msk.f32.mxu0 %vm8348_vm0, %v12107_v28 }
 0x5de   :  { %8318 = vtanh.f32 %v4195_v40  ;;  %v7289_v49 = vpop.f32.mrf.mxu0 }
 0x5df   :  { %v8313_v21 = vpop.eup %8312  ;;  %5476 = vst.msk [vmem:[%s12088_s9 + $0x238] sm:$0xff] %vm5404_vm2, %v5136_v10  ;;  %v4199_v34 = vpop.f32.mrf.mxu1 }
 0x5e0   :  { %v4200_v42 = vadd.f32 %v8343_v62, %v4199_v34  ;;  %v5140_v11 = vpop.f32.mrf.mxu0  ;;  %7435 = vmatmul.mubr.msk.f32.gmra.mxu0 %vm1936_vm1, %v8313_v21 }
 0x5e1   :  { %v5141_v33 = vadd.f32 %v11468_v23, %v5140_v11  ;;  %v7065_v9 = vpop.f32.mrf.mxu1  ;;  %7437 = vmatprep.mubr.msk.f32.mxu0 %vm8348_vm0, %v12107_v28 }
 0x5e2   :  { %8320 = vtanh.f32 %v4200_v42  ;;  %v7292_v60 = vpop.f32.mrf.mxu0 }
 0x5e3   :  { %v8315_v45 = vpop.eup %8314  ;;  %5477 = vst.msk [vmem:[%s12088_s9 + $0x240] sm:$0xff] %vm5404_vm2, %v5141_v33 }
 0x5e4   :  { %v5145_v4 = vpop.f32.mrf.mxu0  ;;  %7438 = vmatmul.mubr.msk.f32.gmra.mxu0 %vm1936_vm1, %v8315_v45 }
 0x5e5   :  { %v5146_v2 = vadd.f32 %v11468_v23, %v5145_v4  ;;  %7440 = vmatprep.mubr.msk.f32.mxu0 %vm8348_vm0, %v12107_v28 }
 0x5e6   :  { %v7295_v57 = vpop.f32.mrf.mxu0 }
 0x5e7   :  { %v8317_v52 = vpop.eup %8316  ;;  %5478 = vst.msk [vmem:[%s12088_s9 + $0x248] sm:$0xff] %vm5404_vm2, %v5146_v2 }
 0x5e8   :  { %v5150_v46 = vpop.f32.mrf.mxu0  ;;  %7441 = vmatmul.mubr.msk.f32.gmra.mxu0 %vm1936_vm1, %v8317_v52 }
 0x5e9   :  { %v5151_v18 = vadd.f32 %v11468_v23, %v5150_v46  ;;  %7443 = vmatprep.mubr.msk.f32.mxu0 %vm8348_vm0, %v12107_v28 }
 0x5ea   :  { %v7298_v37 = vpop.f32.mrf.mxu0 }
 0x5eb   :  { %v8319_v50 = vpop.eup %8318  ;;  %5479 = vst.msk [vmem:[%s12088_s9 + $0x250] sm:$0xff] %vm5404_vm2, %v5151_v18 }
 0x5ec   :  { %v5155_v41 = vpop.f32.mrf.mxu0  ;;  %7444 = vmatmul.mubr.msk.f32.gmra.mxu0 %vm1936_vm1, %v8319_v50 }
 0x5ed   :  { %v5156_v20 = vadd.f32 %v11468_v23, %v5155_v41  ;;  %7446 = vmatprep.mubr.msk.f32.mxu0 %vm8348_vm0, %v12107_v28 }
 0x5ee   :  { %v7301_v25 = vpop.f32.mrf.mxu0 }
 0x5ef   :  { %v8321_v47 = vpop.eup %8320  ;;  %5480 = vst.msk [vmem:[%s12088_s9 + $0x258] sm:$0xff] %vm5404_vm2, %v5156_v20  ;;  %v11932_v25 = vld [vmem:[#allocation2] ss:$0 sm:$0xff] }
 0x5f0   :  { %v5160_v0 = vpop.f32.mrf.mxu0  ;;  %7447 = vmatmul.mubr.msk.f32.gmra.mxu0 %vm1936_vm1, %v8321_v47 }
 0x5f1   :  { %v5161_v17 = vadd.f32 %v11468_v23, %v5160_v0 }
 0x5f2   :  { %v7304_v58 = vpop.f32.mrf.mxu0 }
 0x5f3   :  { %5481 = vst.msk [vmem:[%s12088_s9 + $0x260] sm:$0xff] %vm5404_vm2, %v5161_v17 }
 0x5f4   :  { %v5165_v12 = vpop.f32.mrf.mxu0 }
 0x5f5   :  { %v5166_v28 = vadd.f32 %v11468_v23, %v5165_v12 }
 0x5f6   :  { %v7307_v29 = vpop.f32.mrf.mxu0 }
 0x5f7   :  { %5482 = vst.msk [vmem:[%s12088_s9 + $0x268] sm:$0xff] %vm5404_vm2, %v5166_v28 }
 0x5f8   :  { %v5170_v6 = vpop.f32.mrf.mxu0 }
 0x5f9   :  { %v5171_v44 = vadd.f32 %v11468_v23, %v5170_v6 }
 0x5fa   :  { %v7310_v54 = vpop.f32.mrf.mxu0 }
 0x5fb   :  { %5483 = vst.msk [vmem:[%s12088_s9 + $0x270] sm:$0xff] %vm5404_vm2, %v5171_v44 }
 0x5fc   :  { %v5175_v53 = vpop.f32.mrf.mxu0 }
 0x5fd   :  { %v5176_v26 = vadd.f32 %v11468_v23, %v5175_v53 }
 0x5fe   :  { %v7313_v5 = vpop.f32.mrf.mxu0 }
 0x5ff   :  { %5484 = vst.msk [vmem:[%s12088_s9 + $0x278] sm:$0xff] %vm5404_vm2, %v5176_v26 }
 0x600   :  { %v5180_v22 = vpop.f32.mrf.mxu0 }
 0x601   :  { %v5181_v39 = vadd.f32 %v11468_v23, %v5180_v22 }
 0x602   :  { %v7316_v8 = vpop.f32.mrf.mxu0 }
 0x603   :  { %5485 = vst.msk [vmem:[%s12088_s9 + $0x280] sm:$0xff] %vm5404_vm2, %v5181_v39 }
 0x604   :  { %v5185_v48 = vpop.f32.mrf.mxu0 }
 0x605   :  { %v5186_v61 = vadd.f32 %v11468_v23, %v5185_v48 }
 0x606   :  { %v7319_v16 = vpop.f32.mrf.mxu0 }
 0x607   :  { %5486 = vst.msk [vmem:[%s12088_s9 + $0x288] sm:$0xff] %vm5404_vm2, %v5186_v61 }
 0x608   :  { %v5190_v30 = vpop.f32.mrf.mxu0 }
 0x609   :  { %v5191_v1 = vadd.f32 %v11468_v23, %v5190_v30 }
 0x60a   :  { %v7322_v24 = vpop.f32.mrf.mxu0 }
 0x60b   :  { %5487 = vst.msk [vmem:[%s12088_s9 + $0x290] sm:$0xff] %vm5404_vm2, %v5191_v1 }
 0x60c   :  { %v5195_v38 = vpop.f32.mrf.mxu0 }
 0x60d   :  { %v5196_v59 = vadd.f32 %v11468_v23, %v5195_v38 }
 0x60e   :  { %v7325_v3 = vpop.f32.mrf.mxu0 }
 0x60f   :  { %5488 = vst.msk [vmem:[%s12088_s9 + $0x298] sm:$0xff] %vm5404_vm2, %v5196_v59 }
 0x610   :  { %v5200_v35 = vpop.f32.mrf.mxu0 }
 0x611   :  { %v5201_v56 = vadd.f32 %v11468_v23, %v5200_v35 }
 0x612   :  { %v7328_v14 = vpop.f32.mrf.mxu0 }
 0x613   :  { %5489 = vst.msk [vmem:[%s12088_s9 + $0x2a0] sm:$0xff] %vm5404_vm2, %v5201_v56 }
 0x614   :  { %v5205_v63 = vpop.f32.mrf.mxu0 }
 0x615   :  { %v5206_v51 = vadd.f32 %v11468_v23, %v5205_v63 }
 0x616   :  { %v7331_v27 = vpop.f32.mrf.mxu0 }
 0x617   :  { %5490 = vst.msk [vmem:[%s12088_s9 + $0x2a8] sm:$0xff] %vm5404_vm2, %v5206_v51 }
 0x618   :  { %v5210_v32 = vpop.f32.mrf.mxu0 }
 0x619   :  { %v5211_v36 = vadd.f32 %v11468_v23, %v5210_v32 }
 0x61a   :  { %v7334_v13 = vpop.f32.mrf.mxu0 }
 0x61b   :  { %5491 = vst.msk [vmem:[%s12088_s9 + $0x2b0] sm:$0xff] %vm5404_vm2, %v5211_v36 }
 0x61c   :  { %v5215_v19 = vpop.f32.mrf.mxu0 }
 0x61d   :  { %v5216_v43 = vadd.f32 %v11468_v23, %v5215_v19 }
 0x61e   :  { %v7337_v31 = vpop.f32.mrf.mxu0 }
 0x61f   :  { %5492 = vst.msk [vmem:[%s12088_s9 + $0x2b8] sm:$0xff] %vm5404_vm2, %v5216_v43 }
 0x620   :  { %v5220_v15 = vpop.f32.mrf.mxu0 }
 0x621   :  { %v5221_v40 = vadd.f32 %v11468_v23, %v5220_v15 }
 0x622   :  { %v7340_v55 = vpop.f32.mrf.mxu0 }
 0x623   :  { %5493 = vst.msk [vmem:[%s12088_s9 + $0x2c0] sm:$0xff] %vm5404_vm2, %v5221_v40 }
 0x624   :  { %v5225_v10 = vpop.f32.mrf.mxu0 }
 0x625   :  { %v5226_v7 = vadd.f32 %v11468_v23, %v5225_v10 }
 0x626   :  { %v7343_v49 = vpop.f32.mrf.mxu0 }
 0x627   :  { %5494 = vst.msk [vmem:[%s12088_s9 + $0x2c8] sm:$0xff] %vm5404_vm2, %v5226_v7 }
 0x628   :  { %v5230_v21 = vpop.f32.mrf.mxu0 }
 0x629   :  { %v5231_v34 = vadd.f32 %v11468_v23, %v5230_v21 }
 0x62a   :  { %v7346_v62 = vpop.f32.mrf.mxu0 }
 0x62b   :  { %5495 = vst.msk [vmem:[%s12088_s9 + $0x2d0] sm:$0xff] %vm5404_vm2, %v5231_v34 }
 0x62c   :  { %v5235_v42 = vpop.f32.mrf.mxu0 }
 0x62d   :  { %v5236_v11 = vadd.f32 %v11468_v23, %v5235_v42 }
 0x62e   :  { %v7349_v33 = vpop.f32.mrf.mxu0 }
 0x62f   :  { %5496 = vst.msk [vmem:[%s12088_s9 + $0x2d8] sm:$0xff] %vm5404_vm2, %v5236_v11 }
 0x630   :  { %v5240_v9 = vpop.f32.mrf.mxu0 }
 0x631   :  { %v5241_v60 = vadd.f32 %v11468_v23, %v5240_v9 }
 0x632   :  { %v7352_v45 = vpop.f32.mrf.mxu0 }
 0x633   :  { %5497 = vst.msk [vmem:[%s12088_s9 + $0x2e0] sm:$0xff] %vm5404_vm2, %v5241_v60 }
 0x634   :  { %v5245_v4 = vpop.f32.mrf.mxu0 }
 0x635   :  { %v5246_v2 = vadd.f32 %v11468_v23, %v5245_v4 }
 0x636   :  { %v7355_v57 = vpop.f32.mrf.mxu0 }
 0x637   :  { %5498 = vst.msk [vmem:[%s12088_s9 + $0x2e8] sm:$0xff] %vm5404_vm2, %v5246_v2 }
 0x638   :  { %v5250_v52 = vpop.f32.mrf.mxu0 }
 0x639   :  { %v5251_v46 = vadd.f32 %v11468_v23, %v5250_v52 }
 0x63a   :  { %v7358_v18 = vpop.f32.mrf.mxu0 }
 0x63b   :  { %5499 = vst.msk [vmem:[%s12088_s9 + $0x2f0] sm:$0xff] %vm5404_vm2, %v5251_v46 }
 0x63c   :  { %v5255_v37 = vpop.f32.mrf.mxu0 }
 0x63d   :  { %v5256_v50 = vadd.f32 %v11468_v23, %v5255_v37 }
 0x63e   :  { %v7361_v41 = vpop.f32.mrf.mxu0 }
 0x63f   :  { %5500 = vst.msk [vmem:[%s12088_s9 + $0x2f8] sm:$0xff] %vm5404_vm2, %v5256_v50 }
 0x640   :  { %v5260_v20 = vpop.f32.mrf.mxu0 }
 0x641   :  { %v5261_v47 = vadd.f32 %v11932_v25, %v5260_v20 }
 0x642   :  { %v7364_v0 = vpop.f32.mrf.mxu0 }
 0x643   :  { %5501 = vst.msk [vmem:[%s12088_s9 + $0x300] sm:$0xff] %vm5404_vm2, %v5261_v47 }
 0x644   :  { %v5265_v17 = vpop.f32.mrf.mxu0 }
 0x645   :  { %v5266_v23 = vadd.f32 %v11932_v25, %v5265_v17 }
 0x646   :  { %v7367_v58 = vpop.f32.mrf.mxu0 }
 0x647   :  { %5502 = vst.msk [vmem:[%s12088_s9 + $0x308] sm:$0xff] %vm5404_vm2, %v5266_v23 }
 0x648   :  { %v5270_v12 = vpop.f32.mrf.mxu0 }
 0x649   :  { %v5271_v28 = vadd.f32 %v11932_v25, %v5270_v12 }
 0x64a   :  { %v7370_v29 = vpop.f32.mrf.mxu0 }
 0x64b   :  { %5503 = vst.msk [vmem:[%s12088_s9 + $0x310] sm:$0xff] %vm5404_vm2, %v5271_v28 }
 0x64c   :  { %v5275_v6 = vpop.f32.mrf.mxu0 }
 0x64d   :  { %v5276_v44 = vadd.f32 %v11932_v25, %v5275_v6 }
 0x64e   :  { %v7373_v54 = vpop.f32.mrf.mxu0 }
 0x64f   :  { %5504 = vst.msk [vmem:[%s12088_s9 + $0x318] sm:$0xff] %vm5404_vm2, %v5276_v44 }
 0x650   :  { %v5280_v53 = vpop.f32.mrf.mxu0 }
 0x651   :  { %v5281_v26 = vadd.f32 %v11932_v25, %v5280_v53 }
 0x652   :  { %v7376_v5 = vpop.f32.mrf.mxu0 }
 0x653   :  { %5505 = vst.msk [vmem:[%s12088_s9 + $0x320] sm:$0xff] %vm5404_vm2, %v5281_v26 }
 0x654   :  { %v5285_v22 = vpop.f32.mrf.mxu0 }
 0x655   :  { %v5286_v39 = vadd.f32 %v11932_v25, %v5285_v22 }
 0x656   :  { %v7379_v8 = vpop.f32.mrf.mxu0 }
 0x657   :  { %5506 = vst.msk [vmem:[%s12088_s9 + $0x328] sm:$0xff] %vm5404_vm2, %v5286_v39 }
 0x658   :  { %v5290_v48 = vpop.f32.mrf.mxu0 }
 0x659   :  { %v5291_v61 = vadd.f32 %v11932_v25, %v5290_v48 }
 0x65a   :  { %v7382_v16 = vpop.f32.mrf.mxu0 }
 0x65b   :  { %5507 = vst.msk [vmem:[%s12088_s9 + $0x330] sm:$0xff] %vm5404_vm2, %v5291_v61 }
 0x65c   :  { %v5295_v30 = vpop.f32.mrf.mxu0 }
 0x65d   :  { %v5296_v1 = vadd.f32 %v11932_v25, %v5295_v30 }
 0x65e   :  { %v7385_v24 = vpop.f32.mrf.mxu0 }
 0x65f   :  { %5508 = vst.msk [vmem:[%s12088_s9 + $0x338] sm:$0xff] %vm5404_vm2, %v5296_v1 }
 0x660   :  { %v5300_v38 = vpop.f32.mrf.mxu0 }
 0x661   :  { %v5301_v59 = vadd.f32 %v11932_v25, %v5300_v38 }
 0x662   :  { %v7388_v3 = vpop.f32.mrf.mxu0 }
 0x663   :  { %5509 = vst.msk [vmem:[%s12088_s9 + $0x340] sm:$0xff] %vm5404_vm2, %v5301_v59 }
 0x664   :  { %v5305_v35 = vpop.f32.mrf.mxu0 }
 0x665   :  { %v5306_v56 = vadd.f32 %v11932_v25, %v5305_v35 }
 0x666   :  { %v7391_v14 = vpop.f32.mrf.mxu0 }
 0x667   :  { %5510 = vst.msk [vmem:[%s12088_s9 + $0x348] sm:$0xff] %vm5404_vm2, %v5306_v56 }
 0x668   :  { %v5310_v63 = vpop.f32.mrf.mxu0 }
 0x669   :  { %v5311_v51 = vadd.f32 %v11932_v25, %v5310_v63 }
 0x66a   :  { %v7394_v27 = vpop.f32.mrf.mxu0 }
 0x66b   :  { %5511 = vst.msk [vmem:[%s12088_s9 + $0x350] sm:$0xff] %vm5404_vm2, %v5311_v51 }
 0x66c   :  { %v5315_v32 = vpop.f32.mrf.mxu0 }
 0x66d   :  { %v5316_v36 = vadd.f32 %v11932_v25, %v5315_v32 }
 0x66e   :  { %v7397_v13 = vpop.f32.mrf.mxu0 }
 0x66f   :  { %5512 = vst.msk [vmem:[%s12088_s9 + $0x358] sm:$0xff] %vm5404_vm2, %v5316_v36 }
 0x670   :  { %v5320_v19 = vpop.f32.mrf.mxu0 }
 0x671   :  { %v5321_v43 = vadd.f32 %v11932_v25, %v5320_v19 }
 0x672   :  { %v7400_v31 = vpop.f32.mrf.mxu0 }
 0x673   :  { %5513 = vst.msk [vmem:[%s12088_s9 + $0x360] sm:$0xff] %vm5404_vm2, %v5321_v43 }
 0x674   :  { %v5325_v15 = vpop.f32.mrf.mxu0 }
 0x675   :  { %v5326_v40 = vadd.f32 %v11932_v25, %v5325_v15 }
 0x676   :  { %v7403_v55 = vpop.f32.mrf.mxu0 }
 0x677   :  { %5514 = vst.msk [vmem:[%s12088_s9 + $0x368] sm:$0xff] %vm5404_vm2, %v5326_v40 }
 0x678   :  { %v5330_v10 = vpop.f32.mrf.mxu0 }
 0x679   :  { %v5331_v7 = vadd.f32 %v11932_v25, %v5330_v10 }
 0x67a   :  { %v7406_v49 = vpop.f32.mrf.mxu0 }
 0x67b   :  { %5515 = vst.msk [vmem:[%s12088_s9 + $0x370] sm:$0xff] %vm5404_vm2, %v5331_v7 }
 0x67c   :  { %v5335_v21 = vpop.f32.mrf.mxu0 }
 0x67d   :  { %v5336_v34 = vadd.f32 %v11932_v25, %v5335_v21 }
 0x67e   :  { %v7409_v62 = vpop.f32.mrf.mxu0 }
 0x67f   :  { %5516 = vst.msk [vmem:[%s12088_s9 + $0x378] sm:$0xff] %vm5404_vm2, %v5336_v34 }
 0x680   :  { %v5340_v42 = vpop.f32.mrf.mxu0 }
 0x681   :  { %v5341_v11 = vadd.f32 %v11932_v25, %v5340_v42 }
 0x682   :  { %v7412_v33 = vpop.f32.mrf.mxu0 }
 0x683   :  { %5517 = vst.msk [vmem:[%s12088_s9 + $0x380] sm:$0xff] %vm5404_vm2, %v5341_v11 }
 0x684   :  { %v5345_v9 = vpop.f32.mrf.mxu0 }
 0x685   :  { %v5346_v60 = vadd.f32 %v11932_v25, %v5345_v9 }
 0x686   :  { %v7415_v45 = vpop.f32.mrf.mxu0 }
 0x687   :  { %5518 = vst.msk [vmem:[%s12088_s9 + $0x388] sm:$0xff] %vm5404_vm2, %v5346_v60 }
 0x688   :  { %v5350_v4 = vpop.f32.mrf.mxu0 }
 0x689   :  { %v5351_v2 = vadd.f32 %v11932_v25, %v5350_v4 }
 0x68a   :  { %v7418_v57 = vpop.f32.mrf.mxu0 }
 0x68b   :  { %5519 = vst.msk [vmem:[%s12088_s9 + $0x390] sm:$0xff] %vm5404_vm2, %v5351_v2 }
 0x68c   :  { %v5355_v52 = vpop.f32.mrf.mxu0 }
 0x68d   :  { %v5356_v46 = vadd.f32 %v11932_v25, %v5355_v52 }
 0x68e   :  { %v7421_v18 = vpop.f32.mrf.mxu0 }
 0x68f   :  { %5520 = vst.msk [vmem:[%s12088_s9 + $0x398] sm:$0xff] %vm5404_vm2, %v5356_v46 }
 0x690   :  { %v5360_v37 = vpop.f32.mrf.mxu0 }
 0x691   :  { %v5361_v50 = vadd.f32 %v11932_v25, %v5360_v37 }
 0x692   :  { %v7424_v41 = vpop.f32.mrf.mxu0 }
 0x693   :  { %5521 = vst.msk [vmem:[%s12088_s9 + $0x3a0] sm:$0xff] %vm5404_vm2, %v5361_v50 }
 0x694   :  { %v5365_v20 = vpop.f32.mrf.mxu0 }
 0x695   :  { %v5366_v47 = vadd.f32 %v11932_v25, %v5365_v20 }
 0x696   :  { %v7427_v0 = vpop.f32.mrf.mxu0 }
 0x697   :  { %5522 = vst.msk [vmem:[%s12088_s9 + $0x3a8] sm:$0xff] %vm5404_vm2, %v5366_v47 }
 0x698   :  { %v5370_v17 = vpop.f32.mrf.mxu0 }
 0x699   :  { %v5371_v23 = vadd.f32 %v11932_v25, %v5370_v17 }
 0x69a   :  { %v7430_v58 = vpop.f32.mrf.mxu0 }
 0x69b   :  { %5523 = vst.msk [vmem:[%s12088_s9 + $0x3b0] sm:$0xff] %vm5404_vm2, %v5371_v23 }
 0x69c   :  { %v5375_v12 = vpop.f32.mrf.mxu0 }
 0x69d   :  { %v5376_v28 = vadd.f32 %v11932_v25, %v5375_v12 }
 0x69e   :  { %v7433_v29 = vpop.f32.mrf.mxu0 }
 0x69f   :  { %5524 = vst.msk [vmem:[%s12088_s9 + $0x3b8] sm:$0xff] %vm5404_vm2, %v5376_v28 }
 0x6a0   :  { %v5380_v6 = vpop.f32.mrf.mxu0 }
 0x6a1   :  { %v5381_v44 = vadd.f32 %v11932_v25, %v5380_v6 }
 0x6a2   :  { %v7436_v54 = vpop.f32.mrf.mxu0 }
 0x6a3   :  { %5525 = vst.msk [vmem:[%s12088_s9 + $0x3c0] sm:$0xff] %vm5404_vm2, %v5381_v44 }
 0x6a4   :  { %v5385_v53 = vpop.f32.mrf.mxu0 }
 0x6a5   :  { %v5386_v26 = vadd.f32 %v11932_v25, %v5385_v53 }
 0x6a6   :  { %v7439_v5 = vpop.f32.mrf.mxu0 }
 0x6a7   :  { %5526 = vst.msk [vmem:[%s12088_s9 + $0x3c8] sm:$0xff] %vm5404_vm2, %v5386_v26 }
 0x6a8   :  { %v5390_v22 = vpop.f32.mrf.mxu0 }
 0x6a9   :  { %v5391_v39 = vadd.f32 %v11932_v25, %v5390_v22 }
 0x6aa   :  { %v7442_v8 = vpop.f32.mrf.mxu0 }
 0x6ab   :  { %5527 = vst.msk [vmem:[%s12088_s9 + $0x3d0] sm:$0xff] %vm5404_vm2, %v5391_v39 }
 0x6ac   :  { %v5395_v48 = vpop.f32.mrf.mxu0 }
 0x6ad   :  { %v5396_v61 = vadd.f32 %v11932_v25, %v5395_v48 }
 0x6ae   :  { %v7445_v16 = vpop.f32.mrf.mxu0 }
 0x6af   :  { %5528 = vst.msk [vmem:[%s12088_s9 + $0x3d8] sm:$0xff] %vm5404_vm2, %v5396_v61 }
 0x6b0   :  { %v5400_v30 = vpop.f32.mrf.mxu0 }
 0x6b1   :  { %v5401_v1 = vadd.f32 %v11932_v25, %v5400_v30 }
 0x6b2   :  { %v7448_v24 = vpop.f32.mrf.mxu0 }
 0x6b3   :  { %5529 = vst.msk [vmem:[%s12088_s9 + $0x3e0] sm:$0xff] %vm5404_vm2, %v5401_v1 }

</bundles_post_ra>
